<compile_context>
chip_gen: v7x
topology: tpu7x:2x2x1
jax: 0.10.0
libtpu: 0.0.40
codegen_flags: <defaults>
</compile_context>

<pallas_src>
import functools
import math

import jax
import jax.numpy as jnp
import numpy as np
from jax import lax
from jax.experimental import pallas as pl
from jax.experimental.pallas import tpu as pltpu

jax.config.update("jax_default_matmul_precision", "highest")

# ----------------------------- configuration -------------------------------
B = 2            # batch
L = 8            # sequence length
E = 32           # embedding_size
H = 32           # hidden_size
NUM_LAYERS = 2
NUM_HEADS = 4
KD = 32          # total_key_depth
VD = 32          # total_value_depth
F = 64           # filter_size (FFN middle)
DK = KD // NUM_HEADS
DV = VD // NUM_HEADS
BL = B * L                   # flattened (batch, length) rows
GL = NUM_HEADS * BL          # head-major flattened key axis
LN_EPS = 1e-6
NEG_INF = -1e18
HIGHEST = jax.lax.Precision.HIGHEST
LANES = 128

assert KD == VD and DK == DV          # head selector is shared by K/V and denom
assert E + H + GL == LANES            # xin_slab packing
assert 3 * KD + H == LANES            # attnw_slab packing
assert KD + H + 2 * BL <= LANES       # const_slab packing
assert F + H <= LANES                 # conv / vec slab packing
assert 2 * NUM_LAYERS + 1 <= 8        # vec_slab rows


# ------------------------- timing signal (numpy) ---------------------------
def gen_timing_signal(length, channels, min_timescale=1.0, max_timescale=1.0e4):
    position = np.arange(length)
    num_timescales = channels // 2
    log_timescale_increment = (
        math.log(float(max_timescale) / float(min_timescale))
        / (float(num_timescales) - 1))
    inv_timescales = min_timescale * np.exp(
        np.arange(num_timescales).astype(np.float64) * -log_timescale_increment)
    scaled_time = np.expand_dims(position, 1) * np.expand_dims(inv_timescales, 0)
    signal = np.concatenate([np.sin(scaled_time), np.cos(scaled_time)], axis=1)
    signal = np.pad(signal, [[0, 0], [0, channels % 2]], 'constant')
    return jnp.asarray(signal.reshape([1, length, channels]), dtype=jnp.float32)


# ------------------------------ Pallas kernel -------------------------------
def _layer_norm(v, g, b):
    # matches the repo's custom LayerNorm: unbiased std, eps added to std
    mean = jnp.mean(v, axis=-1, keepdims=True)
    var = jnp.sum((v - mean) ** 2, axis=-1, keepdims=True) / (v.shape[-1] - 1)
    return g * (v - mean) / (jnp.sqrt(var) + LN_EPS) + b


def encoder_kernel(xin_ref, const_ref, attnw_ref, convw_ref, vec_ref, out_ref):
    dot = functools.partial(jnp.dot, precision=HIGHEST,
                            preferred_element_type=jnp.float32)

    # ---- unpack lane-dense slabs (static slices, no prologue compute) ------
    xin = xin_ref[...]                           # (BL, 128)
    x_in = xin[:, 0:E]                           # (BL, E)  raw embeddings
    timing = xin[:, E:E + H]                     # (BL, H)  timing signal
    attn_bias = xin[:, E + H:E + H + GL]         # (BL, GL) pad + cross-batch

    const = const_ref[...]                       # (GL, 128)
    head_sel = const[:, 0:KD]                    # (GL, KD) head block-diagonal
    wproj = const[0:E, KD:KD + H]                # (E, H)   embedding projection
    sp = const[0:BL, KD + H:KD + H + BL]         # (BL, BL) prev-token shift
    sn = const[0:BL, KD + H + BL:KD + H + 2 * BL]  # (BL, BL) next-token shift

    vec = vec_ref[...]                           # (8, 128) small row vectors

    def shift_tokens(a):        # (BL, C) -> (BL, 3C) conv taps, via MXU shifts
        return jnp.concatenate([dot(sp, a), a, dot(sn, a)], axis=-1)

    scale = DK ** -0.5

    # ---------------- embedding projection + timing signal ------------------
    x = dot(x_in, wproj) + timing                # (BL, H)

    for l in range(NUM_LAYERS):
        aw = attnw_ref[l]                        # (H, 128) = [wq|wk|wv|wo]
        wqkv = aw[:, 0:3 * KD]
        wo = aw[:, 3 * KD:3 * KD + H]
        cw = convw_ref[l]                        # (3F, 128) = [c1w | c2w]
        c1w = cw[0:3 * H, 0:F]
        c2w = cw[:, F:F + H]
        ln1_g = vec[l:l + 1, 0:H]
        ln1_b = vec[l:l + 1, H:2 * H]
        ln2_g = vec[l:l + 1, 2 * H:3 * H]
        ln2_b = vec[l:l + 1, 3 * H:4 * H]
        c1_b = vec[NUM_LAYERS + l:NUM_LAYERS + l + 1, 0:F]
        c2_b = vec[NUM_LAYERS + l:NUM_LAYERS + l + 1, F:F + H]

        # ----- multi-head self attention (pre-norm, residual) -----
        xn = _layer_norm(x, ln1_g, ln1_b)        # (BL, H)
        qkv = dot(xn, wqkv)                      # (BL, 3KD)
        q = qkv[:, 0:KD]
        k = qkv[:, KD:2 * KD]
        v = qkv[:, 2 * KD:2 * KD + VD]

        # head-block-diagonal K / V layouts (lane-dense, no per-head loop)
        k_sel = jnp.concatenate([k] * NUM_HEADS, axis=0) * head_sel   # (GL, KD)
        v_sel = jnp.concatenate([v] * NUM_HEADS, axis=0) * head_sel   # (GL, VD)

        # logits[r, h*BL+kr] = <q[r, head h dims], k[kr, head h dims]>
        logits = lax.dot_general(
            q, k_sel, (((1,), (1,)), ((), ())),
            precision=HIGHEST, preferred_element_type=jnp.float32)
        logits = logits * scale + attn_bias                           # (BL, GL)

        # per-head row max (robust even if one head's logits dominate another)
        m = jnp.concatenate(
            [jnp.broadcast_to(
                jnp.max(logits[:, h * BL:(h + 1) * BL], axis=-1, keepdims=True),
                (BL, BL))
             for h in range(NUM_HEADS)], axis=-1)
        e = jnp.exp(logits - m)
        # head_sel doubles as the per-head segment-sum matrix -> denom (BL, VD)
        denom = dot(e, head_sel)
        ctx = dot(e, v_sel) * pl.reciprocal(denom)                    # (BL, VD)
        x = x + dot(ctx, wo)

        # ----- positionwise FFN: Conv(H->F,k=3) -> ReLU -> Conv(F->H,k=3) ----
        xn = _layer_norm(x, ln2_g, ln2_b)
        h1 = jnp.maximum(dot(shift_tokens(xn), c1w) + c1_b, 0.0)
        x = x + dot(shift_tokens(h1), c2w) + c2_b

    lnf_g = vec[2 * NUM_LAYERS:2 * NUM_LAYERS + 1, 0:H]
    lnf_b = vec[2 * NUM_LAYERS:2 * NUM_LAYERS + 1, H:2 * H]
    y = _layer_norm(x, lnf_g, lnf_b)
    # lane-dense (BL, 128) store; host slices the first H columns
    out_ref[...] = jnp.concatenate(
        [y, jnp.zeros((BL, LANES - H), jnp.float32)], axis=-1)


# ------------------------------ wrapper -------------------------------------
def _head_select_matrix():
    rh = np.arange(GL) // BL
    ch = np.arange(KD) // DK
    return jnp.asarray((rh[:, None] == ch[None, :]).astype(np.float32))


def _shift_matrices():
    # prev/next token selection with batch-boundary zeroing baked in
    sp = np.zeros((BL, BL), np.float32)
    sn = np.zeros((BL, BL), np.float32)
    for i in range(BL):
        if i % L != 0:
            sp[i, i - 1] = 1.0
        if i % L != L - 1:
            sn[i, i + 1] = 1.0
    return jnp.asarray(sp), jnp.asarray(sn)


def encoder_forward(inputs, mask_bool, params):
    f32 = jnp.float32

    # ---- packed activation slab (BL, 128): [x | timing | attn_bias] --------
    x2d = inputs.reshape(BL, E).astype(f32)
    timing2d = jnp.tile(params['timing'], (B, 1))                   # (BL, H)
    q_batch = jnp.arange(BL, dtype=jnp.int32) // L                  # query row
    col_kr = jnp.arange(GL, dtype=jnp.int32) % BL                   # key row
    k_batch = col_kr // L
    key_pad = mask_bool.reshape(BL)[col_kr]                         # (GL,) bool
    valid = ((q_batch[:, None] == k_batch[None, :])
             & jnp.logical_not(key_pad)[None, :])
    attn_bias = jnp.where(valid, 0.0, NEG_INF).astype(f32)          # (BL, GL)
    xin_slab = jnp.concatenate([x2d, timing2d, attn_bias], axis=-1)

    # ---- constant slab (GL, 128): [head_sel | wproj | shift_prev | shift_next]
    sp, sn = _shift_matrices()
    const_slab = jnp.zeros((GL, LANES), f32)
    const_slab = const_slab.at[:, 0:KD].set(_head_select_matrix())
    const_slab = const_slab.at[0:E, KD:KD + H].set(params['wproj'])
    const_slab = const_slab.at[0:BL, KD + H:KD + H + BL].set(sp)
    const_slab = const_slab.at[0:BL, KD + H + BL:KD + H + 2 * BL].set(sn)

    # ---- per-layer attention weights (NUM_LAYERS, H, 128): [wq|wk|wv|wo] ----
    attnw_slab = jnp.concatenate(
        [params['wq'], params['wk'], params['wv'], params['wo']], axis=-1)

    # ---- per-layer conv weights (NUM_LAYERS, 3F, 128): [c1w | c2w | 0] ------
    c1w = params['c1_w'].reshape(NUM_LAYERS, 3 * H, F)
    c2w = params['c2_w'].reshape(NUM_LAYERS, 3 * F, H)
    c1w_pad = jnp.zeros((NUM_LAYERS, 3 * F, F), f32).at[:, 0:3 * H, :].set(c1w)
    conv_slab = jnp.concatenate(
        [c1w_pad, c2w, jnp.zeros((NUM_LAYERS, 3 * F, LANES - F - H), f32)],
        axis=-1)

    # ---- small row-vector slab (8, 128) -------------------------------------
    vec_slab = jnp.zeros((8, LANES), f32)
    ln_rows = jnp.concatenate(
        [params['ln1_g'], params['ln1_b'], params['ln2_g'], params['ln2_b']],
        axis=-1).reshape(NUM_LAYERS, 4 * H)
    vec_slab = vec_slab.at[0:NUM_LAYERS, 0:4 * H].set(ln_rows)
    bias_rows = jnp.concatenate([params['c1_b'], params['c2_b']],
                                axis=-1).reshape(NUM_LAYERS, F + H)
    vec_slab = vec_slab.at[NUM_LAYERS:2 * NUM_LAYERS, 0:F + H].set(bias_rows)
    lnf_row = jnp.concatenate([params['lnf_g'], params['lnf_b']],
                              axis=-1).reshape(2 * H)
    vec_slab = vec_slab.at[2 * NUM_LAYERS, 0:2 * H].set(lnf_row)

    vmem = pltpu.MemorySpace.VMEM
    out = pl.pallas_call(
        encoder_kernel,
        out_shape=jax.ShapeDtypeStruct((BL, LANES), jnp.float32),
        in_specs=[pl.BlockSpec(memory_space=vmem)] * 5,
        out_specs=pl.BlockSpec(memory_space=vmem),
    )(xin_slab, const_slab, attnw_slab, conv_slab, vec_slab)
    return out[:, 0:H].reshape(B, L, H)


# ------------------------- pure-JAX reference --------------------------------
def reference_forward(inputs, mask_bool, p):
    dot = functools.partial(jnp.matmul, precision=HIGHEST)

    def ln(v, g, b):
        mean = jnp.mean(v, axis=-1, keepdims=True)
        var = jnp.sum((v - mean) ** 2, axis=-1, keepdims=True) / (v.shape[-1] - 1)
        return g * (v - mean) / (jnp.sqrt(var) + LN_EPS) + b

    x = dot(inputs, p['wproj']) + p['timing']          # [B, L, H]
    scale = DK ** -0.5
    for l in range(NUM_LAYERS):
        xn = ln(x, p['ln1_g'][l], p['ln1_b'][l])
        q = dot(xn, p['wq'][l]).reshape(B, L, NUM_HEADS, DK).transpose(0, 2, 1, 3) * scale
        k = dot(xn, p['wk'][l]).reshape(B, L, NUM_HEADS, DK).transpose(0, 2, 1, 3)
        v = dot(xn, p['wv'][l]).reshape(B, L, NUM_HEADS, DV).transpose(0, 2, 1, 3)
        logits = jnp.einsum('bhqd,bhkd->bhqk', q, k, precision=HIGHEST)
        logits = jnp.where(mask_bool[:, :, None, :], NEG_INF, logits)
        w = jax.nn.softmax(logits, axis=-1)
        ctx = jnp.einsum('bhqk,bhkd->bhqd', w, v, precision=HIGHEST)
        ctx = ctx.transpose(0, 2, 1, 3).reshape(B, L, VD)
        x = x + dot(ctx, p['wo'][l])

        xn = ln(x, p['ln2_g'][l], p['ln2_b'][l])
        xp = jnp.pad(xn, ((0, 0), (1, 1), (0, 0)))
        h1 = (dot(xp[:, 0:L], p['c1_w'][l, 0]) + dot(xp[:, 1:L + 1], p['c1_w'][l, 1])
              + dot(xp[:, 2:L + 2], p['c1_w'][l, 2]) + p['c1_b'][l])
        h1 = jnp.maximum(h1, 0.0)
        hp = jnp.pad(h1, ((0, 0), (1, 1), (0, 0)))
        y = (dot(hp[:, 0:L], p['c2_w'][l, 0]) + dot(hp[:, 1:L + 1], p['c2_w'][l, 1])
             + dot(hp[:, 2:L + 2], p['c2_w'][l, 2]) + p['c2_b'][l])
        x = x + y
    return ln(x, p['lnf_g'], p['lnf_b'])


# ------------------------------- main ----------------------------------------
if __name__ == "__main__":
    key = jax.random.PRNGKey(0)
    ks = list(jax.random.split(key, 20))

    def rnd(k, shape, s=0.1):
        return jax.random.normal(k, shape, dtype=jnp.float32) * s

    params = {
        'timing': gen_timing_signal(L, H)[0],                       # [L, H]
        'wproj': rnd(ks[0], (E, H)),
        'ln1_g': 1.0 + rnd(ks[1], (NUM_LAYERS, 1, H), 0.02),
        'ln1_b': rnd(ks[2], (NUM_LAYERS, 1, H), 0.02),
        'wq':    rnd(ks[3], (NUM_LAYERS, H, KD)),
        'wk':    rnd(ks[4], (NUM_LAYERS, H, KD)),
        'wv':    rnd(ks[5], (NUM_LAYERS, H, VD)),
        'wo':    rnd(ks[6], (NUM_LAYERS, VD, H)),
        'ln2_g': 1.0 + rnd(ks[7], (NUM_LAYERS, 1, H), 0.02),
        'ln2_b': rnd(ks[8], (NUM_LAYERS, 1, H), 0.02),
        'c1_w':  rnd(ks[9], (NUM_LAYERS, 3, H, F)),                 # per-tap [in,out]
        'c1_b':  rnd(ks[10], (NUM_LAYERS, 1, F), 0.02),
        'c2_w':  rnd(ks[11], (NUM_LAYERS, 3, F, H)),
        'c2_b':  rnd(ks[12], (NUM_LAYERS, 1, H), 0.02),
        'lnf_g': 1.0 + rnd(ks[13], (1, H), 0.02),
        'lnf_b': rnd(ks[14], (1, H), 0.02),
    }

    inputs = jax.random.normal(ks[15], (B, L, E), dtype=jnp.float32)
    # padding mask: True where position is PAD (masked out in attention)
    mask_bool = jnp.zeros((B, 1, L), dtype=bool).at[0, 0, L - 2:].set(True)

    # TODO(synk): dropout layers (input/layer/attention/relu) are eval-mode
    # identities here; universal/ACT branch is not exercised (universal=False).

    out = jax.block_until_ready(encoder_forward(inputs, mask_bool, params))
    ref = jax.block_until_ready(reference_forward(inputs, mask_bool, params))
    np.testing.assert_allclose(np.asarray(out), np.asarray(ref),
                               rtol=2e-3, atol=2e-3)

    print("KERNEL_OK")
</pallas_src>

<mosaic_0001>
module attributes {stable_mosaic.version = 11 : i64} {
  func.func @encoder_kernel(%arg0: memref<16x128xf32, #tpu.memory_space<vmem>>, %arg1: memref<64x128xf32, #tpu.memory_space<vmem>>, %arg2: memref<2x32x128xf32, #tpu.memory_space<vmem>>, %arg3: memref<2x192x128xf32, #tpu.memory_space<vmem>>, %arg4: memref<8x128xf32, #tpu.memory_space<vmem>>, %arg5: memref<16x128xf32, #tpu.memory_space<vmem>>) attributes {dimension_semantics = [], scalar_prefetch = 0 : i64, scratch_operands = 0 : i64, tpu.core_type = #tpu.core_type<tc>} {
    %c0 = arith.constant 0 : index
    %c0_0 = arith.constant 0 : index
    %0 = vector.load %arg0[%c0, %c0_0] : memref<16x128xf32, #tpu.memory_space<vmem>>, vector<16x128xf32>
    %1 = vector.extract_strided_slice %0 {offsets = [0, 0], sizes = [16, 32], strides = [1, 1]} : vector<16x128xf32> to vector<16x32xf32>
    %2 = vector.extract_strided_slice %0 {offsets = [0, 32], sizes = [16, 32], strides = [1, 1]} : vector<16x128xf32> to vector<16x32xf32>
    %3 = vector.extract_strided_slice %0 {offsets = [0, 64], sizes = [16, 64], strides = [1, 1]} : vector<16x128xf32> to vector<16x64xf32>
    %c0_1 = arith.constant 0 : index
    %c0_2 = arith.constant 0 : index
    %4 = vector.load %arg1[%c0_1, %c0_2] : memref<64x128xf32, #tpu.memory_space<vmem>>, vector<64x128xf32>
    %5 = vector.extract_strided_slice %4 {offsets = [0, 0], sizes = [64, 32], strides = [1, 1]} : vector<64x128xf32> to vector<64x32xf32>
    %6 = vector.extract_strided_slice %4 {offsets = [0, 32], sizes = [32, 32], strides = [1, 1]} : vector<64x128xf32> to vector<32x32xf32>
    %7 = vector.extract_strided_slice %4 {offsets = [0, 64], sizes = [16, 16], strides = [1, 1]} : vector<64x128xf32> to vector<16x16xf32>
    %8 = vector.extract_strided_slice %4 {offsets = [0, 80], sizes = [16, 16], strides = [1, 1]} : vector<64x128xf32> to vector<16x16xf32>
    %c0_3 = arith.constant 0 : index
    %c0_4 = arith.constant 0 : index
    %9 = vector.load %arg4[%c0_3, %c0_4] : memref<8x128xf32, #tpu.memory_space<vmem>>, vector<8x128xf32>
    %cst = arith.constant dense<0.000000e+00> : vector<16x32xf32>
    %10 = tpu.matmul %1, %6, %cst {dimension_numbers = #tpu.dot_dimension_numbers<[1], [0], [0], [1], [0, 0, 1, 1], [], []>, precision = #tpu.contract_precision<fp32>} : vector<16x32xf32>, vector<32x32xf32>, vector<16x32xf32> -> vector<16x32xf32>
    %11 = arith.addf %10, %2 : vector<16x32xf32>
    %c0_5 = arith.constant 0 : index
    %c0_6 = arith.constant 0 : index
    %c0_7 = arith.constant 0 : index
    %12 = vector.load %arg2[%c0_5, %c0_6, %c0_7] : memref<2x32x128xf32, #tpu.memory_space<vmem>>, vector<1x32x128xf32>
    %13 = vector.shape_cast %12 : vector<1x32x128xf32> to vector<32x128xf32>
    %14 = vector.extract_strided_slice %13 {offsets = [0, 0], sizes = [32, 96], strides = [1, 1]} : vector<32x128xf32> to vector<32x96xf32>
    %15 = vector.extract_strided_slice %13 {offsets = [0, 96], sizes = [32, 32], strides = [1, 1]} : vector<32x128xf32> to vector<32x32xf32>
    %c0_8 = arith.constant 0 : index
    %c0_9 = arith.constant 0 : index
    %c0_10 = arith.constant 0 : index
    %16 = vector.load %arg3[%c0_8, %c0_9, %c0_10] : memref<2x192x128xf32, #tpu.memory_space<vmem>>, vector<1x192x128xf32>
    %17 = vector.shape_cast %16 : vector<1x192x128xf32> to vector<192x128xf32>
    %18 = vector.extract_strided_slice %17 {offsets = [0, 0], sizes = [96, 64], strides = [1, 1]} : vector<192x128xf32> to vector<96x64xf32>
    %19 = vector.extract_strided_slice %17 {offsets = [0, 64], sizes = [192, 32], strides = [1, 1]} : vector<192x128xf32> to vector<192x32xf32>
    %20 = vector.extract_strided_slice %9 {offsets = [0, 0], sizes = [1, 32], strides = [1, 1]} : vector<8x128xf32> to vector<1x32xf32>
    %21 = vector.extract_strided_slice %9 {offsets = [0, 32], sizes = [1, 32], strides = [1, 1]} : vector<8x128xf32> to vector<1x32xf32>
    %22 = vector.extract_strided_slice %9 {offsets = [0, 64], sizes = [1, 32], strides = [1, 1]} : vector<8x128xf32> to vector<1x32xf32>
    %23 = vector.extract_strided_slice %9 {offsets = [0, 96], sizes = [1, 32], strides = [1, 1]} : vector<8x128xf32> to vector<1x32xf32>
    %24 = vector.extract_strided_slice %9 {offsets = [2, 0], sizes = [1, 64], strides = [1, 1]} : vector<8x128xf32> to vector<1x64xf32>
    %25 = vector.extract_strided_slice %9 {offsets = [2, 64], sizes = [1, 32], strides = [1, 1]} : vector<8x128xf32> to vector<1x32xf32>
    %cst_11 = arith.constant dense<0.000000e+00> : vector<16xf32>
    %26 = vector.multi_reduction <add>, %11, %cst_11 [1] : vector<16x32xf32> to vector<16xf32>
    %27 = vector.shape_cast %26 : vector<16xf32> to vector<16x1xf32>
    %cst_12 = arith.constant 3.200000e+01 : f32
    %28 = vector.broadcast %cst_12 : f32 to vector<16x1xf32>
    %29 = arith.divf %27, %28 : vector<16x1xf32>
    %30 = vector.broadcast %29 : vector<16x1xf32> to vector<16x32xf32>
    %31 = arith.subf %11, %30 : vector<16x32xf32>
    %32 = arith.mulf %31, %31 : vector<16x32xf32>
    %cst_13 = arith.constant dense<0.000000e+00> : vector<16xf32>
    %33 = vector.multi_reduction <add>, %32, %cst_13 [1] : vector<16x32xf32> to vector<16xf32>
    %34 = vector.shape_cast %33 : vector<16xf32> to vector<16x1xf32>
    %cst_14 = arith.constant 3.100000e+01 : f32
    %35 = vector.broadcast %cst_14 : f32 to vector<16x1xf32>
    %36 = arith.divf %34, %35 : vector<16x1xf32>
    %37 = vector.broadcast %29 : vector<16x1xf32> to vector<16x32xf32>
    %38 = arith.subf %11, %37 : vector<16x32xf32>
    %39 = vector.broadcast %20 : vector<1x32xf32> to vector<16x32xf32>
    %40 = arith.mulf %39, %38 : vector<16x32xf32>
    %41 = math.sqrt %36 : vector<16x1xf32>
    %cst_15 = arith.constant 9.99999997E-7 : f32
    %42 = vector.broadcast %cst_15 : f32 to vector<16x1xf32>
    %43 = arith.addf %41, %42 : vector<16x1xf32>
    %44 = vector.broadcast %43 : vector<16x1xf32> to vector<16x32xf32>
    %45 = arith.divf %40, %44 : vector<16x32xf32>
    %46 = vector.broadcast %21 : vector<1x32xf32> to vector<16x32xf32>
    %47 = arith.addf %45, %46 : vector<16x32xf32>
    %cst_16 = arith.constant dense<0.000000e+00> : vector<16x96xf32>
    %48 = tpu.matmul %47, %14, %cst_16 {dimension_numbers = #tpu.dot_dimension_numbers<[1], [0], [0], [1], [0, 0, 1, 1], [], []>, precision = #tpu.contract_precision<fp32>} : vector<16x32xf32>, vector<32x96xf32>, vector<16x96xf32> -> vector<16x96xf32>
    %49 = vector.extract_strided_slice %48 {offsets = [0, 0], sizes = [16, 32], strides = [1, 1]} : vector<16x96xf32> to vector<16x32xf32>
    %50 = vector.extract_strided_slice %48 {offsets = [0, 32], sizes = [16, 32], strides = [1, 1]} : vector<16x96xf32> to vector<16x32xf32>
    %51 = vector.extract_strided_slice %48 {offsets = [0, 64], sizes = [16, 32], strides = [1, 1]} : vector<16x96xf32> to vector<16x32xf32>
    %52 = tpu.concatenate %50, %50, %50, %50 in 0 : vector<16x32xf32>, vector<16x32xf32>, vector<16x32xf32>, vector<16x32xf32> -> vector<64x32xf32>
    %53 = arith.mulf %52, %5 : vector<64x32xf32>
    %54 = tpu.concatenate %51, %51, %51, %51 in 0 : vector<16x32xf32>, vector<16x32xf32>, vector<16x32xf32>, vector<16x32xf32> -> vector<64x32xf32>
    %55 = arith.mulf %54, %5 : vector<64x32xf32>
    %cst_17 = arith.constant dense<0.000000e+00> : vector<16x64xf32>
    %56 = tpu.matmul %49, %53, %cst_17 {dimension_numbers = #tpu.dot_dimension_numbers<[1], [1], [0], [0], [0, 0, 1, 0], [], []>, precision = #tpu.contract_precision<fp32>} : vector<16x32xf32>, vector<64x32xf32>, vector<16x64xf32> -> vector<16x64xf32>
    %cst_18 = arith.constant 0.353553385 : f32
    %57 = vector.broadcast %cst_18 : f32 to vector<16x64xf32>
    %58 = arith.mulf %56, %57 : vector<16x64xf32>
    %59 = arith.addf %58, %3 : vector<16x64xf32>
    %60 = vector.extract_strided_slice %59 {offsets = [0, 0], sizes = [16, 16], strides = [1, 1]} : vector<16x64xf32> to vector<16x16xf32>
    %cst_19 = arith.constant dense<0xFF800000> : vector<16xf32>
    %61 = vector.multi_reduction <maximumf>, %60, %cst_19 [1] : vector<16x16xf32> to vector<16xf32>
    %62 = vector.shape_cast %61 : vector<16xf32> to vector<16x1xf32>
    %63 = vector.shape_cast %62 : vector<16x1xf32> to vector<16x1xf32>
    %64 = vector.broadcast %63 : vector<16x1xf32> to vector<16x16xf32>
    %65 = vector.extract_strided_slice %59 {offsets = [0, 16], sizes = [16, 16], strides = [1, 1]} : vector<16x64xf32> to vector<16x16xf32>
    %cst_20 = arith.constant dense<0xFF800000> : vector<16xf32>
    %66 = vector.multi_reduction <maximumf>, %65, %cst_20 [1] : vector<16x16xf32> to vector<16xf32>
    %67 = vector.shape_cast %66 : vector<16xf32> to vector<16x1xf32>
    %68 = vector.shape_cast %67 : vector<16x1xf32> to vector<16x1xf32>
    %69 = vector.broadcast %68 : vector<16x1xf32> to vector<16x16xf32>
    %70 = vector.extract_strided_slice %59 {offsets = [0, 32], sizes = [16, 16], strides = [1, 1]} : vector<16x64xf32> to vector<16x16xf32>
    %cst_21 = arith.constant dense<0xFF800000> : vector<16xf32>
    %71 = vector.multi_reduction <maximumf>, %70, %cst_21 [1] : vector<16x16xf32> to vector<16xf32>
    %72 = vector.shape_cast %71 : vector<16xf32> to vector<16x1xf32>
    %73 = vector.shape_cast %72 : vector<16x1xf32> to vector<16x1xf32>
    %74 = vector.broadcast %73 : vector<16x1xf32> to vector<16x16xf32>
    %75 = vector.extract_strided_slice %59 {offsets = [0, 48], sizes = [16, 16], strides = [1, 1]} : vector<16x64xf32> to vector<16x16xf32>
    %cst_22 = arith.constant dense<0xFF800000> : vector<16xf32>
    %76 = vector.multi_reduction <maximumf>, %75, %cst_22 [1] : vector<16x16xf32> to vector<16xf32>
    %77 = vector.shape_cast %76 : vector<16xf32> to vector<16x1xf32>
    %78 = vector.shape_cast %77 : vector<16x1xf32> to vector<16x1xf32>
    %79 = vector.broadcast %78 : vector<16x1xf32> to vector<16x16xf32>
    %80 = tpu.concatenate %64, %69, %74, %79 in 1 : vector<16x16xf32>, vector<16x16xf32>, vector<16x16xf32>, vector<16x16xf32> -> vector<16x64xf32>
    %81 = arith.subf %59, %80 : vector<16x64xf32>
    %82 = math.exp %81 : vector<16x64xf32>
    %cst_23 = arith.constant dense<0.000000e+00> : vector<16x32xf32>
    %83 = tpu.matmul %82, %5, %cst_23 {dimension_numbers = #tpu.dot_dimension_numbers<[1], [0], [0], [1], [0, 0, 1, 1], [], []>, precision = #tpu.contract_precision<fp32>} : vector<16x64xf32>, vector<64x32xf32>, vector<16x32xf32> -> vector<16x32xf32>
    %cst_24 = arith.constant dense<0.000000e+00> : vector<16x32xf32>
    %84 = tpu.matmul %82, %55, %cst_24 {dimension_numbers = #tpu.dot_dimension_numbers<[1], [0], [0], [1], [0, 0, 1, 1], [], []>, precision = #tpu.contract_precision<fp32>} : vector<16x64xf32>, vector<64x32xf32>, vector<16x32xf32> -> vector<16x32xf32>
    %85 = tpu.reciprocal %83 : vector<16x32xf32> -> vector<16x32xf32>
    %86 = arith.mulf %84, %85 : vector<16x32xf32>
    %cst_25 = arith.constant dense<0.000000e+00> : vector<16x32xf32>
    %87 = tpu.matmul %86, %15, %cst_25 {dimension_numbers = #tpu.dot_dimension_numbers<[1], [0], [0], [1], [0, 0, 1, 1], [], []>, precision = #tpu.contract_precision<fp32>} : vector<16x32xf32>, vector<32x32xf32>, vector<16x32xf32> -> vector<16x32xf32>
    %88 = arith.addf %11, %87 : vector<16x32xf32>
    %cst_26 = arith.constant dense<0.000000e+00> : vector<16xf32>
    %89 = vector.multi_reduction <add>, %88, %cst_26 [1] : vector<16x32xf32> to vector<16xf32>
    %90 = vector.shape_cast %89 : vector<16xf32> to vector<16x1xf32>
    %cst_27 = arith.constant 3.200000e+01 : f32
    %91 = vector.broadcast %cst_27 : f32 to vector<16x1xf32>
    %92 = arith.divf %90, %91 : vector<16x1xf32>
    %93 = vector.broadcast %92 : vector<16x1xf32> to vector<16x32xf32>
    %94 = arith.subf %88, %93 : vector<16x32xf32>
    %95 = arith.mulf %94, %94 : vector<16x32xf32>
    %cst_28 = arith.constant dense<0.000000e+00> : vector<16xf32>
    %96 = vector.multi_reduction <add>, %95, %cst_28 [1] : vector<16x32xf32> to vector<16xf32>
    %97 = vector.shape_cast %96 : vector<16xf32> to vector<16x1xf32>
    %cst_29 = arith.constant 3.100000e+01 : f32
    %98 = vector.broadcast %cst_29 : f32 to vector<16x1xf32>
    %99 = arith.divf %97, %98 : vector<16x1xf32>
    %100 = vector.broadcast %92 : vector<16x1xf32> to vector<16x32xf32>
    %101 = arith.subf %88, %100 : vector<16x32xf32>
    %102 = vector.broadcast %22 : vector<1x32xf32> to vector<16x32xf32>
    %103 = arith.mulf %102, %101 : vector<16x32xf32>
    %104 = math.sqrt %99 : vector<16x1xf32>
    %cst_30 = arith.constant 9.99999997E-7 : f32
    %105 = vector.broadcast %cst_30 : f32 to vector<16x1xf32>
    %106 = arith.addf %104, %105 : vector<16x1xf32>
    %107 = vector.broadcast %106 : vector<16x1xf32> to vector<16x32xf32>
    %108 = arith.divf %103, %107 : vector<16x32xf32>
    %109 = vector.broadcast %23 : vector<1x32xf32> to vector<16x32xf32>
    %110 = arith.addf %108, %109 : vector<16x32xf32>
    %cst_31 = arith.constant dense<0.000000e+00> : vector<16x32xf32>
    %111 = tpu.matmul %7, %110, %cst_31 {dimension_numbers = #tpu.dot_dimension_numbers<[1], [0], [0], [1], [0, 0, 1, 1], [], []>, precision = #tpu.contract_precision<fp32>} : vector<16x16xf32>, vector<16x32xf32>, vector<16x32xf32> -> vector<16x32xf32>
    %cst_32 = arith.constant dense<0.000000e+00> : vector<16x32xf32>
    %112 = tpu.matmul %8, %110, %cst_32 {dimension_numbers = #tpu.dot_dimension_numbers<[1], [0], [0], [1], [0, 0, 1, 1], [], []>, precision = #tpu.contract_precision<fp32>} : vector<16x16xf32>, vector<16x32xf32>, vector<16x32xf32> -> vector<16x32xf32>
    %113 = tpu.concatenate %111, %110, %112 in 1 : vector<16x32xf32>, vector<16x32xf32>, vector<16x32xf32> -> vector<16x96xf32>
    %cst_33 = arith.constant dense<0.000000e+00> : vector<16x64xf32>
    %114 = tpu.matmul %113, %18, %cst_33 {dimension_numbers = #tpu.dot_dimension_numbers<[1], [0], [0], [1], [0, 0, 1, 1], [], []>, precision = #tpu.contract_precision<fp32>} : vector<16x96xf32>, vector<96x64xf32>, vector<16x64xf32> -> vector<16x64xf32>
    %115 = vector.broadcast %24 : vector<1x64xf32> to vector<16x64xf32>
    %116 = arith.addf %114, %115 : vector<16x64xf32>
    %cst_34 = arith.constant 0.000000e+00 : f32
    %117 = vector.broadcast %cst_34 : f32 to vector<16x64xf32>
    %118 = arith.maximumf %116, %117 : vector<16x64xf32>
    %cst_35 = arith.constant dense<0.000000e+00> : vector<16x64xf32>
    %119 = tpu.matmul %7, %118, %cst_35 {dimension_numbers = #tpu.dot_dimension_numbers<[1], [0], [0], [1], [0, 0, 1, 1], [], []>, precision = #tpu.contract_precision<fp32>} : vector<16x16xf32>, vector<16x64xf32>, vector<16x64xf32> -> vector<16x64xf32>
    %cst_36 = arith.constant dense<0.000000e+00> : vector<16x64xf32>
    %120 = tpu.matmul %8, %118, %cst_36 {dimension_numbers = #tpu.dot_dimension_numbers<[1], [0], [0], [1], [0, 0, 1, 1], [], []>, precision = #tpu.contract_precision<fp32>} : vector<16x16xf32>, vector<16x64xf32>, vector<16x64xf32> -> vector<16x64xf32>
    %121 = tpu.concatenate %119, %118, %120 in 1 : vector<16x64xf32>, vector<16x64xf32>, vector<16x64xf32> -> vector<16x192xf32>
    %cst_37 = arith.constant dense<0.000000e+00> : vector<16x32xf32>
    %122 = tpu.matmul %121, %19, %cst_37 {dimension_numbers = #tpu.dot_dimension_numbers<[1], [0], [0], [1], [0, 0, 1, 1], [], []>, precision = #tpu.contract_precision<fp32>} : vector<16x192xf32>, vector<192x32xf32>, vector<16x32xf32> -> vector<16x32xf32>
    %123 = arith.addf %88, %122 : vector<16x32xf32>
    %124 = vector.broadcast %25 : vector<1x32xf32> to vector<16x32xf32>
    %125 = arith.addf %123, %124 : vector<16x32xf32>
    %c1 = arith.constant 1 : index
    %c0_38 = arith.constant 0 : index
    %c0_39 = arith.constant 0 : index
    %126 = vector.load %arg2[%c1, %c0_38, %c0_39] : memref<2x32x128xf32, #tpu.memory_space<vmem>>, vector<1x32x128xf32>
    %127 = vector.shape_cast %126 : vector<1x32x128xf32> to vector<32x128xf32>
    %128 = vector.extract_strided_slice %127 {offsets = [0, 0], sizes = [32, 96], strides = [1, 1]} : vector<32x128xf32> to vector<32x96xf32>
    %129 = vector.extract_strided_slice %127 {offsets = [0, 96], sizes = [32, 32], strides = [1, 1]} : vector<32x128xf32> to vector<32x32xf32>
    %c1_40 = arith.constant 1 : index
    %c0_41 = arith.constant 0 : index
    %c0_42 = arith.constant 0 : index
    %130 = vector.load %arg3[%c1_40, %c0_41, %c0_42] : memref<2x192x128xf32, #tpu.memory_space<vmem>>, vector<1x192x128xf32>
    %131 = vector.shape_cast %130 : vector<1x192x128xf32> to vector<192x128xf32>
    %132 = vector.extract_strided_slice %131 {offsets = [0, 0], sizes = [96, 64], strides = [1, 1]} : vector<192x128xf32> to vector<96x64xf32>
    %133 = vector.extract_strided_slice %131 {offsets = [0, 64], sizes = [192, 32], strides = [1, 1]} : vector<192x128xf32> to vector<192x32xf32>
    %134 = vector.extract_strided_slice %9 {offsets = [1, 0], sizes = [1, 32], strides = [1, 1]} : vector<8x128xf32> to vector<1x32xf32>
    %135 = vector.extract_strided_slice %9 {offsets = [1, 32], sizes = [1, 32], strides = [1, 1]} : vector<8x128xf32> to vector<1x32xf32>
    %136 = vector.extract_strided_slice %9 {offsets = [1, 64], sizes = [1, 32], strides = [1, 1]} : vector<8x128xf32> to vector<1x32xf32>
    %137 = vector.extract_strided_slice %9 {offsets = [1, 96], sizes = [1, 32], strides = [1, 1]} : vector<8x128xf32> to vector<1x32xf32>
    %138 = vector.extract_strided_slice %9 {offsets = [3, 0], sizes = [1, 64], strides = [1, 1]} : vector<8x128xf32> to vector<1x64xf32>
    %139 = vector.extract_strided_slice %9 {offsets = [3, 64], sizes = [1, 32], strides = [1, 1]} : vector<8x128xf32> to vector<1x32xf32>
    %cst_43 = arith.constant dense<0.000000e+00> : vector<16xf32>
    %140 = vector.multi_reduction <add>, %125, %cst_43 [1] : vector<16x32xf32> to vector<16xf32>
    %141 = vector.shape_cast %140 : vector<16xf32> to vector<16x1xf32>
    %cst_44 = arith.constant 3.200000e+01 : f32
    %142 = vector.broadcast %cst_44 : f32 to vector<16x1xf32>
    %143 = arith.divf %141, %142 : vector<16x1xf32>
    %144 = vector.broadcast %143 : vector<16x1xf32> to vector<16x32xf32>
    %145 = arith.subf %125, %144 : vector<16x32xf32>
    %146 = arith.mulf %145, %145 : vector<16x32xf32>
    %cst_45 = arith.constant dense<0.000000e+00> : vector<16xf32>
    %147 = vector.multi_reduction <add>, %146, %cst_45 [1] : vector<16x32xf32> to vector<16xf32>
    %148 = vector.shape_cast %147 : vector<16xf32> to vector<16x1xf32>
    %cst_46 = arith.constant 3.100000e+01 : f32
    %149 = vector.broadcast %cst_46 : f32 to vector<16x1xf32>
    %150 = arith.divf %148, %149 : vector<16x1xf32>
    %151 = vector.broadcast %143 : vector<16x1xf32> to vector<16x32xf32>
    %152 = arith.subf %125, %151 : vector<16x32xf32>
    %153 = vector.broadcast %134 : vector<1x32xf32> to vector<16x32xf32>
    %154 = arith.mulf %153, %152 : vector<16x32xf32>
    %155 = math.sqrt %150 : vector<16x1xf32>
    %cst_47 = arith.constant 9.99999997E-7 : f32
    %156 = vector.broadcast %cst_47 : f32 to vector<16x1xf32>
    %157 = arith.addf %155, %156 : vector<16x1xf32>
    %158 = vector.broadcast %157 : vector<16x1xf32> to vector<16x32xf32>
    %159 = arith.divf %154, %158 : vector<16x32xf32>
    %160 = vector.broadcast %135 : vector<1x32xf32> to vector<16x32xf32>
    %161 = arith.addf %159, %160 : vector<16x32xf32>
    %cst_48 = arith.constant dense<0.000000e+00> : vector<16x96xf32>
    %162 = tpu.matmul %161, %128, %cst_48 {dimension_numbers = #tpu.dot_dimension_numbers<[1], [0], [0], [1], [0, 0, 1, 1], [], []>, precision = #tpu.contract_precision<fp32>} : vector<16x32xf32>, vector<32x96xf32>, vector<16x96xf32> -> vector<16x96xf32>
    %163 = vector.extract_strided_slice %162 {offsets = [0, 0], sizes = [16, 32], strides = [1, 1]} : vector<16x96xf32> to vector<16x32xf32>
    %164 = vector.extract_strided_slice %162 {offsets = [0, 32], sizes = [16, 32], strides = [1, 1]} : vector<16x96xf32> to vector<16x32xf32>
    %165 = vector.extract_strided_slice %162 {offsets = [0, 64], sizes = [16, 32], strides = [1, 1]} : vector<16x96xf32> to vector<16x32xf32>
    %166 = tpu.concatenate %164, %164, %164, %164 in 0 : vector<16x32xf32>, vector<16x32xf32>, vector<16x32xf32>, vector<16x32xf32> -> vector<64x32xf32>
    %167 = arith.mulf %166, %5 : vector<64x32xf32>
    %168 = tpu.concatenate %165, %165, %165, %165 in 0 : vector<16x32xf32>, vector<16x32xf32>, vector<16x32xf32>, vector<16x32xf32> -> vector<64x32xf32>
    %169 = arith.mulf %168, %5 : vector<64x32xf32>
    %cst_49 = arith.constant dense<0.000000e+00> : vector<16x64xf32>
    %170 = tpu.matmul %163, %167, %cst_49 {dimension_numbers = #tpu.dot_dimension_numbers<[1], [1], [0], [0], [0, 0, 1, 0], [], []>, precision = #tpu.contract_precision<fp32>} : vector<16x32xf32>, vector<64x32xf32>, vector<16x64xf32> -> vector<16x64xf32>
    %cst_50 = arith.constant 0.353553385 : f32
    %171 = vector.broadcast %cst_50 : f32 to vector<16x64xf32>
    %172 = arith.mulf %170, %171 : vector<16x64xf32>
    %173 = arith.addf %172, %3 : vector<16x64xf32>
    %174 = vector.extract_strided_slice %173 {offsets = [0, 0], sizes = [16, 16], strides = [1, 1]} : vector<16x64xf32> to vector<16x16xf32>
    %cst_51 = arith.constant dense<0xFF800000> : vector<16xf32>
    %175 = vector.multi_reduction <maximumf>, %174, %cst_51 [1] : vector<16x16xf32> to vector<16xf32>
    %176 = vector.shape_cast %175 : vector<16xf32> to vector<16x1xf32>
    %177 = vector.shape_cast %176 : vector<16x1xf32> to vector<16x1xf32>
    %178 = vector.broadcast %177 : vector<16x1xf32> to vector<16x16xf32>
    %179 = vector.extract_strided_slice %173 {offsets = [0, 16], sizes = [16, 16], strides = [1, 1]} : vector<16x64xf32> to vector<16x16xf32>
    %cst_52 = arith.constant dense<0xFF800000> : vector<16xf32>
    %180 = vector.multi_reduction <maximumf>, %179, %cst_52 [1] : vector<16x16xf32> to vector<16xf32>
    %181 = vector.shape_cast %180 : vector<16xf32> to vector<16x1xf32>
    %182 = vector.shape_cast %181 : vector<16x1xf32> to vector<16x1xf32>
    %183 = vector.broadcast %182 : vector<16x1xf32> to vector<16x16xf32>
    %184 = vector.extract_strided_slice %173 {offsets = [0, 32], sizes = [16, 16], strides = [1, 1]} : vector<16x64xf32> to vector<16x16xf32>
    %cst_53 = arith.constant dense<0xFF800000> : vector<16xf32>
    %185 = vector.multi_reduction <maximumf>, %184, %cst_53 [1] : vector<16x16xf32> to vector<16xf32>
    %186 = vector.shape_cast %185 : vector<16xf32> to vector<16x1xf32>
    %187 = vector.shape_cast %186 : vector<16x1xf32> to vector<16x1xf32>
    %188 = vector.broadcast %187 : vector<16x1xf32> to vector<16x16xf32>
    %189 = vector.extract_strided_slice %173 {offsets = [0, 48], sizes = [16, 16], strides = [1, 1]} : vector<16x64xf32> to vector<16x16xf32>
    %cst_54 = arith.constant dense<0xFF800000> : vector<16xf32>
    %190 = vector.multi_reduction <maximumf>, %189, %cst_54 [1] : vector<16x16xf32> to vector<16xf32>
    %191 = vector.shape_cast %190 : vector<16xf32> to vector<16x1xf32>
    %192 = vector.shape_cast %191 : vector<16x1xf32> to vector<16x1xf32>
    %193 = vector.broadcast %192 : vector<16x1xf32> to vector<16x16xf32>
    %194 = tpu.concatenate %178, %183, %188, %193 in 1 : vector<16x16xf32>, vector<16x16xf32>, vector<16x16xf32>, vector<16x16xf32> -> vector<16x64xf32>
    %195 = arith.subf %173, %194 : vector<16x64xf32>
    %196 = math.exp %195 : vector<16x64xf32>
    %cst_55 = arith.constant dense<0.000000e+00> : vector<16x32xf32>
    %197 = tpu.matmul %196, %5, %cst_55 {dimension_numbers = #tpu.dot_dimension_numbers<[1], [0], [0], [1], [0, 0, 1, 1], [], []>, precision = #tpu.contract_precision<fp32>} : vector<16x64xf32>, vector<64x32xf32>, vector<16x32xf32> -> vector<16x32xf32>
    %cst_56 = arith.constant dense<0.000000e+00> : vector<16x32xf32>
    %198 = tpu.matmul %196, %169, %cst_56 {dimension_numbers = #tpu.dot_dimension_numbers<[1], [0], [0], [1], [0, 0, 1, 1], [], []>, precision = #tpu.contract_precision<fp32>} : vector<16x64xf32>, vector<64x32xf32>, vector<16x32xf32> -> vector<16x32xf32>
    %199 = tpu.reciprocal %197 : vector<16x32xf32> -> vector<16x32xf32>
    %200 = arith.mulf %198, %199 : vector<16x32xf32>
    %cst_57 = arith.constant dense<0.000000e+00> : vector<16x32xf32>
    %201 = tpu.matmul %200, %129, %cst_57 {dimension_numbers = #tpu.dot_dimension_numbers<[1], [0], [0], [1], [0, 0, 1, 1], [], []>, precision = #tpu.contract_precision<fp32>} : vector<16x32xf32>, vector<32x32xf32>, vector<16x32xf32> -> vector<16x32xf32>
    %202 = arith.addf %125, %201 : vector<16x32xf32>
    %cst_58 = arith.constant dense<0.000000e+00> : vector<16xf32>
    %203 = vector.multi_reduction <add>, %202, %cst_58 [1] : vector<16x32xf32> to vector<16xf32>
    %204 = vector.shape_cast %203 : vector<16xf32> to vector<16x1xf32>
    %cst_59 = arith.constant 3.200000e+01 : f32
    %205 = vector.broadcast %cst_59 : f32 to vector<16x1xf32>
    %206 = arith.divf %204, %205 : vector<16x1xf32>
    %207 = vector.broadcast %206 : vector<16x1xf32> to vector<16x32xf32>
    %208 = arith.subf %202, %207 : vector<16x32xf32>
    %209 = arith.mulf %208, %208 : vector<16x32xf32>
    %cst_60 = arith.constant dense<0.000000e+00> : vector<16xf32>
    %210 = vector.multi_reduction <add>, %209, %cst_60 [1] : vector<16x32xf32> to vector<16xf32>
    %211 = vector.shape_cast %210 : vector<16xf32> to vector<16x1xf32>
    %cst_61 = arith.constant 3.100000e+01 : f32
    %212 = vector.broadcast %cst_61 : f32 to vector<16x1xf32>
    %213 = arith.divf %211, %212 : vector<16x1xf32>
    %214 = vector.broadcast %206 : vector<16x1xf32> to vector<16x32xf32>
    %215 = arith.subf %202, %214 : vector<16x32xf32>
    %216 = vector.broadcast %136 : vector<1x32xf32> to vector<16x32xf32>
    %217 = arith.mulf %216, %215 : vector<16x32xf32>
    %218 = math.sqrt %213 : vector<16x1xf32>
    %cst_62 = arith.constant 9.99999997E-7 : f32
    %219 = vector.broadcast %cst_62 : f32 to vector<16x1xf32>
    %220 = arith.addf %218, %219 : vector<16x1xf32>
    %221 = vector.broadcast %220 : vector<16x1xf32> to vector<16x32xf32>
    %222 = arith.divf %217, %221 : vector<16x32xf32>
    %223 = vector.broadcast %137 : vector<1x32xf32> to vector<16x32xf32>
    %224 = arith.addf %222, %223 : vector<16x32xf32>
    %cst_63 = arith.constant dense<0.000000e+00> : vector<16x32xf32>
    %225 = tpu.matmul %7, %224, %cst_63 {dimension_numbers = #tpu.dot_dimension_numbers<[1], [0], [0], [1], [0, 0, 1, 1], [], []>, precision = #tpu.contract_precision<fp32>} : vector<16x16xf32>, vector<16x32xf32>, vector<16x32xf32> -> vector<16x32xf32>
    %cst_64 = arith.constant dense<0.000000e+00> : vector<16x32xf32>
    %226 = tpu.matmul %8, %224, %cst_64 {dimension_numbers = #tpu.dot_dimension_numbers<[1], [0], [0], [1], [0, 0, 1, 1], [], []>, precision = #tpu.contract_precision<fp32>} : vector<16x16xf32>, vector<16x32xf32>, vector<16x32xf32> -> vector<16x32xf32>
    %227 = tpu.concatenate %225, %224, %226 in 1 : vector<16x32xf32>, vector<16x32xf32>, vector<16x32xf32> -> vector<16x96xf32>
    %cst_65 = arith.constant dense<0.000000e+00> : vector<16x64xf32>
    %228 = tpu.matmul %227, %132, %cst_65 {dimension_numbers = #tpu.dot_dimension_numbers<[1], [0], [0], [1], [0, 0, 1, 1], [], []>, precision = #tpu.contract_precision<fp32>} : vector<16x96xf32>, vector<96x64xf32>, vector<16x64xf32> -> vector<16x64xf32>
    %229 = vector.broadcast %138 : vector<1x64xf32> to vector<16x64xf32>
    %230 = arith.addf %228, %229 : vector<16x64xf32>
    %cst_66 = arith.constant 0.000000e+00 : f32
    %231 = vector.broadcast %cst_66 : f32 to vector<16x64xf32>
    %232 = arith.maximumf %230, %231 : vector<16x64xf32>
    %cst_67 = arith.constant dense<0.000000e+00> : vector<16x64xf32>
    %233 = tpu.matmul %7, %232, %cst_67 {dimension_numbers = #tpu.dot_dimension_numbers<[1], [0], [0], [1], [0, 0, 1, 1], [], []>, precision = #tpu.contract_precision<fp32>} : vector<16x16xf32>, vector<16x64xf32>, vector<16x64xf32> -> vector<16x64xf32>
    %cst_68 = arith.constant dense<0.000000e+00> : vector<16x64xf32>
    %234 = tpu.matmul %8, %232, %cst_68 {dimension_numbers = #tpu.dot_dimension_numbers<[1], [0], [0], [1], [0, 0, 1, 1], [], []>, precision = #tpu.contract_precision<fp32>} : vector<16x16xf32>, vector<16x64xf32>, vector<16x64xf32> -> vector<16x64xf32>
    %235 = tpu.concatenate %233, %232, %234 in 1 : vector<16x64xf32>, vector<16x64xf32>, vector<16x64xf32> -> vector<16x192xf32>
    %cst_69 = arith.constant dense<0.000000e+00> : vector<16x32xf32>
    %236 = tpu.matmul %235, %133, %cst_69 {dimension_numbers = #tpu.dot_dimension_numbers<[1], [0], [0], [1], [0, 0, 1, 1], [], []>, precision = #tpu.contract_precision<fp32>} : vector<16x192xf32>, vector<192x32xf32>, vector<16x32xf32> -> vector<16x32xf32>
    %237 = arith.addf %202, %236 : vector<16x32xf32>
    %238 = vector.broadcast %139 : vector<1x32xf32> to vector<16x32xf32>
    %239 = arith.addf %237, %238 : vector<16x32xf32>
    %240 = vector.extract_strided_slice %9 {offsets = [4, 0], sizes = [1, 32], strides = [1, 1]} : vector<8x128xf32> to vector<1x32xf32>
    %241 = vector.extract_strided_slice %9 {offsets = [4, 32], sizes = [1, 32], strides = [1, 1]} : vector<8x128xf32> to vector<1x32xf32>
    %cst_70 = arith.constant dense<0.000000e+00> : vector<16xf32>
    %242 = vector.multi_reduction <add>, %239, %cst_70 [1] : vector<16x32xf32> to vector<16xf32>
    %243 = vector.shape_cast %242 : vector<16xf32> to vector<16x1xf32>
    %cst_71 = arith.constant 3.200000e+01 : f32
    %244 = vector.broadcast %cst_71 : f32 to vector<16x1xf32>
    %245 = arith.divf %243, %244 : vector<16x1xf32>
    %246 = vector.broadcast %245 : vector<16x1xf32> to vector<16x32xf32>
    %247 = arith.subf %239, %246 : vector<16x32xf32>
    %248 = arith.mulf %247, %247 : vector<16x32xf32>
    %cst_72 = arith.constant dense<0.000000e+00> : vector<16xf32>
    %249 = vector.multi_reduction <add>, %248, %cst_72 [1] : vector<16x32xf32> to vector<16xf32>
    %250 = vector.shape_cast %249 : vector<16xf32> to vector<16x1xf32>
    %cst_73 = arith.constant 3.100000e+01 : f32
    %251 = vector.broadcast %cst_73 : f32 to vector<16x1xf32>
    %252 = arith.divf %250, %251 : vector<16x1xf32>
    %253 = vector.broadcast %245 : vector<16x1xf32> to vector<16x32xf32>
    %254 = arith.subf %239, %253 : vector<16x32xf32>
    %255 = vector.broadcast %240 : vector<1x32xf32> to vector<16x32xf32>
    %256 = arith.mulf %255, %254 : vector<16x32xf32>
    %257 = math.sqrt %252 : vector<16x1xf32>
    %cst_74 = arith.constant 9.99999997E-7 : f32
    %258 = vector.broadcast %cst_74 : f32 to vector<16x1xf32>
    %259 = arith.addf %257, %258 : vector<16x1xf32>
    %260 = vector.broadcast %259 : vector<16x1xf32> to vector<16x32xf32>
    %261 = arith.divf %256, %260 : vector<16x32xf32>
    %262 = vector.broadcast %241 : vector<1x32xf32> to vector<16x32xf32>
    %263 = arith.addf %261, %262 : vector<16x32xf32>
    %cst_75 = arith.constant 0.000000e+00 : f32
    %264 = vector.broadcast %cst_75 : f32 to vector<16x96xf32>
    %265 = tpu.concatenate %263, %264 in 1 : vector<16x32xf32>, vector<16x96xf32> -> vector<16x128xf32>
    %c0_76 = arith.constant 0 : index
    %c0_77 = arith.constant 0 : index
    %266 = vector.load %arg5[%c0_76, %c0_77] : memref<16x128xf32, #tpu.memory_space<vmem>>, vector<16x128xf32>
    tpu.vector_store %arg5[%c0_76, %c0_77], %265 {strides = array<i32>} : memref<16x128xf32, #tpu.memory_space<vmem>>, vector<16x128xf32>,
    return
  }
}

</mosaic_0001>

<bundles_post_ra>
// kernel: tpu_custom_call.1
= control target key start
LH: loop header
LB: loop body
LE: loop exit
PB: predicated region body
PF: predicated region fallthrough
CT: control target
= control target key end

     0   :  { %10 = vsyncpa [#allocation3], 0  ;;  %s21907_s0 = inlined_call_operand.hbm [shape: f32[16,128], index: 0, kind: input, shape index: {}]   ;;  %s21908_s1 = inlined_call_operand.hbm [shape: f32[64,128], index: 1, kind: input, shape index: {}]   ;;  %s21909_s2 = inlined_call_operand.hbm [shape: f32[2,32,128], index: 2, kind: input, shape index: {}]   ;;  %s21910_s3 = inlined_call_operand.hbm [shape: f32[2,192,128], index: 3, kind: input, shape index: {}]   ;;  %s21911_s4 = inlined_call_operand.vmem [shape: f32[8,128], index: 4, kind: input, shape index: {}]   ;;  %s21912_s5 = inlined_call_operand.hbm [shape: f32[16,128], index: 5, kind: output, shape index: {}]  }
   0x1   :  { %11 = vsyncpa [#allocation6], 0 }
   0x2   :  { %12 = vsyncpa [#allocation9], 0 }
   0x3   :  { %13 = vsyncpa [#allocation4], 0  ;;  %s18936_s18 = smov [#allocation5]   ;;  %s18937_s20 = smov [#allocation2]  }
   0x4   :  { %s31_s19 = sshll.u32 %s18936_s18, 4  ;;  %s19_s21 = sshll.u32 %s18937_s20, 4  ;;  %s32_s19 = int_to_ptr.vmem [resolvable:$true] %s31_s19  ;;  %s18978_s21 = int_to_ptr.vmem [resolvable:$true] %s19_s21 }
   0x5   :  { %s18818_s24 = scalar_lea.hbm %s21908_s1, 1024 }
   0x6   :  { %p18819_p0 = scmp.ne.s32.totalorder %s21908_s1, %s18818_s24  ;;  %p18822_p1 = scmp.lt.u32.totalorder %s18818_s24, %s21908_s1 }
   0x8   :  { %p18824_p2 = pnand %p18822_p1, %p18819_p0 }
   0xa   :  { %18827 = shalt.err (!%p18824_p2)
}
   0xb   :  { %s18828_s29 = scalar_lea.vmem %s32_s19, 1024  ;;  %p18833_p4 = scmp.lt.s32.totalorder %s32_s19, %s32_s19 }
   0xc   :  { %p18829_p3 = scmp.ne.s32.totalorder %s32_s19, %s18828_s29  ;;  %p18834_p5 = scmp.lt.s32.totalorder %s18828_s29, %s18828_s29 }
   0xe   :  { %p18835_p6 = por %p18834_p5, %p18833_p4 }
  0x10   :  { %p18836_p7 = pnand %p18835_p6, %p18829_p3 }
  0x12   :  { %18839 = shalt.err (!%p18836_p7)
}
  0x13   :  { %s18938_s30 = smov 128   ;;  %s18939_s6 = smov 8  }
  0x14   :  { %37 = dma.hbm_to_vmem [thread:$0]  %s21908_s1, 1024, %s32_s19, [#allocation6], %s18938_s30, %s18938_s30, %s18939_s6  }
  0x15   :  { %s18840_s11 = scalar_lea.hbm %s21907_s0, 256 }
  0x16   :  { %p18841_p8 = scmp.ne.s32.totalorder %s21907_s0, %s18840_s11  ;;  %p18844_p9 = scmp.lt.u32.totalorder %s18840_s11, %s21907_s0 }
  0x18   :  { %p18846_p10 = pnand %p18844_p9, %p18841_p8 }
  0x1a   :  { %18849 = shalt.err (!%p18846_p10)
}
  0x1b   :  { %s18850_s16 = scalar_lea.vmem %s18978_s21, 256  ;;  %p18855_p12 = scmp.lt.s32.totalorder %s18978_s21, %s18978_s21 }
  0x1c   :  { %p18851_p11 = scmp.ne.s32.totalorder %s18978_s21, %s18850_s16  ;;  %p18856_p13 = scmp.lt.s32.totalorder %s18850_s16, %s18850_s16 }
  0x1e   :  { %p18857_p0 = por %p18856_p13, %p18855_p12 }
  0x20   :  { %p18858_p1 = pnand %p18857_p0, %p18851_p11 }
  0x22   :  { %18861 = shalt.err (!%p18858_p1)
}
  0x23   :  { %25 = dma.hbm_to_vmem [thread:$0]  %s21907_s0, 256, %s18978_s21, [#allocation3], %s18938_s30, %s18938_s30, %s18939_s6  }
  0x24   :  { %s18940_s18 = smov [#allocation7]   ;;  %s18941_s20 = smov [#allocation8]  }
  0x25   :  { %s43_s19 = sshll.u32 %s18940_s18, 4  ;;  %s55_s22 = sshll.u32 %s18941_s20, 4  ;;  %s44_s19 = int_to_ptr.vmem [resolvable:$true] %s43_s19  ;;  %s19015_s22 = int_to_ptr.vmem [resolvable:$true] %s55_s22 }
  0x26   :  { %s18862_s25 = scalar_lea.hbm %s21909_s2, 1024 }
  0x27   :  { %p18863_p2 = scmp.ne.s32.totalorder %s21909_s2, %s18862_s25  ;;  %p18866_p3 = scmp.lt.u32.totalorder %s18862_s25, %s21909_s2 }
  0x29   :  { %p18868_p4 = pnand %p18866_p3, %p18863_p2 }
  0x2b   :  { %18871 = shalt.err (!%p18868_p4)
}
  0x2c   :  { %s18872_s0 = scalar_lea.vmem %s44_s19, 1024  ;;  %p18877_p6 = scmp.lt.s32.totalorder %s44_s19, %s44_s19 }
  0x2d   :  { %p18873_p5 = scmp.ne.s32.totalorder %s44_s19, %s18872_s0  ;;  %p18878_p7 = scmp.lt.s32.totalorder %s18872_s0, %s18872_s0 }
  0x2f   :  { %p18879_p8 = por %p18878_p7, %p18877_p6 }
  0x31   :  { %p18880_p9 = pnand %p18879_p8, %p18873_p5 }
  0x33   :  { %18883 = shalt.err (!%p18880_p9)
}
  0x34   :  { %49 = dma.hbm_to_vmem [thread:$0]  %s21909_s2, 1024, %s44_s19, [#allocation6], %s18938_s30, %s18938_s30, %s18939_s6  }
  0x35   :  { %s18884_s10 = scalar_lea.hbm %s21910_s3, 6144 }
  0x36   :  { %p18885_p10 = scmp.ne.s32.totalorder %s21910_s3, %s18884_s10  ;;  %p18888_p11 = scmp.lt.u32.totalorder %s18884_s10, %s21910_s3 }
  0x38   :  { %p18890_p12 = pnand %p18888_p11, %p18885_p10 }
  0x3a   :  { %18893 = shalt.err (!%p18890_p12)
}
  0x3b   :  { %s18894_s15 = scalar_lea.vmem %s19015_s22, 6144  ;;  %p18899_p0 = scmp.lt.s32.totalorder %s19015_s22, %s19015_s22 }
  0x3c   :  { %p18895_p13 = scmp.ne.s32.totalorder %s19015_s22, %s18894_s15  ;;  %p18900_p1 = scmp.lt.s32.totalorder %s18894_s15, %s18894_s15 }
  0x3e   :  { %p18901_p2 = por %p18900_p1, %p18899_p0 }
  0x40   :  { %p18902_p3 = pnand %p18901_p2, %p18895_p13 }
  0x42   :  { %18905 = shalt.err (!%p18902_p3)
}
  0x43   :  { %61 = dma.hbm_to_vmem [thread:$0]  %s21910_s3, 6144, %s19015_s22, [#allocation9], %s18938_s30, %s18938_s30, %s18939_s6  }
  0x44   :  { %18928 = dma.done.wait [#allocation3], 256  }
  0x45   :  { %18929 = vsyncadd [#allocation3], 4294967040 }
  0x46   :  { %18930 = dma.done.wait [#allocation6], 2048  }
  0x47   :  { %18931 = vsyncadd [#allocation6], 4294965248 }
  0x48   :  { %18932 = dma.done.wait [#allocation9], 6144  }
  0x49   :  { %18933 = vsyncadd [#allocation9], 4294961152  ;;  %vm111_vm0 = vcmask 261120   ;;  %v19052_v0 = vld [vmem:[#allocation5 + $0x10] sm:$0xff]  ;;  %v19054_v1 = vld [vmem:[#allocation5] sm:$0xff]  ;;  %s18942_s1 = smov 96   ;;  %v694_v58 = vlaneseq }
  0x4a   :  { %95 = vrot.lane.b32.xlu1 %v19052_v0, %s18942_s1  ;;  %91 = vrot.lane.b32.xlu0 %v19054_v1, %s18942_s1  ;;  %v19060_v2 = vld [vmem:[#allocation2] sm:$0xff]  ;;  %v19062_v3 = vld [vmem:[#allocation5 + $0x18] sm:$0xff]  ;;  %v19064_v4 = vld [vmem:[#allocation5 + $0x8] sm:$0xff]  ;;  %s18943_s18 = smov 32   ;;  %s18944_s19 = smov 64   ;;  %vm1971_vm5 = vcmask 261248  }
  0x4b   :  { %v112_v5 = vsel %vm111_vm0, %v19060_v2, 0  ;;  %v19078_v9 = vld [vmem:[#allocation2 + $0x8] sm:$0xff]  ;;  %v19105_v59 = vshrl.u32 %v694_v58, 7  ;;  %v86_v61 = vld [vmem:[%s21911_s4] sm:$0xff]  ;;  %vm1964_vm6 = vcmask 130048   ;;  %vm1978_vm7 = vcmask 392448  }
  0x4c   :  { %v19068_v6 = vand.u32 4294901760, %v112_v5  ;;  %v114_v12 = vsel %vm111_vm0, %v19078_v9, 0  ;;  %vm1985_vm8 = vcmask 523648   ;;  %vm1996_vm9 = vcmask 392192   ;;  %s18945_s20 = smov 48  }
  0x4d   :  { %v19087_v13 = vand.u32 4294901760, %v114_v12  ;;  %22057 = vst [vmem:[#allocation15_spill] sm:$0xff] %v19105_v59  ;;  %v696_v60 = vsub.s32 0, %v19105_v59  ;;  %vm2005_vm10 = vcmask 523264   ;;  %vm4858_vm15 = vcmask 785408  }
  0x4e   :  { %97 = vrot.lane.b32.xlu1 %v19062_v3, %s18942_s1  ;;  %93 = vrot.lane.b32.xlu0 %v19064_v4, %s18942_s1  ;;  %v19075_v7 = vsub.f32 %v112_v5, %v19068_v6 }
  0x4f   :  { %v196_v16 = vsub.f32 %v114_v12, %v19087_v13  ;;  %v19111_v62 = vrot.slane %v86_v61, %v696_v60 }
  0x50   :  { %v187_v8 = vand.u32 4294901760, %v19075_v7 }
  0x51   :  { %v197_v23 = vand.u32 4294901760, %v196_v16 }
  0x52   :  { %v188_v10 = vsub.f32 %v19075_v7, %v187_v8  ;;  %107 = vrot.lane.b32.xlu1 %v19078_v9, %s18942_s1  ;;  %105 = vrot.lane.b32.xlu0 %v19060_v2, %s18942_s1 }
  0x53   :  { %v198_v31 = vsub.f32 %v196_v16, %v197_v23 }
  0x54   :  { %v189_v11 = vand.u32 4294901760, %v188_v10 }
  0x55   :  { %v199_v39 = vand.u32 4294901760, %v198_v31 }
  0x56   :  { %15136 = vmatprep.mubr.f32.mxu0 %v189_v11 }
  0xbc   :  { %v96_v14 = vpop.permute.xlu1 %95  ;;  %v92_v15 = vpop.permute.xlu0 %91 }
  0xbd   :  { %v123_v17 = vand.u32 4294901760, %v96_v14  ;;  %v117_v18 = vand.u32 4294901760, %v92_v15 }
  0xbf   :  { %v221_v19 = vsub.f32 %v96_v14, %v123_v17  ;;  %v207_v20 = vsub.f32 %v92_v15, %v117_v18  ;;  %v19127_v15 = vld [vmem:[#allocation7] sm:$0xff] }
  0xc0   :  { %v98_v21 = vpop.permute.xlu1 %97  ;;  %v94_v22 = vpop.permute.xlu0 %93 }
  0xc1   :  { %v208_v24 = vand.u32 4294901760, %v207_v20  ;;  %v126_v25 = vand.u32 4294901760, %v98_v21  ;;  %v120_v26 = vand.u32 4294901760, %v94_v22  ;;  %v222_v27 = vand.u32 4294901760, %v221_v19 }
  0xc3   :  { %v228_v28 = vsub.f32 %v98_v21, %v126_v25  ;;  %v16802_v29 = vpack.c.bf16 %v120_v26, %v117_v18  ;;  %v214_v30 = vsub.f32 %v94_v22, %v120_v26  ;;  %v16806_v32 = vpack.c.bf16 %v126_v25, %v123_v17  ;;  %v19131_v17 = vld [vmem:[#allocation7 + $0x10] sm:$0xff] }
  0xc4   :  { %v209_v35 = vsub.f32 %v207_v20, %v208_v24  ;;  %v223_v37 = vsub.f32 %v221_v19, %v222_v27  ;;  %v108_v50 = vpop.permute.xlu1 %107  ;;  %v106_v51 = vpop.permute.xlu0 %105  ;;  %v733_v18 = vand.u32 4294901760, %v19127_v15  ;;  %v739_v21 = vand.u32 4294901760, %v19131_v17 }
  0xc5   :  { %v229_v33 = vand.u32 4294901760, %v228_v28  ;;  %v215_v34 = vand.u32 4294901760, %v214_v30  ;;  %16803 = vmatprep.subr.bf16.mxu0 %v16802_v29  ;;  %v16818_v46 = vpack.c.bf16 %v214_v30, %v207_v20  ;;  %v16822_v47 = vpack.c.bf16 %v228_v28, %v221_v19  ;;  %v19135_v20 = vld [vmem:[#allocation7 + $0x18] sm:$0xff] }
  0xc6   :  { %16805 = vmatpush3.bf16.msra.mxu0 %v16802_v29  ;;  %v210_v40 = vand.u32 4294901760, %v209_v35  ;;  %v224_v44 = vand.u32 4294901760, %v223_v37  ;;  %v742_v22 = vand.u32 4294901760, %v19135_v20  ;;  %v823_v25 = vsub.f32 %v19127_v15, %v733_v18 }
  0xc7   :  { %16807 = vmatprep.subr.bf16.mxu0 %v16806_v32  ;;  %v216_v36 = vsub.f32 %v214_v30, %v215_v34  ;;  %v230_v38 = vsub.f32 %v228_v28, %v229_v33  ;;  %v16834_v48 = vpack.c.bf16 %v215_v34, %v208_v24  ;;  %v16838_v49 = vpack.c.bf16 %v229_v33, %v222_v27 }
  0xc8   :  { %v19141_v24 = vpack.c.bf16 %v742_v22, %v739_v21  ;;  %v824_v27 = vand.u32 4294901760, %v823_v25  ;;  %v837_v31 = vsub.f32 %v19131_v17, %v739_v21 }
  0xc9   :  { %v217_v41 = vand.u32 4294901760, %v216_v36  ;;  %v231_v42 = vand.u32 4294901760, %v230_v38 }
  0xca   :  { %16809 = vmatpush3.bf16.msra.mxu0 %v16806_v32  ;;  %v838_v35 = vand.u32 4294901760, %v837_v31 }
  0xcb   :  { %v16810_v43 = vpack.c.bf16 %v217_v41, %v210_v40  ;;  %v16814_v45 = vpack.c.bf16 %v231_v42, %v224_v44 }
  0xcc   :  { %v839_v38 = vsub.f32 %v837_v31, %v838_v35 }
  0xcd   :  { %15137 = vmatmul.mubr.f32.vlgmr.msra.gmra.mrb[0].mxu0 %v199_v39  ;;  %16811 = vmatprep.subr.bf16.mxu0 %v16810_v43 }
  0xce   :  { %16813 = vmatpush3.bf16.msra.mxu0 %v16810_v43  ;;  %15147 = vmatprep.mubr.f32.mxu0 %v19068_v6  ;;  %v840_v40 = vand.u32 4294901760, %v839_v38 }
  0xcf   :  { %16815 = vmatprep.subr.bf16.mxu0 %v16814_v45 }
  0xd2   :  { %16817 = vmatpush3.bf16.msra.mxu0 %v16814_v45 }
  0xd3   :  { %16819 = vmatprep.subr.bf16.mxu0 %v16818_v46 }
  0xd5   :  { %15148 = vmatmul.mubr.f32.vlgmr.msra.gmra.mrb[0].mxu0 %v19087_v13 }
  0xd6   :  { %16821 = vmatpush3.bf16.msra.mxu0 %v16818_v46  ;;  %15158 = vmatprep.mubr.f32.mxu0 %v19075_v7 }
  0xd7   :  { %16823 = vmatprep.subr.bf16.mxu0 %v16822_v47 }
  0xda   :  { %16825 = vmatpush3.bf16.msra.mxu0 %v16822_v47  ;;  %v19172_v47 = vld [vmem:[#allocation5 + $0x28] sm:$0xff] }
  0xdb   :  { %16827 = vmatprep.subr.bf16.mxu0 %v16802_v29 }
  0xdd   :  { %15159 = vmatmul.mubr.f32.vlgmr.msra.gmra.mrb[0].mxu0 %v196_v16  ;;  %v19129_v16 = vld [vmem:[#allocation7 + $0x8] sm:$0xff] }
  0xde   :  { %16829 = vmatpush3.bf16.msra.mxu0 %v16802_v29  ;;  %15169 = vmatprep.mubr.f32.mxu0 %v187_v8  ;;  %v736_v19 = vand.u32 4294901760, %v19129_v16 }
  0xdf   :  { %16831 = vmatprep.subr.bf16.mxu0 %v16806_v32 }
  0xe0   :  { %v830_v26 = vsub.f32 %v19129_v16, %v736_v19 }
  0xe2   :  { %16833 = vmatpush3.bf16.msra.mxu0 %v16806_v32  ;;  %v831_v28 = vand.u32 4294901760, %v830_v26  ;;  %v19156_v43 = vpack.c.bf16 %v830_v26, %v823_v25 }
  0xe3   :  { %16835 = vmatprep.subr.bf16.mxu0 %v16834_v48 }
  0xe4   :  { %v832_v30 = vsub.f32 %v830_v26, %v831_v28  ;;  %v19160_v45 = vpack.c.bf16 %v831_v28, %v824_v27 }
  0xe5   :  { %15170 = vmatmul.mubr.f32.vlgmr.msra.gmra.mrb[0].mxu0 %v197_v23  ;;  %v19139_v23 = vpack.c.bf16 %v736_v19, %v733_v18 }
  0xe6   :  { %16837 = vmatpush3.bf16.msra.mxu0 %v16834_v48  ;;  %15180 = vmatprep.mubr.f32.mxu0 %v19068_v6  ;;  %v833_v34 = vand.u32 4294901760, %v832_v30  ;;  %v19174_v48 = vld [vmem:[#allocation5 + $0x20] sm:$0xff] }
  0xe7   :  { %16839 = vmatprep.subr.bf16.mxu0 %v16838_v49  ;;  %16851 = vmatprep.subr.bf16.mxu1 %v19139_v23 }
  0xe8   :  { %16853 = vmatpush3.bf16.msra.mxu1 %v19139_v23 }
  0xe9   :  { %16855 = vmatprep.subr.bf16.mxu1 %v19141_v24 }
  0xea   :  { %16841 = vmatpush3.bf16.msra.mxu0 %v16838_v49  ;;  %v19180_v49 = vld [vmem:[#allocation5 + $0x38] sm:$0xff] }
  0xeb   :  { %16843 = vmatprep.subr.bf16.mxu0 %v16802_v29 }
  0xec   :  { %16857 = vmatpush3.bf16.msra.mxu1 %v19141_v24 }
  0xed   :  { %15181 = vmatmul.mubr.f32.vlgmr.msra.gmra.mrb[0].mxu0 %v19087_v13 }
  0xee   :  { %16845 = vmatpush3.bf16.msra.mxu0 %v16802_v29  ;;  %15191 = vmatprep.mubr.f32.mxu0 %v19068_v6  ;;  %v825_v29 = vsub.f32 %v823_v25, %v824_v27 }
  0xef   :  { %16847 = vmatprep.subr.bf16.mxu0 %v16806_v32 }
  0xf0   :  { %v826_v33 = vand.u32 4294901760, %v825_v29 }
  0xf2   :  { %16849 = vmatpush3.bf16.msra.mxu0 %v16806_v32  ;;  %v844_v32 = vsub.f32 %v19135_v20, %v742_v22  ;;  %v19151_v37 = vpack.c.bf16 %v833_v34, %v826_v33 }
  0xf4   :  { %v845_v36 = vand.u32 4294901760, %v844_v32  ;;  %16859 = vmatprep.subr.bf16.mxu1 %v19151_v37  ;;  %v19158_v44 = vpack.c.bf16 %v844_v32, %v837_v31 }
  0xf5   :  { %15192 = vmatmul.mubr.f32.vlgmr.msra.gmra.mrb[0].mxu0 %v19087_v13 }
  0xf6   :  { %v846_v39 = vsub.f32 %v844_v32, %v845_v36  ;;  %v19162_v46 = vpack.c.bf16 %v845_v36, %v838_v35 }
  0xf8   :  { %v847_v41 = vand.u32 4294901760, %v846_v39 }
  0xfa   :  { %v19154_v42 = vpack.c.bf16 %v847_v41, %v840_v40  ;;  %v21919_v41 = vand.u32 4294901760, %v19064_v4 }
 0x1c8   :  { %v15193_v52 = vpop.f32.mrb[0].mxu0 }
 0x1c9   :  { %v19097_v53 = vadd.f32 %v15193_v52, %v108_v50  ;;  %v634_v54 = vpop.f32.mrb[1].mxu0  ;;  %v19182_v50 = vld [vmem:[#allocation5 + $0x30] sm:$0xff] }
 0x1ca   :  { %v19099_v55 = vadd.f32 %v634_v54, %v106_v51 }
 0x1cb   :  { %v675_v56 = vsel %vm111_vm0, %v19097_v53, 0.0 }
 0x1cc   :  { %676 = vadd.xlane.f32.xlu1 %v675_v56  ;;  %v672_v57 = vsel %vm111_vm0, %v19099_v55, 0.0 }
 0x1cd   :  { %673 = vadd.xlane.f32.xlu0 %v672_v57 }
 0x1dd   :  { %721 = vrot.lane.b32.xlu1 %v19111_v62, %s18942_s1 }
 0x1e1   :  { %1266 = vrot.lane.b32.xlu1 %v19064_v4, %s18943_s18 }
 0x1e5   :  { %1268 = vrot.lane.b32.xlu1 %v19052_v0, %s18943_s18 }
 0x1e9   :  { %1272 = vrot.lane.b32.xlu1 %v19174_v48, %s18943_s18 }
 0x1ed   :  { %1276 = vrot.lane.b32.xlu1 %v19182_v50, %s18943_s18 }
 0x259   :  { %v677_v63 = vpop.xlane.xlu1 %676 }
 0x25a   :  { %v680_v5 = vmul.f32 0.03125, %v677_v63  ;;  %v674_v6 = vpop.xlane.xlu0 %673 }
 0x25b   :  { %v679_v7 = vmul.f32 0.03125, %v674_v6 }
 0x25c   :  { %v19116_v8 = vsub.f32 %v19097_v53, %v680_v5 }
 0x25d   :  { %v19119_v10 = vsub.f32 %v19099_v55, %v679_v7  ;;  %v19190_v21 = vpop.permute.xlu1 %721 }
 0x25e   :  { %v684_v13 = vmul.f32 %v19116_v8, %v19116_v8  ;;  %22058 = vst [vmem:[#allocation16_spill] sm:$0xff] %v19190_v21  ;;  %v699_v25 = vmul.f32 %v19111_v62, %v19116_v8 }
 0x25f   :  { %v683_v11 = vmul.f32 %v19119_v10, %v19119_v10  ;;  %v698_v18 = vmul.f32 %v19111_v62, %v19119_v10 }
 0x260   :  { %v688_v14 = vsel %vm111_vm0, %v684_v13, 0.0 }
 0x261   :  { %v685_v12 = vsel %vm111_vm0, %v683_v11, 0.0 }
 0x262   :  { %686 = vadd.xlane.f32.xlu0 %v685_v12 }
 0x266   :  { %689 = vadd.xlane.f32.xlu0 %v688_v14 }
 0x27c   :  { %1264 = vrot.lane.b32.xlu0 %v19054_v1, %s18943_s18 }
 0x280   :  { %1270 = vrot.lane.b32.xlu0 %v19062_v3, %s18943_s18 }
 0x284   :  { %1274 = vrot.lane.b32.xlu0 %v19172_v47, %s18943_s18 }
 0x288   :  { %1278 = vrot.lane.b32.xlu0 %v19180_v49, %s18943_s18 }
 0x2ef   :  { %v687_v51 = vpop.xlane.xlu0 %686 }
 0x2f0   :  { %v692_v52 = vmul.f32 0.032258064, %v687_v51  ;;  %v21914_v51 = vand.u32 4294901760, %v19180_v49 }
 0x2f2   :  { %18758 = vrsqrt.f32 %v692_v52  ;;  %vm702_vm1 = vcmp.eq.f32.partialorder %v692_v52, inf  ;;  %v705_v60 = vand.u32 2147483648, %v692_v52  ;;  %vm704_vm2 = vcmp.eq.f32.partialorder %v692_v52, 0.0 }
 0x2f3   :  { %v690_v54 = vpop.xlane.xlu0 %689 }
 0x2f4   :  { %v693_v56 = vmul.f32 0.032258064, %v690_v54 }
 0x2f6   :  { %18760 = vrsqrt.f32 %v693_v56  ;;  %vm709_vm3 = vcmp.eq.f32.partialorder %v693_v56, inf  ;;  %v712_v11 = vand.u32 2147483648, %v693_v56  ;;  %vm711_vm4 = vcmp.eq.f32.partialorder %v693_v56, 0.0 }
 0x2fc   :  { %v18759_v57 = vpop.eup %18758 }
 0x2fd   :  { %v701_v58 = vmul.f32 %v18759_v57, %v692_v52  ;;  %v19259_v57 = vpop.permute.xlu1 %1266 }
 0x2fe   :  { %22064 = vst [vmem:[#allocation22_spill] sm:$0xff] %v19259_v57 }
 0x2ff   :  { %v703_v61 = vsel %vm702_vm1, %v692_v52, %v701_v58  ;;  %v21913_v52 = vand.u32 4294901760, %v19182_v50 }
 0x300   :  { %v18761_v63 = vpop.eup %18760  ;;  %v706_v5 = vsel %vm704_vm2, %v705_v60, %v703_v61 }
 0x301   :  { %v708_v6 = vmul.f32 %v18761_v63, %v693_v56  ;;  %v714_v7 = vadd.f32 1e-06, %v706_v5  ;;  %v19251_v54 = vpack.c.bf16 %v21914_v51, %v21913_v52  ;;  %v19263_v60 = vpop.permute.xlu1 %1268 }
 0x302   :  { %22066 = vst [vmem:[#allocation24_spill] sm:$0xff] %v19263_v60 }
 0x303   :  { %v710_v12 = vsel %vm709_vm3, %v693_v56, %v708_v6  ;;  %18762 = vrcp.f32 %v714_v7  ;;  %22062 = vst [vmem:[#allocation20_spill] sm:$0xff] %v19251_v54  ;;  %v19257_v56 = vpop.permute.xlu0 %1264 }
 0x304   :  { %v713_v13 = vsel %vm711_vm4, %v712_v11, %v710_v12  ;;  %22063 = vst [vmem:[#allocation21_spill] sm:$0xff] %v19257_v56 }
 0x305   :  { %v715_v14 = vadd.f32 1e-06, %v713_v13  ;;  %v19281_v13 = vpop.permute.xlu1 %1272 }
 0x306   :  { %22068 = vst [vmem:[#allocation26_spill] sm:$0xff] %v19281_v13 }
 0x307   :  { %18764 = vrcp.f32 %v715_v14  ;;  %v19261_v58 = vpop.permute.xlu0 %1270 }
 0x308   :  { %22065 = vst [vmem:[#allocation23_spill] sm:$0xff] %v19261_v58 }
 0x30b   :  { %v19278_v12 = vpop.permute.xlu0 %1274 }
 0x30c   :  { %22067 = vst [vmem:[#allocation25_spill] sm:$0xff] %v19278_v12 }
 0x30d   :  { %v18763_v19 = vpop.eup %18762 }
 0x30e   :  { %v717_v22 = vmul.f32 %v18763_v19, %v698_v18 }
 0x310   :  { %v724_v26 = vadd.f32 %v19190_v21, %v717_v22 }
 0x311   :  { %v18765_v27 = vpop.eup %18764 }
 0x312   :  { %v719_v28 = vmul.f32 %v18765_v27, %v699_v25  ;;  %v727_v29 = vsel %vm111_vm0, %v724_v26, 0  ;;  %v19298_v27 = vpop.permute.xlu0 %1278 }
 0x313   :  { %v801_v30 = vand.u32 4294901760, %v727_v29  ;;  %22069 = vst [vmem:[#allocation27_spill] sm:$0xff] %v19298_v27 }
 0x314   :  { %v725_v31 = vadd.f32 %v19190_v21, %v719_v28 }
 0x315   :  { %v802_v32 = vsub.f32 %v727_v29, %v801_v30  ;;  %v19302_v29 = vpop.permute.xlu1 %1276 }
 0x316   :  { %v730_v33 = vsel %vm111_vm0, %v725_v31, 0  ;;  %22070 = vst [vmem:[#allocation28_spill] sm:$0xff] %v19302_v29 }
 0x317   :  { %v803_v10 = vand.u32 4294901760, %v802_v32  ;;  %v811_v34 = vand.u32 4294901760, %v730_v33 }
 0x319   :  { %v804_v35 = vsub.f32 %v802_v32, %v803_v10  ;;  %v812_v36 = vsub.f32 %v730_v33, %v811_v34 }
 0x31b   :  { %v805_v38 = vand.u32 4294901760, %v804_v35  ;;  %v813_v39 = vand.u32 4294901760, %v812_v36 }
 0x31d   :  { %15202 = vmatprep.mubr.f32.mxu1 %v805_v38  ;;  %v814_v8 = vsub.f32 %v812_v36, %v813_v39 }
 0x31f   :  { %v815_v40 = vand.u32 4294901760, %v814_v8 }
 0x321   :  { %15203 = vmatmul.mubr.f32.vlgmr.msra.gmra.mrb[0].mxu1 %v815_v40 }
 0x322   :  { %16861 = vmatpush3.bf16.msra.mxu1 %v19151_v37  ;;  %15213 = vmatprep.mubr.f32.mxu1 %v801_v30  ;;  %v21920_v37 = vand.u32 4294901760, %v19054_v1 }
 0x323   :  { %16863 = vmatprep.subr.bf16.mxu1 %v19154_v42 }
 0x326   :  { %16865 = vmatpush3.bf16.msra.mxu1 %v19154_v42  ;;  %v21918_v42 = vand.u32 4294901760, %v19052_v0 }
 0x327   :  { %16867 = vmatprep.subr.bf16.mxu1 %v19156_v43 }
 0x329   :  { %15214 = vmatmul.mubr.f32.vlgmr.msra.gmra.mrb[0].mxu1 %v811_v34 }
 0x32a   :  { %16869 = vmatpush3.bf16.msra.mxu1 %v19156_v43  ;;  %15224 = vmatprep.mubr.f32.mxu1 %v802_v32  ;;  %v21917_v43 = vand.u32 4294901760, %v19062_v3 }
 0x32b   :  { %16871 = vmatprep.subr.bf16.mxu1 %v19158_v44 }
 0x32e   :  { %16873 = vmatpush3.bf16.msra.mxu1 %v19158_v44  ;;  %v19223_v44 = vpack.c.bf16 %v21919_v41, %v21920_v37 }
 0x32f   :  { %16875 = vmatprep.subr.bf16.mxu1 %v19139_v23 }
 0x330   :  { %22059 = vst [vmem:[#allocation17_spill] sm:$0xff] %v19223_v44 }
 0x331   :  { %15225 = vmatmul.mubr.f32.vlgmr.msra.gmra.mrb[0].mxu1 %v812_v36 }
 0x332   :  { %16877 = vmatpush3.bf16.msra.mxu1 %v19139_v23  ;;  %15235 = vmatprep.mubr.f32.mxu1 %v803_v10 }
 0x333   :  { %16879 = vmatprep.subr.bf16.mxu1 %v19141_v24 }
 0x336   :  { %16881 = vmatpush3.bf16.msra.mxu1 %v19141_v24 }
 0x337   :  { %16883 = vmatprep.subr.bf16.mxu1 %v19160_v45 }
 0x339   :  { %15236 = vmatmul.mubr.f32.vlgmr.msra.gmra.mrb[0].mxu1 %v813_v39 }
 0x33a   :  { %16885 = vmatpush3.bf16.msra.mxu1 %v19160_v45  ;;  %15246 = vmatprep.mubr.f32.mxu1 %v801_v30  ;;  %v21916_v45 = vand.u32 4294901760, %v19172_v47 }
 0x33b   :  { %16887 = vmatprep.subr.bf16.mxu1 %v19162_v46 }
 0x33e   :  { %16889 = vmatpush3.bf16.msra.mxu1 %v19162_v46  ;;  %v21915_v46 = vand.u32 4294901760, %v19174_v48 }
 0x33f   :  { %16891 = vmatprep.subr.bf16.mxu1 %v19139_v23 }
 0x341   :  { %15247 = vmatmul.mubr.f32.vlgmr.msra.gmra.mrb[0].mxu1 %v811_v34 }
 0x342   :  { %16893 = vmatpush3.bf16.msra.mxu1 %v19139_v23  ;;  %15257 = vmatprep.mubr.f32.mxu1 %v801_v30  ;;  %v19231_v23 = vpack.c.bf16 %v21917_v43, %v21918_v42 }
 0x343   :  { %16895 = vmatprep.subr.bf16.mxu1 %v19141_v24 }
 0x344   :  { %22060 = vst [vmem:[#allocation18_spill] sm:$0xff] %v19231_v23 }
 0x346   :  { %16897 = vmatpush3.bf16.msra.mxu1 %v19141_v24  ;;  %v19241_v24 = vpack.c.bf16 %v21916_v45, %v21915_v46 }
 0x347   :  { %16995 = vmatprep.subr.bf16.mxu1 %v19223_v44 }
 0x348   :  { %22061 = vst [vmem:[#allocation19_spill] sm:$0xff] %v19241_v24 }
 0x349   :  { %15258 = vmatmul.mubr.f32.vlgmr.msra.gmra.mrb[0].mxu1 %v811_v34 }
 0x34a   :  { %16997 = vmatpush3.bf16.msra.mxu1 %v19223_v44 }
 0x34b   :  { %16999 = vmatprep.subr.bf16.mxu1 %v19231_v23 }
 0x34e   :  { %17001 = vmatpush3.bf16.msra.mxu1 %v19231_v23 }
 0x34f   :  { %17003 = vmatprep.subr.bf16.mxu1 %v19241_v24 }
 0x352   :  { %17005 = vmatpush3.bf16.msra.mxu1 %v19241_v24 }
 0x353   :  { %17007 = vmatprep.subr.bf16.mxu1 %v19251_v54 }
 0x356   :  { %17009 = vmatpush3.bf16.msra.mxu1 %v19251_v54 }
 0x41c   :  { %v19265_v61 = vpop.f32.mrb[0].mxu1 }
 0x41d   :  { %v19267_v63 = vpop.f32.mrb[1].mxu1  ;;  %v1289_v5 = vmul.f32 %v19265_v61, %v19259_v57  ;;  %v1291_v14 = vmul.f32 %v19265_v61, %v19261_v58  ;;  %v1293_v25 = vmul.f32 %v19265_v61, %v19278_v12  ;;  %v1295_v31 = vmul.f32 %v19265_v61, %v19298_v27 }
 0x41e   :  { %v1288_v6 = vmul.f32 %v19257_v56, %v19267_v63  ;;  %v1353_v7 = vsel %vm111_vm0, %v19267_v63, 0  ;;  %v1290_v19 = vmul.f32 %v19263_v60, %v19267_v63  ;;  %v1292_v28 = vmul.f32 %v19281_v13, %v19267_v63 }
 0x41f   :  { %1338 = vrot.lane.b32.xlu0 %v1289_v5, %s18942_s1  ;;  %v19276_v11 = vand.u32 4294901760, %v1353_v7  ;;  %v1294_v32 = vmul.f32 %v19302_v29, %v19267_v63 }
 0x420   :  { %1336 = vrot.lane.b32.xlu1 %v1288_v6, %s18942_s1 }
 0x421   :  { %v19286_v18 = vsub.f32 %v1353_v7, %v19276_v11 }
 0x423   :  { %1342 = vrot.lane.b32.xlu0 %v1291_v14, %s18942_s1  ;;  %v21921_v22 = vand.u32 4294901760, %v19286_v18 }
 0x424   :  { %1340 = vrot.lane.b32.xlu1 %v1290_v19, %s18942_s1 }
 0x425   :  { %v1450_v26 = vsub.f32 %v19286_v18, %v21921_v22  ;;  %v1356_v22 = vsel %vm111_vm0, %v19265_v61, 0 }
 0x427   :  { %1346 = vrot.lane.b32.xlu0 %v1293_v25, %s18942_s1  ;;  %v1451_v30 = vand.u32 4294901760, %v1450_v26 }
 0x428   :  { %1344 = vrot.lane.b32.xlu1 %v1292_v28, %s18942_s1 }
 0x429   :  { %15276 = vmatprep.mubr.f32.mxu0 %v1451_v30 }
 0x42b   :  { %1350 = vrot.lane.b32.xlu0 %v1295_v31, %s18942_s1 }
 0x42c   :  { %1348 = vrot.lane.b32.xlu1 %v1294_v32, %s18942_s1 }
 0x42f   :  { %1958 = vrot.lane.b32.xlu0 %v19078_v9, %s18944_s19 }
 0x430   :  { %1956 = vrot.lane.b32.xlu1 %v19060_v2, %s18944_s19 }
 0x491   :  { %v1339_v33 = vpop.permute.xlu0 %1338 }
 0x492   :  { %v1360_v10 = vsel %vm111_vm0, %v1339_v33, 0  ;;  %v1337_v34 = vpop.permute.xlu1 %1336 }
 0x493   :  { %v1378_v35 = vand.u32 4294901760, %v1360_v10  ;;  %v1358_v36 = vsel %vm111_vm0, %v1337_v34, 0 }
 0x494   :  { %v1375_v38 = vand.u32 4294901760, %v1358_v36 }
 0x495   :  { %v19314_v39 = vsub.f32 %v1360_v10, %v1378_v35  ;;  %v1343_v8 = vpop.permute.xlu0 %1342 }
 0x496   :  { %v19316_v40 = vpack.c.bf16 %v1378_v35, %v1375_v38  ;;  %v19318_v5 = vsub.f32 %v1358_v36, %v1375_v38  ;;  %v1364_v6 = vsel %vm111_vm0, %v1343_v8, 0  ;;  %v1341_v7 = vpop.permute.xlu1 %1340 }
 0x497   :  { %v1384_v14 = vand.u32 4294901760, %v1364_v6  ;;  %v1362_v19 = vsel %vm111_vm0, %v1341_v7, 0  ;;  %v1477_v26 = vand.u32 4294901760, %v19314_v39 }
 0x498   :  { %v1381_v25 = vand.u32 4294901760, %v1362_v19  ;;  %16899 = vmatprep.subr.bf16.mxu0 %v19316_v40  ;;  %v1470_v28 = vand.u32 4294901760, %v19318_v5 }
 0x499   :  { %v19325_v30 = vsub.f32 %v1364_v6, %v1384_v14  ;;  %16901 = vmatpush3.bf16.xpose.msra.mxu0 %v19316_v40  ;;  %v1347_v31 = vpop.permute.xlu0 %1346  ;;  %v1478_v29 = vsub.f32 %v19314_v39, %v1477_v26 }
 0x49a   :  { %v19328_v32 = vpack.c.bf16 %v1384_v14, %v1381_v25  ;;  %v19330_v33 = vsub.f32 %v1362_v19, %v1381_v25  ;;  %v1368_v10 = vsel %vm111_vm0, %v1347_v31, 0  ;;  %v1345_v34 = vpop.permute.xlu1 %1344  ;;  %v19339_v14 = vpack.c.bf16 %v1477_v26, %v1470_v28 }
 0x49b   :  { %v1390_v35 = vand.u32 4294901760, %v1368_v10  ;;  %v1366_v36 = vsel %vm111_vm0, %v1345_v34, 0  ;;  %v1491_v8 = vand.u32 4294901760, %v19325_v30  ;;  %v1479_v13 = vand.u32 4294901760, %v1478_v29 }
 0x49c   :  { %v1387_v38 = vand.u32 4294901760, %v1366_v36  ;;  %16903 = vmatprep.subr.bf16.mxu0 %v19328_v32  ;;  %v1484_v6 = vand.u32 4294901760, %v19330_v33 }
 0x49d   :  { %v19337_v7 = vsub.f32 %v1368_v10, %v1390_v35  ;;  %v1351_v52 = vpop.permute.xlu0 %1350  ;;  %v1492_v57 = vsub.f32 %v19325_v30, %v1491_v8 }
 0x49e   :  { %v19341_v19 = vsub.f32 %v1366_v36, %v1387_v38  ;;  %v1372_v25 = vsel %vm111_vm0, %v1351_v52, 0  ;;  %v1349_v31 = vpop.permute.xlu1 %1348  ;;  %v19346_v45 = vpack.c.bf16 %v1390_v35, %v1387_v38  ;;  %v19350_v41 = vpack.c.bf16 %v1491_v8, %v1484_v6 }
 0x49f   :  { %v1505_v51 = vand.u32 4294901760, %v19337_v7  ;;  %v1396_v34 = vand.u32 4294901760, %v1372_v25  ;;  %v1370_v46 = vsel %vm111_vm0, %v1349_v31, 0  ;;  %v19357_v35 = vand.u32 4294901760, %v1356_v22 }
 0x4a0   :  { %v1498_v43 = vand.u32 4294901760, %v19341_v19  ;;  %v1393_v42 = vand.u32 4294901760, %v1370_v46  ;;  %v1485_v56 = vsub.f32 %v19330_v33, %v1484_v6  ;;  %v1493_v26 = vand.u32 4294901760, %v1492_v57 }
 0x4a1   :  { %v1518_v10 = vsub.f32 %v1372_v25, %v1396_v34  ;;  %16905 = vmatpush3.bf16.xpose.msra.mxu0 %v19328_v32  ;;  %v1471_v25 = vsub.f32 %v19318_v5, %v1470_v28  ;;  %v19416_v9 = vpop.permute.xlu0 %1958 }
 0x4a2   :  { %v1511_v36 = vsub.f32 %v1370_v46, %v1393_v42  ;;  %16907 = vmatprep.subr.bf16.mxu0 %v19346_v45  ;;  %v19353_v52 = vpack.c.bf16 %v1505_v51, %v1498_v43  ;;  %v19361_v27 = vpack.c.bf16 %v1396_v34, %v1393_v42  ;;  %v1458_v46 = vsub.f32 %v1356_v22, %v19357_v35 }
 0x4a3   :  { %v1519_v37 = vand.u32 4294901760, %v1518_v10  ;;  %v1472_v12 = vand.u32 4294901760, %v1471_v25  ;;  %v1486_v28 = vand.u32 4294901760, %v1485_v56  ;;  %v1499_v21 = vsub.f32 %v19341_v19, %v1498_v43  ;;  %22072 = vst [vmem:[#allocation29_spill] sm:$0xff] %v19416_v9 }
 0x4a4   :  { %v1512_v31 = vand.u32 4294901760, %v1511_v36  ;;  %v1459_v58 = vand.u32 4294901760, %v1458_v46  ;;  %v1506_v22 = vsub.f32 %v19337_v7, %v1505_v51  ;;  %v16930_v43 = vpack.c.bf16 %v19314_v39, %v19318_v5 }
 0x4a5   :  { %v16914_v60 = vpack.c.bf16 %v1479_v13, %v1472_v12  ;;  %v16918_v59 = vpack.c.bf16 %v1493_v26, %v1486_v28  ;;  %v1500_v12 = vand.u32 4294901760, %v1499_v21  ;;  %v1520_v6 = vsub.f32 %v1518_v10, %v1519_v37 }
 0x4a6   :  { %v19359_v38 = vpack.c.bf16 %v1519_v37, %v1512_v31  ;;  %v1460_v42 = vsub.f32 %v1458_v46, %v1459_v58  ;;  %v1507_v13 = vand.u32 4294901760, %v1506_v22  ;;  %v1513_v8 = vsub.f32 %v1511_v36, %v1512_v31 }
 0x4a7   :  { %v1521_v57 = vand.u32 4294901760, %v1520_v6  ;;  %v16934_v21 = vpack.c.bf16 %v19325_v30, %v19330_v33  ;;  %v16942_v37 = vpack.c.bf16 %v1518_v10, %v1511_v36  ;;  %v22071_v51 = vand.u32 4294901760, %v19286_v18 }
 0x4a8   :  { %v1461_v34 = vand.u32 4294901760, %v1460_v42  ;;  %v16922_v29 = vpack.c.bf16 %v1507_v13, %v1500_v12  ;;  %v1514_v56 = vand.u32 4294901760, %v1513_v8  ;;  %v22075_v10 = vand.u32 4294901760, %v19064_v4 }
 0x4a9   :  { %16909 = vmatpush3.bf16.xpose.msra.mxu0 %v19346_v45  ;;  %v22079_v22 = vand.u32 4294901760, %v19174_v48 }
 0x4aa   :  { %16911 = vmatprep.subr.bf16.mxu0 %v19361_v27  ;;  %v16926_v25 = vpack.c.bf16 %v1521_v57, %v1514_v56  ;;  %v2114_v36 = vsub.f32 %v19064_v4, %v22075_v10  ;;  %v22081_v56 = vand.u32 4294901760, %v19180_v49 }
 0x4ac   :  { %v2115_v42 = vand.u32 4294901760, %v2114_v36  ;;  %v2156_v57 = vsub.f32 %v19180_v49, %v22081_v56 }
 0x4ae   :  { %v2116_v26 = vsub.f32 %v2114_v36, %v2115_v42 }
 0x4b0   :  { %v2117_v13 = vand.u32 4294901760, %v2116_v26 }
 0x4b1   :  { %16913 = vmatpush3.bf16.xpose.msra.mxu0 %v19361_v27 }
 0x4b2   :  { %16915 = vmatprep.subr.bf16.mxu0 %v16914_v60 }
 0x4b8   :  { %15277 = vmatmul.mubr.f32.vlgmr.msra.gmra.mrb[2].mxu0 %v1461_v34  ;;  %v22078_v34 = vand.u32 4294901760, %v19172_v47 }
 0x4b9   :  { %16917 = vmatpush3.bf16.xpose.msra.mxu0 %v16914_v60  ;;  %15295 = vmatprep.mubr.f32.mxu0 %v19276_v11 }
 0x4ba   :  { %16919 = vmatprep.subr.bf16.mxu0 %v16918_v59 }
 0x4c1   :  { %16921 = vmatpush3.bf16.xpose.msra.mxu0 %v16918_v59  ;;  %v16938_v59 = vpack.c.bf16 %v19337_v7, %v19341_v19 }
 0x4c2   :  { %16923 = vmatprep.subr.bf16.mxu0 %v16922_v29 }
 0x4c9   :  { %16925 = vmatpush3.bf16.xpose.msra.mxu0 %v16922_v29 }
 0x4ca   :  { %16927 = vmatprep.subr.bf16.mxu0 %v16926_v25 }
 0x4d1   :  { %16929 = vmatpush3.bf16.xpose.msra.mxu0 %v16926_v25  ;;  %v22082_v25 = vand.u32 4294901760, %v19182_v50 }
 0x4d2   :  { %16931 = vmatprep.subr.bf16.mxu0 %v16930_v43 }
 0x4d8   :  { %15296 = vmatmul.mubr.f32.vlgmr.msra.gmra.mrb[2].mxu0 %v19357_v35 }
 0x4d9   :  { %16933 = vmatpush3.bf16.xpose.msra.mxu0 %v16930_v43  ;;  %15314 = vmatprep.mubr.f32.mxu0 %v19286_v18 }
 0x4da   :  { %16935 = vmatprep.subr.bf16.mxu0 %v16934_v21 }
 0x4e1   :  { %16937 = vmatpush3.bf16.xpose.msra.mxu0 %v16934_v21 }
 0x4e2   :  { %16939 = vmatprep.subr.bf16.mxu0 %v16938_v59 }
 0x4e9   :  { %16941 = vmatpush3.bf16.xpose.msra.mxu0 %v16938_v59 }
 0x4ea   :  { %16943 = vmatprep.subr.bf16.mxu0 %v16942_v37 }
 0x4f1   :  { %16945 = vmatpush3.bf16.xpose.msra.mxu0 %v16942_v37 }
 0x4f2   :  { %16947 = vmatprep.subr.bf16.mxu0 %v19316_v40 }
 0x4f8   :  { %15315 = vmatmul.mubr.f32.vlgmr.msra.gmra.mrb[2].mxu0 %v1458_v46 }
 0x4f9   :  { %16949 = vmatpush3.bf16.xpose.msra.mxu0 %v19316_v40  ;;  %15333 = vmatprep.mubr.f32.mxu0 %v22071_v51 }
 0x4fa   :  { %16951 = vmatprep.subr.bf16.mxu0 %v19328_v32 }
 0x501   :  { %16953 = vmatpush3.bf16.xpose.msra.mxu0 %v19328_v32 }
 0x502   :  { %16955 = vmatprep.subr.bf16.mxu0 %v19346_v45 }
 0x509   :  { %16957 = vmatpush3.bf16.xpose.msra.mxu0 %v19346_v45 }
 0x50a   :  { %16959 = vmatprep.subr.bf16.mxu0 %v19361_v27 }
 0x511   :  { %16961 = vmatpush3.bf16.xpose.msra.mxu0 %v19361_v27 }
 0x512   :  { %16963 = vmatprep.subr.bf16.mxu0 %v19339_v14 }
 0x518   :  { %15334 = vmatmul.mubr.f32.vlgmr.msra.gmra.mrb[2].mxu0 %v1459_v58 }
 0x519   :  { %16965 = vmatpush3.bf16.xpose.msra.mxu0 %v19339_v14  ;;  %15352 = vmatprep.mubr.f32.mxu0 %v19276_v11  ;;  %v22074_v14 = vand.u32 4294901760, %v19054_v1 }
 0x51a   :  { %16967 = vmatprep.subr.bf16.mxu0 %v19350_v41 }
 0x51b   :  { %v2107_v19 = vsub.f32 %v19054_v1, %v22074_v14 }
 0x51d   :  { %v2108_v46 = vand.u32 4294901760, %v2107_v19 }
 0x51f   :  { %v2109_v28 = vsub.f32 %v2107_v19, %v2108_v46  ;;  %v19499_v10 = vpack.c.bf16 %v2115_v42, %v2108_v46 }
 0x521   :  { %16969 = vmatpush3.bf16.xpose.msra.mxu0 %v19350_v41  ;;  %v2110_v12 = vand.u32 4294901760, %v2109_v28  ;;  %22090 = vst [vmem:[#allocation39_spill] sm:$0xff] %v19499_v10 }
 0x522   :  { %16971 = vmatprep.subr.bf16.mxu0 %v19353_v52 }
 0x523   :  { %v19476_v8 = vpack.c.bf16 %v2117_v13, %v2110_v12 }
 0x525   :  { %22080 = vst [vmem:[#allocation31_spill] sm:$0xff] %v19476_v8  ;;  %17011 = vmatprep.subr.bf16.mxu1 %v19476_v8 }
 0x529   :  { %16973 = vmatpush3.bf16.xpose.msra.mxu0 %v19353_v52  ;;  %v22076_v52 = vand.u32 4294901760, %v19052_v0 }
 0x52a   :  { %16975 = vmatprep.subr.bf16.mxu0 %v19359_v38 }
 0x52b   :  { %v2121_v31 = vsub.f32 %v19052_v0, %v22076_v52 }
 0x52d   :  { %v2122_v29 = vand.u32 4294901760, %v2121_v31 }
 0x52f   :  { %v2123_v6 = vsub.f32 %v2121_v31, %v2122_v29 }
 0x531   :  { %16977 = vmatpush3.bf16.xpose.msra.mxu0 %v19359_v38  ;;  %v2124_v43 = vand.u32 4294901760, %v2123_v6 }
 0x532   :  { %16979 = vmatprep.subr.bf16.mxu0 %v19316_v40 }
 0x538   :  { %15353 = vmatmul.mubr.f32.vlgmr.msra.gmra.mrb[2].mxu0 %v19357_v35 }
 0x539   :  { %16981 = vmatpush3.bf16.xpose.msra.mxu0 %v19316_v40  ;;  %15371 = vmatprep.mubr.f32.mxu0 %v19276_v11  ;;  %v19418_v11 = vpop.permute.xlu1 %1956 }
 0x53a   :  { %16983 = vmatprep.subr.bf16.mxu0 %v19328_v32  ;;  %22073 = vst [vmem:[#allocation30_spill] sm:$0xff] %v19418_v11 }
 0x541   :  { %16985 = vmatpush3.bf16.xpose.msra.mxu0 %v19328_v32 }
 0x542   :  { %16987 = vmatprep.subr.bf16.mxu0 %v19346_v45 }
 0x549   :  { %16989 = vmatpush3.bf16.xpose.msra.mxu0 %v19346_v45 }
 0x54a   :  { %16991 = vmatprep.subr.bf16.mxu0 %v19361_v27 }
 0x551   :  { %16993 = vmatpush3.bf16.xpose.msra.mxu0 %v19361_v27 }
 0x558   :  { %15372 = vmatmul.mubr.f32.vlgmr.msra.gmra.mrb[2].mxu0 %v19357_v35  ;;  %v22077_v35 = vand.u32 4294901760, %v19062_v3 }
 0x55a   :  { %v2128_v38 = vsub.f32 %v19062_v3, %v22077_v35 }
 0x62b   :  { %v15373_v2 = vpop.f32.mrb[2].mxu0 }
 0x62c   :  { %v1955_v41 = vmul.f32 0.35355338, %v15373_v2  ;;  %v1944_v58 = vpop.f32.mrb[3].mxu0 }
 0x62d   :  { %v1954_v60 = vmul.f32 0.35355338, %v1944_v58 }
 0x62e   :  { %v19421_v18 = vadd.f32 %v19416_v9, %v1955_v41 }
 0x62f   :  { %v19424_v45 = vadd.f32 %v19418_v11, %v1954_v60  ;;  %v660_v11 = vld [vmem:[#allocation8 + $0x60] sm:$0xff] }
 0x630   :  { %v1975_v27 = vsel %vm1971_vm5, %v19421_v18, -inf  ;;  %v1968_v39 = vsel %vm1964_vm6, %v19421_v18, -inf  ;;  %v1982_v40 = vsel %vm1978_vm7, %v19421_v18, -inf  ;;  %v1989_v33 = vsel %vm1985_vm8, %v19421_v18, -inf }
 0x631   :  { %1976 = vmax.xlane.f32.xlu1 %v1975_v27  ;;  %1969 = vmax.xlane.f32.xlu0 %v1968_v39  ;;  %v1972_v5 = vsel %vm1971_vm5, %v19424_v45, -inf  ;;  %v1965_v30 = vsel %vm1964_vm6, %v19424_v45, -inf  ;;  %v1979_v32 = vsel %vm1978_vm7, %v19424_v45, -inf  ;;  %v1986_v7 = vsel %vm1985_vm8, %v19424_v45, -inf }
 0x632   :  { %v2157_v27 = vand.u32 4294901760, %v2156_v57 }
 0x635   :  { %1983 = vmax.xlane.f32.xlu1 %v1982_v40  ;;  %1973 = vmax.xlane.f32.xlu0 %v1972_v5  ;;  %v2158_v40 = vsub.f32 %v2156_v57, %v2157_v27 }
 0x639   :  { %1966 = vmax.xlane.f32.xlu1 %v1965_v30  ;;  %1980 = vmax.xlane.f32.xlu0 %v1979_v32  ;;  %v19491_v32 = vpack.c.bf16 %v2114_v36, %v2107_v19 }
 0x63b   :  { %22086 = vst [vmem:[#allocation35_spill] sm:$0xff] %v19491_v32 }
 0x63d   :  { %1990 = vmax.xlane.f32.xlu1 %v1989_v33  ;;  %1987 = vmax.xlane.f32.xlu0 %v1986_v7  ;;  %v19493_v33 = vpack.c.bf16 %v2128_v38, %v2121_v31 }
 0x63f   :  { %22087 = vst [vmem:[#allocation36_spill] sm:$0xff] %v19493_v33 }
 0x64e   :  { %1298 = vrot.lane.b32.xlu1 %v19064_v4, %s18944_s19  ;;  %v2135_v4 = vsub.f32 %v19174_v48, %v22079_v22 }
 0x650   :  { %v2136_v21 = vand.u32 4294901760, %v2135_v4 }
 0x652   :  { %1300 = vrot.lane.b32.xlu1 %v19052_v0, %s18944_s19  ;;  %v2129_v0 = vand.u32 4294901760, %v2128_v38  ;;  %v2137_v51 = vsub.f32 %v2135_v4, %v2136_v21 }
 0x653   :  { %1296 = vrot.lane.b32.xlu0 %v19054_v1, %s18944_s19  ;;  %v2142_v1 = vsub.f32 %v19172_v47, %v22078_v34 }
 0x654   :  { %v2138_v41 = vand.u32 4294901760, %v2137_v51  ;;  %v19501_v52 = vpack.c.bf16 %v2129_v0, %v2122_v29 }
 0x655   :  { %v2143_v59 = vand.u32 4294901760, %v2142_v1  ;;  %v19495_v7 = vpack.c.bf16 %v2142_v1, %v2135_v4 }
 0x656   :  { %1304 = vrot.lane.b32.xlu1 %v19174_v48, %s18944_s19  ;;  %22091 = vst [vmem:[#allocation40_spill] sm:$0xff] %v19501_v52 }
 0x657   :  { %1302 = vrot.lane.b32.xlu0 %v19062_v3, %s18944_s19  ;;  %v2130_v3 = vsub.f32 %v2128_v38, %v2129_v0  ;;  %v2144_v2 = vsub.f32 %v2142_v1, %v2143_v59  ;;  %22088 = vst [vmem:[#allocation37_spill] sm:$0xff] %v19495_v7  ;;  %v19503_v35 = vpack.c.bf16 %v2143_v59, %v2136_v21 }
 0x659   :  { %v2131_v48 = vand.u32 4294901760, %v2130_v3  ;;  %v2145_v58 = vand.u32 4294901760, %v2144_v2  ;;  %22092 = vst [vmem:[#allocation41_spill] sm:$0xff] %v19503_v35 }
 0x65a   :  { %1308 = vrot.lane.b32.xlu1 %v19182_v50, %s18944_s19 }
 0x65b   :  { %1306 = vrot.lane.b32.xlu0 %v19172_v47, %s18944_s19  ;;  %v2149_v47 = vsub.f32 %v19182_v50, %v22082_v25  ;;  %v19485_v37 = vpack.c.bf16 %v2131_v48, %v2124_v43  ;;  %v19487_v39 = vpack.c.bf16 %v2145_v58, %v2138_v41  ;;  %v2159_v50 = vand.u32 4294901760, %v2158_v40 }
 0x65d   :  { %22083 = vst [vmem:[#allocation32_spill] sm:$0xff] %v19485_v37  ;;  %v2150_v60 = vand.u32 4294901760, %v2149_v47  ;;  %22084 = vst [vmem:[#allocation33_spill] sm:$0xff] %v19487_v39  ;;  %v19497_v14 = vpack.c.bf16 %v2156_v57, %v2149_v47 }
 0x65f   :  { %1310 = vrot.lane.b32.xlu0 %v19180_v49, %s18944_s19  ;;  %v2151_v49 = vsub.f32 %v2149_v47, %v2150_v60  ;;  %22089 = vst [vmem:[#allocation38_spill] sm:$0xff] %v19497_v14  ;;  %v19505_v28 = vpack.c.bf16 %v2157_v27, %v2150_v60 }
 0x661   :  { %v2152_v5 = vand.u32 4294901760, %v2151_v49  ;;  %22093 = vst [vmem:[#allocation42_spill] sm:$0xff] %v19505_v28 }
 0x663   :  { %v19489_v30 = vpack.c.bf16 %v2159_v50, %v2152_v5 }
 0x665   :  { %22085 = vst [vmem:[#allocation34_spill] sm:$0xff] %v19489_v30 }
 0x6be   :  { %v1977_v26 = vpop.xlane.xlu1 %1976  ;;  %v1970_v34 = vpop.xlane.xlu0 %1969 }
 0x6bf   :  { %v1993_v38 = vsel %vm1964_vm6, %v1970_v34, %v1977_v26 }
 0x6c2   :  { %v1984_v22 = vpop.xlane.xlu1 %1983  ;;  %v1974_v12 = vpop.xlane.xlu0 %1973 }
 0x6c3   :  { %v1995_v46 = vsel %vm111_vm0, %v1993_v38, %v1984_v22 }
 0x6c6   :  { %v1967_v19 = vpop.xlane.xlu1 %1966  ;;  %v1981_v36 = vpop.xlane.xlu0 %1980 }
 0x6c7   :  { %v1992_v31 = vsel %vm1964_vm6, %v1967_v19, %v1974_v12 }
 0x6c8   :  { %v1994_v42 = vsel %vm111_vm0, %v1992_v31, %v1981_v36 }
 0x6ca   :  { %v1991_v1 = vpop.xlane.xlu1 %1990  ;;  %v1988_v4 = vpop.xlane.xlu0 %1987 }
 0x6cb   :  { %v1998_v13 = vsel %vm1996_vm9, %v1995_v46, %v1991_v1  ;;  %v1997_v29 = vsel %vm1996_vm9, %v1994_v42, %v1988_v4 }
 0x6cc   :  { %v2000_v0 = vsub.f32 %v19421_v18, %v1998_v13  ;;  %v1999_v6 = vsub.f32 %v19424_v45, %v1997_v29 }
 0x6ce   :  { %v2003_v3 = vmul.f32 1.442695, %v2000_v0  ;;  %v2001_v56 = vmul.f32 1.442695, %v1999_v6  ;;  %v19515_v57 = vpop.permute.xlu1 %1298  ;;  %v19517_v25 = vpop.permute.xlu0 %1296 }
 0x6cf   :  { %22094 = vst [vmem:[#allocation43_spill] sm:$0xff] %v19515_v57  ;;  %22095 = vst [vmem:[#allocation44_spill] sm:$0xff] %v19517_v25  ;;  %v1321_v47 = vmul.f32 %v19265_v61, %v19515_v57  ;;  %v1320_v43 = vmul.f32 %v19517_v25, %v19267_v63 }
 0x6d0   :  { %18766 = vpow2.f32 %v2003_v3 }
 0x6d1   :  { %18768 = vpow2.f32 %v2001_v56  ;;  %2602 = vrot.lane.b32.xlu0 %v1321_v47, %s18944_s19  ;;  %2600 = vrot.lane.b32.xlu1 %v1320_v43, %s18944_s19 }
 0x6d2   :  { %v19525_v18 = vpop.permute.xlu1 %1300  ;;  %v19527_v45 = vpop.permute.xlu0 %1302 }
 0x6d3   :  { %22096 = vst [vmem:[#allocation45_spill] sm:$0xff] %v19525_v18  ;;  %22097 = vst [vmem:[#allocation46_spill] sm:$0xff] %v19527_v45  ;;  %v1322_v48 = vmul.f32 %v19525_v18, %v19267_v63  ;;  %v1323_v21 = vmul.f32 %v19265_v61, %v19527_v45 }
 0x6d5   :  { %2604 = vrot.lane.b32.xlu1 %v1322_v48, %s18944_s19  ;;  %2606 = vrot.lane.b32.xlu0 %v1323_v21, %s18944_s19 }
 0x6d6   :  { %v19535_v59 = vpop.permute.xlu1 %1304  ;;  %v19537_v51 = vpop.permute.xlu0 %1306 }
 0x6d7   :  { %22098 = vst [vmem:[#allocation47_spill] sm:$0xff] %v19535_v59  ;;  %22099 = vst [vmem:[#allocation48_spill] sm:$0xff] %v19537_v51  ;;  %v1324_v2 = vmul.f32 %v19535_v59, %v19267_v63  ;;  %v1325_v41 = vmul.f32 %v19265_v61, %v19537_v51 }
 0x6d9   :  { %2608 = vrot.lane.b32.xlu1 %v1324_v2, %s18944_s19  ;;  %2610 = vrot.lane.b32.xlu0 %v1325_v41, %s18944_s19 }
 0x6da   :  { %v18767_v58 = vpop.eup %18766  ;;  %v19545_v60 = vpop.permute.xlu1 %1308 }
 0x6db   :  { %22100 = vst [vmem:[#allocation49_spill] sm:$0xff] %v19545_v60  ;;  %v19547_v27 = vpop.permute.xlu0 %1310  ;;  %v18769_v49 = vpop.eup %18768  ;;  %v2010_v40 = vsel %vm2005_vm10, %v18767_v58, 0  ;;  %v1326_v5 = vmul.f32 %v19545_v60, %v19267_v63 }
 0x6dc   :  { %22101 = vst [vmem:[#allocation50_spill] sm:$0xff] %v19547_v27  ;;  %v1327_v50 = vmul.f32 %v19265_v61, %v19547_v27  ;;  %v19554_v26 = vand.u32 4294901760, %v2010_v40  ;;  %v2007_v34 = vsel %vm2005_vm10, %v18769_v49, 0 }
 0x6dd   :  { %2612 = vrot.lane.b32.xlu1 %v1326_v5, %s18944_s19  ;;  %v19559_v22 = vand.u32 4294901760, %v2007_v34 }
 0x6de   :  { %2614 = vrot.lane.b32.xlu0 %v1327_v50, %s18944_s19  ;;  %v19562_v12 = vsub.f32 %v2010_v40, %v19554_v26 }
 0x6df   :  { %v19565_v19 = vsub.f32 %v2007_v34, %v19559_v22 }
 0x6e0   :  { %v19568_v63 = vand.u32 4294901760, %v19562_v12 }
 0x6e1   :  { %v19571_v61 = vand.u32 4294901760, %v19565_v19  ;;  %3212 = vrot.lane.b32.xlu1 %v19127_v15, %s18943_s18 }
 0x6e2   :  { %3214 = vrot.lane.b32.xlu0 %v19129_v16, %s18943_s18  ;;  %v2098_v36 = vsub.f32 %v19562_v12, %v19568_v63 }
 0x6e3   :  { %v2088_v31 = vsub.f32 %v19565_v19, %v19571_v61 }
 0x6e4   :  { %v19581_v38 = vand.u32 4294901760, %v2098_v36 }
 0x6e5   :  { %v2089_v46 = vand.u32 4294901760, %v2088_v31  ;;  %3216 = vrot.lane.b32.xlu1 %v19131_v17, %s18943_s18 }
 0x6e6   :  { %3218 = vrot.lane.b32.xlu0 %v19135_v20, %s18943_s18 }
 0x6e7   :  { %15390 = vmatprep.mubr.f32.mxu1 %v2089_v46 }
 0x6e8   :  { %15391 = vmatmul.mubr.f32.vlgmr.msra.gmra.mrb[2].mxu1 %v19581_v38 }
 0x6e9   :  { %17013 = vmatpush3.bf16.msra.mxu1 %v19476_v8  ;;  %15409 = vmatprep.mubr.f32.mxu1 %v19559_v22 }
 0x6ea   :  { %17015 = vmatprep.subr.bf16.mxu1 %v19485_v37 }
 0x6ed   :  { %17017 = vmatpush3.bf16.msra.mxu1 %v19485_v37 }
 0x6ee   :  { %17019 = vmatprep.subr.bf16.mxu1 %v19487_v39 }
 0x6f1   :  { %17021 = vmatpush3.bf16.msra.mxu1 %v19487_v39 }
 0x6f2   :  { %17023 = vmatprep.subr.bf16.mxu1 %v19489_v30 }
 0x6f5   :  { %17025 = vmatpush3.bf16.msra.mxu1 %v19489_v30 }
 0x6f6   :  { %17027 = vmatprep.subr.bf16.mxu1 %v19491_v32 }
 0x6f8   :  { %15410 = vmatmul.mubr.f32.vlgmr.msra.gmra.mrb[2].mxu1 %v19554_v26 }
 0x6f9   :  { %17029 = vmatpush3.bf16.msra.mxu1 %v19491_v32  ;;  %15428 = vmatprep.mubr.f32.mxu1 %v19565_v19 }
 0x6fa   :  { %17031 = vmatprep.subr.bf16.mxu1 %v19493_v33 }
 0x6fd   :  { %17033 = vmatpush3.bf16.msra.mxu1 %v19493_v33 }
 0x6fe   :  { %17035 = vmatprep.subr.bf16.mxu1 %v19495_v7 }
 0x701   :  { %17037 = vmatpush3.bf16.msra.mxu1 %v19495_v7 }
 0x702   :  { %17039 = vmatprep.subr.bf16.mxu1 %v19497_v14 }
 0x705   :  { %17041 = vmatpush3.bf16.msra.mxu1 %v19497_v14 }
 0x706   :  { %17043 = vmatprep.subr.bf16.mxu1 %v19223_v44 }
 0x708   :  { %15429 = vmatmul.mubr.f32.vlgmr.msra.gmra.mrb[2].mxu1 %v19562_v12 }
 0x709   :  { %17045 = vmatpush3.bf16.msra.mxu1 %v19223_v44  ;;  %15447 = vmatprep.mubr.f32.mxu1 %v19571_v61 }
 0x70a   :  { %17047 = vmatprep.subr.bf16.mxu1 %v19231_v23 }
 0x70d   :  { %17049 = vmatpush3.bf16.msra.mxu1 %v19231_v23 }
 0x70e   :  { %17051 = vmatprep.subr.bf16.mxu1 %v19241_v24 }
 0x711   :  { %17053 = vmatpush3.bf16.msra.mxu1 %v19241_v24 }
 0x712   :  { %17055 = vmatprep.subr.bf16.mxu1 %v19251_v54 }
 0x715   :  { %17057 = vmatpush3.bf16.msra.mxu1 %v19251_v54 }
 0x716   :  { %17059 = vmatprep.subr.bf16.mxu1 %v19499_v10 }
 0x718   :  { %15448 = vmatmul.mubr.f32.vlgmr.msra.gmra.mrb[2].mxu1 %v19568_v63 }
 0x719   :  { %17061 = vmatpush3.bf16.msra.mxu1 %v19499_v10  ;;  %15466 = vmatprep.mubr.f32.mxu1 %v19559_v22  ;;  %v659_v10 = vld [vmem:[#allocation8 + $0x58] sm:$0xff] }
 0x71a   :  { %17063 = vmatprep.subr.bf16.mxu1 %v19501_v52  ;;  %v4899_v32 = vand.u32 4294901760, %v659_v10 }
 0x71d   :  { %17065 = vmatpush3.bf16.msra.mxu1 %v19501_v52  ;;  %v658_v52 = vld [vmem:[#allocation8 + $0x50] sm:$0xff] }
 0x71e   :  { %17067 = vmatprep.subr.bf16.mxu1 %v19503_v35  ;;  %v4896_v33 = vand.u32 4294901760, %v658_v52 }
 0x720   :  { %v19939_v37 = vpack.c.bf16 %v4899_v32, %v4896_v33 }
 0x721   :  { %17069 = vmatpush3.bf16.msra.mxu1 %v19503_v35 }
 0x722   :  { %17071 = vmatprep.subr.bf16.mxu1 %v19505_v28 }
 0x725   :  { %17073 = vmatpush3.bf16.msra.mxu1 %v19505_v28 }
 0x726   :  { %17075 = vmatprep.subr.bf16.mxu1 %v19223_v44 }
 0x728   :  { %15467 = vmatmul.mubr.f32.vlgmr.msra.gmra.mrb[2].mxu1 %v19554_v26 }
 0x729   :  { %17077 = vmatpush3.bf16.msra.mxu1 %v19223_v44  ;;  %15485 = vmatprep.mubr.f32.mxu1 %v19559_v22  ;;  %v665_v44 = vld [vmem:[#allocation8 + $0x88] sm:$0xff] }
 0x72a   :  { %17079 = vmatprep.subr.bf16.mxu1 %v19231_v23 }
 0x72d   :  { %17081 = vmatpush3.bf16.msra.mxu1 %v19231_v23 }
 0x72e   :  { %17083 = vmatprep.subr.bf16.mxu1 %v19241_v24 }
 0x731   :  { %17085 = vmatpush3.bf16.msra.mxu1 %v19241_v24  ;;  %v662_v24 = vld [vmem:[#allocation8 + $0x70] sm:$0xff] }
 0x732   :  { %17087 = vmatprep.subr.bf16.mxu1 %v19251_v54 }
 0x735   :  { %17089 = vmatpush3.bf16.msra.mxu1 %v19251_v54  ;;  %v663_v54 = vld [vmem:[#allocation8 + $0x78] sm:$0xff] }
 0x738   :  { %15486 = vmatmul.mubr.f32.vlgmr.msra.gmra.mrb[2].mxu1 %v19554_v26 }
 0x739   :  { %15504 = vmatprep.mubr.f32.mxu1 %v2089_v46 }
 0x743   :  { %v2601_v15 = vpop.permute.xlu1 %2600  ;;  %v2603_v16 = vpop.permute.xlu0 %2602 }
 0x744   :  { %v2625_v17 = vand.u32 4294901760, %v2601_v15  ;;  %v2628_v20 = vand.u32 4294901760, %v2603_v16 }
 0x746   :  { %v19637_v42 = vsub.f32 %v2601_v15, %v2625_v17  ;;  %v19639_v1 = vpack.c.bf16 %v2628_v20, %v2625_v17  ;;  %v19641_v4 = vsub.f32 %v2603_v16, %v2628_v20 }
 0x747   :  { %v2605_v13 = vpop.permute.xlu1 %2604  ;;  %v2607_v29 = vpop.permute.xlu0 %2606 }
 0x748   :  { %v21937_v0 = vand.u32 4294901760, %v19637_v42  ;;  %v21936_v6 = vand.u32 4294901760, %v19641_v4  ;;  %v2631_v3 = vand.u32 4294901760, %v2605_v13  ;;  %v2634_v56 = vand.u32 4294901760, %v2607_v29  ;;  %17091 = vmatprep.subr.bf16.mxu1 %v19639_v1 }
 0x749   :  { %17093 = vmatpush3.bf16.msra.mxu1 %v19639_v1 }
 0x74a   :  { %v19647_v47 = vsub.f32 %v2605_v13, %v2631_v3  ;;  %v19649_v43 = vpack.c.bf16 %v2634_v56, %v2631_v3  ;;  %v19651_v48 = vsub.f32 %v2607_v29, %v2634_v56  ;;  %v2721_v41 = vsub.f32 %v19637_v42, %v21937_v0 }
 0x74b   :  { %v2609_v21 = vpop.permute.xlu1 %2608  ;;  %v2611_v2 = vpop.permute.xlu0 %2610  ;;  %v2728_v58 = vsub.f32 %v19641_v4, %v21936_v6 }
 0x74c   :  { %v21934_v49 = vand.u32 4294901760, %v19647_v47  ;;  %v21935_v40 = vand.u32 4294901760, %v19651_v48  ;;  %v2637_v5 = vand.u32 4294901760, %v2609_v21  ;;  %v2640_v50 = vand.u32 4294901760, %v2611_v2  ;;  %17095 = vmatprep.subr.bf16.mxu1 %v19649_v43 }
 0x74d   :  { %17097 = vmatpush3.bf16.msra.mxu1 %v19649_v43  ;;  %v2722_v16 = vand.u32 4294901760, %v2721_v41  ;;  %v2729_v17 = vand.u32 4294901760, %v2728_v58 }
 0x74e   :  { %v19663_v34 = vsub.f32 %v2609_v21, %v2637_v5  ;;  %v19665_v36 = vpack.c.bf16 %v2640_v50, %v2637_v5  ;;  %v19667_v31 = vsub.f32 %v2611_v2, %v2640_v50  ;;  %v2735_v20 = vsub.f32 %v19647_v47, %v21934_v49 }
 0x74f   :  { %v2613_v46 = vpop.permute.xlu1 %2612  ;;  %v2742_v13 = vsub.f32 %v19651_v48, %v21935_v40  ;;  %v17106_v5 = vpack.c.bf16 %v2729_v17, %v2722_v16 }
 0x750   :  { %v2615_v15 = vpop.permute.xlu0 %2614  ;;  %v2748_v29 = vand.u32 4294901760, %v19663_v34  ;;  %v21938_v3 = vand.u32 4294901760, %v19667_v31  ;;  %v2643_v56 = vand.u32 4294901760, %v2613_v46  ;;  %17099 = vmatprep.subr.bf16.mxu1 %v19665_v36  ;;  %v2736_v50 = vand.u32 4294901760, %v2735_v20 }
 0x751   :  { %v2646_v21 = vand.u32 4294901760, %v2615_v15  ;;  %17101 = vmatpush3.bf16.msra.mxu1 %v19665_v36  ;;  %v2743_v49 = vand.u32 4294901760, %v2742_v13 }
 0x752   :  { %v19679_v2 = vsub.f32 %v2613_v46, %v2643_v56  ;;  %v2749_v0 = vsub.f32 %v19663_v34, %v2748_v29  ;;  %v2756_v46 = vsub.f32 %v19667_v31, %v21938_v3 }
 0x753   :  { %v19681_v41 = vpack.c.bf16 %v2646_v21, %v2643_v56  ;;  %v19683_v58 = vsub.f32 %v2615_v15, %v2646_v21  ;;  %v17110_v15 = vpack.c.bf16 %v2743_v49, %v2736_v50 }
 0x754   :  { %v2762_v40 = vand.u32 4294901760, %v19679_v2  ;;  %v2750_v16 = vand.u32 4294901760, %v2749_v0  ;;  %v2757_v17 = vand.u32 4294901760, %v2756_v46  ;;  %v17126_v0 = vpack.c.bf16 %v19651_v48, %v19647_v47 }
 0x755   :  { %v2769_v6 = vand.u32 4294901760, %v19683_v58  ;;  %17103 = vmatprep.subr.bf16.mxu1 %v19681_v41 }
 0x756   :  { %17105 = vmatpush3.bf16.msra.mxu1 %v19681_v41  ;;  %v2763_v20 = vsub.f32 %v19679_v2, %v2762_v40  ;;  %v17114_v56 = vpack.c.bf16 %v2757_v17, %v2750_v16  ;;  %v3215_v16 = vpop.permute.xlu0 %3214 }
 0x757   :  { %17107 = vmatprep.subr.bf16.mxu1 %v17106_v5  ;;  %v2770_v13 = vsub.f32 %v19683_v58, %v2769_v6 }
 0x758   :  { %v2764_v21 = vand.u32 4294901760, %v2763_v20 }
 0x759   :  { %15505 = vmatmul.mubr.f32.vlgmr.msra.gmra.mrb[4].mxu1 %v19581_v38  ;;  %v2771_v3 = vand.u32 4294901760, %v2770_v13  ;;  %v17122_v38 = vpack.c.bf16 %v19641_v4, %v19637_v42 }
 0x75a   :  { %17109 = vmatpush3.bf16.msra.mxu1 %v17106_v5  ;;  %15523 = vmatprep.mubr.f32.mxu1 %v19559_v22  ;;  %v17130_v5 = vpack.c.bf16 %v19667_v31, %v19663_v34  ;;  %v3820_v34 = vsel %vm1964_vm6, %v19517_v25, 0 }
 0x75b   :  { %17111 = vmatprep.subr.bf16.mxu1 %v17110_v15  ;;  %v17118_v49 = vpack.c.bf16 %v2771_v3, %v2764_v21  ;;  %v17134_v3 = vpack.c.bf16 %v19683_v58, %v19679_v2  ;;  %v22103_v58 = vand.u32 4294901760, %v19641_v4 }
 0x75e   :  { %17113 = vmatpush3.bf16.msra.mxu1 %v17110_v15  ;;  %v3213_v15 = vpop.permute.xlu1 %3212 }
 0x75f   :  { %17115 = vmatprep.subr.bf16.mxu1 %v17114_v56  ;;  %v3231_v17 = vand.u32 4294901760, %v3213_v15 }
 0x762   :  { %17117 = vmatpush3.bf16.msra.mxu1 %v17114_v56  ;;  %v3217_v13 = vpop.permute.xlu1 %3216  ;;  %v3219_v56 = vpop.permute.xlu0 %3218 }
 0x763   :  { %17119 = vmatprep.subr.bf16.mxu1 %v17118_v49  ;;  %v3240_v21 = vand.u32 4294901760, %v3219_v56 }
 0x766   :  { %17121 = vmatpush3.bf16.msra.mxu1 %v17118_v49 }
 0x767   :  { %17123 = vmatprep.subr.bf16.mxu1 %v17122_v38 }
 0x769   :  { %15524 = vmatmul.mubr.f32.vlgmr.msra.gmra.mrb[4].mxu1 %v19554_v26 }
 0x76a   :  { %17125 = vmatpush3.bf16.msra.mxu1 %v17122_v38  ;;  %15542 = vmatprep.mubr.f32.mxu1 %v19565_v19  ;;  %v22102_v19 = vand.u32 4294901760, %v19637_v42  ;;  %v22106_v42 = vand.u32 4294901760, %v19667_v31  ;;  %v19744_v31 = vand.u32 4294901760, %v3820_v34 }
 0x76b   :  { %17127 = vmatprep.subr.bf16.mxu1 %v17126_v0 }
 0x76c   :  { %v17154_v50 = vpack.c.bf16 %v22103_v58, %v22102_v19  ;;  %v17162_v4 = vpack.c.bf16 %v22106_v42, %v2748_v29  ;;  %22107 = vst [vmem:[#allocation51_spill] sm:$0xff] %v19744_v31 }
 0x76e   :  { %17129 = vmatpush3.bf16.msra.mxu1 %v17126_v0 }
 0x76f   :  { %17131 = vmatprep.subr.bf16.mxu1 %v17130_v5 }
 0x772   :  { %17133 = vmatpush3.bf16.msra.mxu1 %v17130_v5 }
 0x773   :  { %17135 = vmatprep.subr.bf16.mxu1 %v17134_v3 }
 0x776   :  { %17137 = vmatpush3.bf16.msra.mxu1 %v17134_v3 }
 0x777   :  { %17139 = vmatprep.subr.bf16.mxu1 %v19639_v1 }
 0x779   :  { %15543 = vmatmul.mubr.f32.vlgmr.msra.gmra.mrb[4].mxu1 %v19562_v12  ;;  %v22104_v12 = vand.u32 4294901760, %v19647_v47  ;;  %v17166_v47 = vpack.c.bf16 %v2769_v6, %v2762_v40  ;;  %v19751_v6 = vsub.f32 %v3820_v34, %v19744_v31 }
 0x77a   :  { %17141 = vmatpush3.bf16.msra.mxu1 %v19639_v1  ;;  %15561 = vmatprep.mubr.f32.mxu1 %v19571_v61  ;;  %v22105_v61 = vand.u32 4294901760, %v19651_v48 }
 0x77b   :  { %17143 = vmatprep.subr.bf16.mxu1 %v19649_v43  ;;  %22108 = vst [vmem:[#allocation52_spill] sm:$0xff] %v19751_v6  ;;  %v19756_v40 = vand.u32 4294901760, %v19751_v6 }
 0x77c   :  { %v17158_v46 = vpack.c.bf16 %v22105_v61, %v22104_v12 }
 0x77d   :  { %22109 = vst [vmem:[#allocation53_spill] sm:$0xff] %v19756_v40 }
 0x77e   :  { %17145 = vmatpush3.bf16.msra.mxu1 %v19649_v43 }
 0x77f   :  { %17147 = vmatprep.subr.bf16.mxu1 %v19665_v36 }
 0x782   :  { %17149 = vmatpush3.bf16.msra.mxu1 %v19665_v36 }
 0x783   :  { %17151 = vmatprep.subr.bf16.mxu1 %v19681_v41 }
 0x786   :  { %17153 = vmatpush3.bf16.msra.mxu1 %v19681_v41 }
 0x787   :  { %17155 = vmatprep.subr.bf16.mxu1 %v17154_v50 }
 0x789   :  { %15562 = vmatmul.mubr.f32.vlgmr.msra.gmra.mrb[4].mxu1 %v19568_v63  ;;  %v3234_v63 = vand.u32 4294901760, %v3215_v16 }
 0x78a   :  { %17157 = vmatpush3.bf16.msra.mxu1 %v17154_v50  ;;  %15580 = vmatprep.mubr.f32.mxu1 %v19559_v22 }
 0x78b   :  { %17159 = vmatprep.subr.bf16.mxu1 %v17158_v46  ;;  %v19737_v48 = vpack.c.bf16 %v3234_v63, %v3231_v17  ;;  %v3328_v29 = vsub.f32 %v3215_v16, %v3234_v63 }
 0x78d   :  { %17187 = vmatprep.subr.bf16.mxu0 %v19737_v48  ;;  %v3329_v20 = vand.u32 4294901760, %v3328_v29 }
 0x78e   :  { %17161 = vmatpush3.bf16.msra.mxu1 %v17158_v46  ;;  %17189 = vmatpush3.bf16.msra.mxu0 %v19737_v48 }
 0x78f   :  { %17163 = vmatprep.subr.bf16.mxu1 %v17162_v4  ;;  %v3330_v38 = vsub.f32 %v3328_v29, %v3329_v20 }
 0x791   :  { %v3331_v19 = vand.u32 4294901760, %v3330_v38 }
 0x792   :  { %17165 = vmatpush3.bf16.msra.mxu1 %v17162_v4 }
 0x793   :  { %17167 = vmatprep.subr.bf16.mxu1 %v17166_v47 }
 0x796   :  { %17169 = vmatpush3.bf16.msra.mxu1 %v17166_v47 }
 0x797   :  { %17171 = vmatprep.subr.bf16.mxu1 %v19639_v1 }
 0x799   :  { %15581 = vmatmul.mubr.f32.vlgmr.msra.gmra.mrb[4].mxu1 %v19554_v26 }
 0x79a   :  { %17173 = vmatpush3.bf16.msra.mxu1 %v19639_v1  ;;  %15599 = vmatprep.mubr.f32.mxu1 %v19559_v22  ;;  %v3894_v1 = vsub.f32 %v19751_v6, %v19756_v40 }
 0x79b   :  { %17175 = vmatprep.subr.bf16.mxu1 %v19649_v43 }
 0x79c   :  { %v19763_v22 = vand.u32 4294901760, %v3894_v1 }
 0x79e   :  { %17177 = vmatpush3.bf16.msra.mxu1 %v19649_v43  ;;  %22110 = vst [vmem:[#allocation54_spill] sm:$0xff] %v19763_v22  ;;  %v3321_v43 = vsub.f32 %v3213_v15, %v3231_v17 }
 0x79f   :  { %17179 = vmatprep.subr.bf16.mxu1 %v19665_v36 }
 0x7a0   :  { %v3322_v2 = vand.u32 4294901760, %v3321_v43 }
 0x7a2   :  { %17181 = vmatpush3.bf16.msra.mxu1 %v19665_v36  ;;  %v3237_v36 = vand.u32 4294901760, %v3217_v13  ;;  %v3323_v49 = vsub.f32 %v3321_v43, %v3322_v2  ;;  %v17218_v50 = vpack.c.bf16 %v3329_v20, %v3322_v2 }
 0x7a3   :  { %17183 = vmatprep.subr.bf16.mxu1 %v19681_v41 }
 0x7a4   :  { %v3335_v0 = vsub.f32 %v3217_v13, %v3237_v36  ;;  %v19767_v5 = vpack.c.bf16 %v3240_v21, %v3237_v36  ;;  %v3324_v3 = vand.u32 4294901760, %v3323_v49 }
 0x7a6   :  { %17185 = vmatpush3.bf16.msra.mxu1 %v19681_v41  ;;  %v3342_v41 = vsub.f32 %v3219_v56, %v3240_v21  ;;  %v3336_v58 = vand.u32 4294901760, %v3335_v0  ;;  %17191 = vmatprep.subr.bf16.mxu0 %v19767_v5  ;;  %v17194_v12 = vpack.c.bf16 %v3331_v19, %v3324_v3 }
 0x7a7   :  { %17193 = vmatpush3.bf16.msra.mxu0 %v19767_v5 }
 0x7a8   :  { %v3337_v61 = vsub.f32 %v3335_v0, %v3336_v58  ;;  %v17206_v42 = vpack.c.bf16 %v3342_v41, %v3335_v0  ;;  %17195 = vmatprep.subr.bf16.mxu0 %v17194_v12 }
 0x7a9   :  { %15600 = vmatmul.mubr.f32.vlgmr.msra.gmra.mrb[4].mxu1 %v19554_v26  ;;  %v3343_v26 = vand.u32 4294901760, %v3342_v41 }
 0x7aa   :  { %15672 = vmatprep.mubr.f32.mxu1 %v19763_v22  ;;  %v3338_v4 = vand.u32 4294901760, %v3337_v61 }
 0x7ab   :  { %v3344_v46 = vsub.f32 %v3342_v41, %v3343_v26  ;;  %v17222_v16 = vpack.c.bf16 %v3343_v26, %v3336_v58 }
 0x7ad   :  { %v3345_v15 = vand.u32 4294901760, %v3344_v46 }
 0x7af   :  { %v17198_v47 = vpack.c.bf16 %v3345_v15, %v3338_v4  ;;  %v17202_v4 = vpack.c.bf16 %v3328_v29, %v3321_v43 }
 0x80b   :  { %v15487_v17 = vpop.f32.mrb[2].mxu1 }
 0x80c   :  { %v2582_v63 = vpop.f32.mrb[3].mxu1  ;;  %18770 = vrcp.f32 %v15487_v17 }
 0x80d   :  { %18772 = vrcp.f32 %v2582_v63 }
 0x816   :  { %v18771_v34 = vpop.eup %18770 }
 0x817   :  { %v18773_v13 = vpop.eup %18772 }
 0x87c   :  { %v15601_v1 = vpop.f32.mrb[4].mxu1 }
 0x87d   :  { %v3207_v56 = vmul.f32 %v18771_v34, %v15601_v1  ;;  %v3194_v2 = vpop.f32.mrb[5].mxu1 }
 0x87e   :  { %v3206_v20 = vmul.f32 %v18773_v13, %v3194_v2 }
 0x87f   :  { %v3228_v36 = vsel %vm111_vm0, %v3207_v56, 0 }
 0x880   :  { %v3309_v21 = vand.u32 4294901760, %v3228_v36  ;;  %v3225_v49 = vsel %vm111_vm0, %v3206_v20, 0 }
 0x881   :  { %v3299_v38 = vand.u32 4294901760, %v3225_v49 }
 0x882   :  { %v3310_v0 = vsub.f32 %v3228_v36, %v3309_v21 }
 0x883   :  { %v3300_v41 = vsub.f32 %v3225_v49, %v3299_v38 }
 0x884   :  { %v3311_v3 = vand.u32 4294901760, %v3310_v0 }
 0x885   :  { %v3301_v19 = vand.u32 4294901760, %v3300_v41 }
 0x886   :  { %v3312_v58 = vsub.f32 %v3310_v0, %v3311_v3 }
 0x887   :  { %v3302_v26 = vsub.f32 %v3300_v41, %v3301_v19 }
 0x888   :  { %v3313_v46 = vand.u32 4294901760, %v3312_v58 }
 0x889   :  { %v3303_v61 = vand.u32 4294901760, %v3302_v26 }
 0x88b   :  { %15610 = vmatprep.mubr.f32.mxu0 %v3303_v61 }
 0x88c   :  { %15611 = vmatmul.mubr.f32.vlgmr.msra.gmra.mrb[4].mxu0 %v3313_v46 }
 0x88d   :  { %17197 = vmatpush3.bf16.msra.mxu0 %v17194_v12  ;;  %15621 = vmatprep.mubr.f32.mxu0 %v3299_v38 }
 0x88e   :  { %17199 = vmatprep.subr.bf16.mxu0 %v17198_v47 }
 0x891   :  { %17201 = vmatpush3.bf16.msra.mxu0 %v17198_v47 }
 0x892   :  { %17203 = vmatprep.subr.bf16.mxu0 %v17202_v4 }
 0x894   :  { %15622 = vmatmul.mubr.f32.vlgmr.msra.gmra.mrb[4].mxu0 %v3309_v21 }
 0x895   :  { %17205 = vmatpush3.bf16.msra.mxu0 %v17202_v4  ;;  %15632 = vmatprep.mubr.f32.mxu0 %v3300_v41 }
 0x896   :  { %17207 = vmatprep.subr.bf16.mxu0 %v17206_v42 }
 0x899   :  { %17209 = vmatpush3.bf16.msra.mxu0 %v17206_v42 }
 0x89a   :  { %17211 = vmatprep.subr.bf16.mxu0 %v19737_v48 }
 0x89c   :  { %15633 = vmatmul.mubr.f32.vlgmr.msra.gmra.mrb[4].mxu0 %v3310_v0 }
 0x89d   :  { %17213 = vmatpush3.bf16.msra.mxu0 %v19737_v48  ;;  %15643 = vmatprep.mubr.f32.mxu0 %v3301_v19 }
 0x89e   :  { %17215 = vmatprep.subr.bf16.mxu0 %v19767_v5 }
 0x8a1   :  { %17217 = vmatpush3.bf16.msra.mxu0 %v19767_v5 }
 0x8a2   :  { %17219 = vmatprep.subr.bf16.mxu0 %v17218_v50 }
 0x8a4   :  { %15644 = vmatmul.mubr.f32.vlgmr.msra.gmra.mrb[4].mxu0 %v3311_v3 }
 0x8a5   :  { %17221 = vmatpush3.bf16.msra.mxu0 %v17218_v50  ;;  %15654 = vmatprep.mubr.f32.mxu0 %v3299_v38 }
 0x8a6   :  { %17223 = vmatprep.subr.bf16.mxu0 %v17222_v16 }
 0x8a9   :  { %17225 = vmatpush3.bf16.msra.mxu0 %v17222_v16 }
 0x8aa   :  { %17227 = vmatprep.subr.bf16.mxu0 %v19737_v48 }
 0x8ac   :  { %15655 = vmatmul.mubr.f32.vlgmr.msra.gmra.mrb[4].mxu0 %v3309_v21 }
 0x8ad   :  { %17229 = vmatpush3.bf16.msra.mxu0 %v19737_v48  ;;  %15665 = vmatprep.mubr.f32.mxu0 %v3299_v38 }
 0x8ae   :  { %17231 = vmatprep.subr.bf16.mxu0 %v19767_v5 }
 0x8b1   :  { %17233 = vmatpush3.bf16.msra.mxu0 %v19767_v5 }
 0x8b4   :  { %15666 = vmatmul.mubr.f32.vlgmr.msra.gmra.mrb[4].mxu0 %v3309_v21 }
 0x987   :  { %v15667_v43 = vpop.f32.mrb[4].mxu0 }
 0x988   :  { %v19782_v29 = vadd.f32 %v19097_v53, %v15667_v43  ;;  %v3748_v12 = vpop.f32.mrb[5].mxu0 }
 0x989   :  { %v19785_v50 = vadd.f32 %v19099_v55, %v3748_v12 }
 0x98a   :  { %22111 = vst [vmem:[#allocation55_spill] sm:$0xff] %v19782_v29  ;;  %v3763_v42 = vsel %vm111_vm0, %v19782_v29, 0.0 }
 0x98b   :  { %3764 = vadd.xlane.f32.xlu0 %v3763_v42  ;;  %v3760_v48 = vsel %vm111_vm0, %v19785_v50, 0.0 }
 0x98c   :  { %3761 = vadd.xlane.f32.xlu1 %v3760_v48 }
 0xa18   :  { %v3765_v15 = vpop.xlane.xlu0 %3764 }
 0xa19   :  { %v3767_v16 = vmul.f32 0.03125, %v3765_v15  ;;  %v3762_v5 = vpop.xlane.xlu1 %3761 }
 0xa1a   :  { %v3766_v17 = vmul.f32 0.03125, %v3762_v5 }
 0xa1b   :  { %v3769_v63 = vsub.f32 %v19782_v29, %v3767_v16 }
 0xa1c   :  { %v3768_v53 = vsub.f32 %v19785_v50, %v3766_v17  ;;  %v22112_v17 = vld [vmem:[#allocation16_spill] sm:$0xff] }
 0xa1d   :  { %v3771_v47 = vmul.f32 %v3769_v63, %v3769_v63 }
 0xa1e   :  { %v3770_v34 = vmul.f32 %v3768_v53, %v3768_v53 }
 0xa1f   :  { %v3775_v55 = vsel %vm111_vm0, %v3771_v47, 0.0  ;;  %v18814_v47 = vld [vmem:[#allocation5 + $0x8] sm:$0xff] }
 0xa20   :  { %3776 = vadd.xlane.f32.xlu1 %v3775_v55  ;;  %v3772_v1 = vsel %vm111_vm0, %v3770_v34, 0.0  ;;  %v18815_v34 = vld [vmem:[#allocation5] sm:$0xff] }
 0xa21   :  { %3773 = vadd.xlane.f32.xlu0 %v3772_v1 }
 0xa31   :  { %3784 = vrot.lane.b32.xlu1 %v3769_v63, %s18944_s19 }
 0xa37   :  { %3782 = vrot.lane.b32.xlu0 %v3768_v53, %s18944_s19 }
 0xaad   :  { %v3777_v13 = vpop.xlane.xlu1 %3776 }
 0xaae   :  { %v3779_v56 = vmul.f32 0.032258064, %v3777_v13  ;;  %v3774_v2 = vpop.xlane.xlu0 %3773 }
 0xaaf   :  { %v3778_v20 = vmul.f32 0.032258064, %v3774_v2 }
 0xab0   :  { %18774 = vrsqrt.f32 %v3779_v56  ;;  %vm3799_vm11 = vcmp.eq.f32.partialorder %v3779_v56, inf  ;;  %v3802_v38 = vand.u32 2147483648, %v3779_v56  ;;  %vm3801_vm13 = vcmp.eq.f32.partialorder %v3779_v56, 0.0 }
 0xab1   :  { %18776 = vrsqrt.f32 %v3778_v20  ;;  %vm3792_vm12 = vcmp.eq.f32.partialorder %v3778_v20, inf  ;;  %v3795_v41 = vand.u32 2147483648, %v3778_v20  ;;  %vm3794_vm14 = vcmp.eq.f32.partialorder %v3778_v20, 0.0  ;;  %v3785_v4 = vpop.permute.xlu1 %3784 }
 0xab2   :  { %v3783_v43 = vpop.permute.xlu0 %3782  ;;  %v3789_v12 = vmul.f32 %v3785_v4, %v19111_v62 }
 0xab3   :  { %v3788_v48 = vmul.f32 %v3783_v43, %v19111_v62  ;;  %v3822_v62 = vsel %vm1964_vm6, %v19515_v57, 0 }
 0xab4   :  { %v19807_v55 = vand.u32 4294901760, %v3822_v62 }
 0xab6   :  { %22113 = vst [vmem:[#allocation16_spill] sm:$0xff] %v19807_v55  ;;  %v19810_v1 = vsub.f32 %v3822_v62, %v19807_v55 }
 0xab8   :  { %22114 = vst [vmem:[#allocation56_spill] sm:$0xff] %v19810_v1 }
 0xaba   :  { %v18775_v36 = vpop.eup %18774 }
 0xabb   :  { %v18777_v21 = vpop.eup %18776  ;;  %v3798_v49 = vmul.f32 %v18775_v36, %v3779_v56 }
 0xabc   :  { %v3791_v0 = vmul.f32 %v18777_v21, %v3778_v20 }
 0xabd   :  { %v3800_v3 = vsel %vm3799_vm11, %v3779_v56, %v3798_v49  ;;  %v19813_v56 = vand.u32 4294901760, %v19810_v1 }
 0xabe   :  { %v3803_v19 = vsel %vm3801_vm13, %v3802_v38, %v3800_v3  ;;  %v3793_v58 = vsel %vm3792_vm12, %v3778_v20, %v3791_v0 }
 0xabf   :  { %v3805_v26 = vadd.f32 1e-06, %v3803_v19  ;;  %v3796_v61 = vsel %vm3794_vm14, %v3795_v41, %v3793_v58  ;;  %22115 = vst [vmem:[#allocation57_spill] sm:$0xff] %v19813_v56  ;;  %v3904_v0 = vsub.f32 %v19810_v1, %v19813_v56 }
 0xac0   :  { %v3804_v46 = vadd.f32 1e-06, %v3796_v61 }
 0xac1   :  { %18778 = vrcp.f32 %v3805_v26  ;;  %v19821_v26 = vand.u32 4294901760, %v3904_v0 }
 0xac2   :  { %18780 = vrcp.f32 %v3804_v46 }
 0xac3   :  { %22116 = vst [vmem:[#allocation58_spill] sm:$0xff] %v19821_v26 }
 0xacb   :  { %v18779_v42 = vpop.eup %18778 }
 0xacc   :  { %v18781_v15 = vpop.eup %18780  ;;  %v3809_v16 = vmul.f32 %v18779_v42, %v3789_v12 }
 0xacd   :  { %v3807_v5 = vmul.f32 %v18781_v15, %v3788_v48 }
 0xace   :  { %v3811_v63 = vadd.f32 %v3809_v16, %v22112_v17 }
 0xacf   :  { %v3810_v53 = vadd.f32 %v3807_v5, %v22112_v17 }
 0xad0   :  { %3816 = vrot.lane.b32.xlu0 %v3811_v63, %s18944_s19 }
 0xad1   :  { %3814 = vrot.lane.b32.xlu1 %v3810_v53, %s18944_s19 }
 0xad4   :  { %4328 = vrot.lane.b32.xlu0 %v18814_v47, %s18945_s20 }
 0xad5   :  { %4326 = vrot.lane.b32.xlu1 %v18815_v34, %s18945_s20 }
 0xad8   :  { %4838 = vrot.lane.b32.xlu0 %v3811_v63, %s18942_s1 }
 0xad9   :  { %4836 = vrot.lane.b32.xlu1 %v3810_v53, %s18942_s1 }
 0xb42   :  { %v3817_v13 = vpop.permute.xlu0 %3816 }
 0xb43   :  { %v3828_v2 = vand.u32 4294901760, %v3817_v13  ;;  %v3815_v20 = vpop.permute.xlu1 %3814 }
 0xb44   :  { %v3825_v36 = vand.u32 4294901760, %v3815_v20 }
 0xb45   :  { %v3920_v21 = vsub.f32 %v3817_v13, %v3828_v2 }
 0xb46   :  { %v19815_v49 = vpack.c.bf16 %v3828_v2, %v3825_v36  ;;  %v3913_v38 = vsub.f32 %v3815_v20, %v3825_v36  ;;  %v4329_v15 = vpop.permute.xlu0 %4328  ;;  %v648_v36 = vld [vmem:[#allocation8] sm:$0xff] }
 0xb47   :  { %v3921_v41 = vand.u32 4294901760, %v3920_v21  ;;  %v4327_v42 = vpop.permute.xlu1 %4326  ;;  %v4332_v16 = vsel %vm1964_vm6, %v4329_v15, 0  ;;  %v4866_v0 = vand.u32 4294901760, %v648_v36 }
 0xb48   :  { %v3914_v3 = vand.u32 4294901760, %v3913_v38  ;;  %17235 = vmatprep.subr.bf16.mxu1 %v19815_v49  ;;  %v17242_v43 = vpack.c.bf16 %v3920_v21, %v3913_v38  ;;  %v4330_v48 = vsel %vm1964_vm6, %v4327_v42, 0  ;;  %v19837_v17 = vand.u32 4294901760, %v4332_v16 }
 0xb49   :  { %v3922_v19 = vsub.f32 %v3920_v21, %v3921_v41  ;;  %17237 = vmatpush3.bf16.msra.mxu1 %v19815_v49  ;;  %v19833_v5 = vand.u32 4294901760, %v4330_v48  ;;  %v649_v21 = vld [vmem:[#allocation8 + $0x8] sm:$0xff]  ;;  %v19931_v14 = vsub.f32 %v648_v36, %v4866_v0 }
 0xb4a   :  { %v3915_v58 = vsub.f32 %v3913_v38, %v3914_v3  ;;  %v17250_v12 = vpack.c.bf16 %v3921_v41, %v3914_v3  ;;  %22118 = vst [vmem:[#allocation60_spill] sm:$0xff] %v19837_v17  ;;  %v19844_v53 = vsub.f32 %v4332_v16, %v19837_v17  ;;  %v19883_v38 = vld [vmem:[#allocation8 + $0x10] sm:$0xff]  ;;  %v4869_v41 = vand.u32 4294901760, %v649_v21  ;;  %v19885_v3 = vld [vmem:[#allocation8 + $0x18] sm:$0xff] }
 0xb4b   :  { %v3923_v61 = vand.u32 4294901760, %v3922_v19  ;;  %22117 = vst [vmem:[#allocation59_spill] sm:$0xff] %v19833_v5  ;;  %v19841_v63 = vsub.f32 %v4330_v48, %v19833_v5  ;;  %v21940_v19 = vand.u32 4294901760, %v19883_v38  ;;  %v19919_v16 = vld [vmem:[#allocation8 + $0x30] sm:$0xff]  ;;  %v21973_v30 = vand.u32 4294901760, %v19931_v14 }
 0xb4c   :  { %v3916_v46 = vand.u32 4294901760, %v3915_v58  ;;  %15673 = vmatmul.mubr.f32.vlgmr.msra.gmra.mrb[6].mxu1 %v19821_v26  ;;  %22120 = vst [vmem:[#allocation62_spill] sm:$0xff] %v19844_v53  ;;  %v19854_v34 = vand.u32 4294901760, %v19844_v53  ;;  %v19888_v58 = vld [vmem:[#allocation8 + $0x20] sm:$0xff]  ;;  %v19933_v7 = vsub.f32 %v649_v21, %v4869_v41 }
 0xb4d   :  { %15679 = vmatprep.mubr.f32.mxu1 %v19744_v31  ;;  %22119 = vst [vmem:[#allocation61_spill] sm:$0xff] %v19841_v63  ;;  %v19847_v47 = vand.u32 4294901760, %v19841_v63  ;;  %v4966_v27 = vsub.f32 %v19931_v14, %v21973_v30  ;;  %v22127_v57 = vand.u32 4294901760, %v19888_v58 }
 0xb4e   :  { %v17238_v4 = vpack.c.bf16 %v3923_v61, %v3916_v46  ;;  %22122 = vst [vmem:[#allocation64_spill] sm:$0xff] %v19854_v34  ;;  %v4414_v13 = vsub.f32 %v19844_v53, %v19854_v34  ;;  %v19890_v61 = vld [vmem:[#allocation8 + $0x28] sm:$0xff]  ;;  %v19893_v46 = vpack.c.bf16 %v4869_v41, %v4866_v0  ;;  %v21972_v39 = vand.u32 4294901760, %v19933_v7 }
 0xb4f   :  { %22121 = vst [vmem:[#allocation63_spill] sm:$0xff] %v19847_v47  ;;  %v4404_v62 = vsub.f32 %v19841_v63, %v19847_v47  ;;  %v4967_v51 = vand.u32 4294901760, %v4966_v27 }
 0xb50   :  { %17239 = vmatprep.subr.bf16.mxu1 %v17238_v4  ;;  %v19865_v20 = vand.u32 4294901760, %v4414_v13  ;;  %17283 = vmatprep.subr.bf16.mxu0 %v19893_v46  ;;  %v4884_v13 = vand.u32 4294901760, %v19919_v16  ;;  %v4973_v0 = vsub.f32 %v19933_v7, %v21972_v39 }
 0xb51   :  { %17241 = vmatpush3.bf16.msra.mxu1 %v17238_v4  ;;  %v19860_v2 = vand.u32 4294901760, %v4404_v62  ;;  %17285 = vmatpush3.bf16.msra.mxu0 %v19893_v46  ;;  %v655_v62 = vld [vmem:[#allocation8 + $0x38] sm:$0xff] }
 0xb52   :  { %17243 = vmatprep.subr.bf16.mxu1 %v17242_v43  ;;  %22124 = vst [vmem:[#allocation66_spill] sm:$0xff] %v19865_v20  ;;  %v4974_v60 = vand.u32 4294901760, %v4973_v0  ;;  %v19956_v39 = vsub.f32 %v19919_v16, %v4884_v13 }
 0xb53   :  { %22123 = vst [vmem:[#allocation65_spill] sm:$0xff] %v19860_v2 }
 0xb54   :  { %15680 = vmatmul.mubr.f32.vlgmr.msra.gmra.mrb[6].mxu1 %v19807_v55  ;;  %v19951_v59 = vpack.c.bf16 %v4974_v60, %v4967_v51  ;;  %v21974_v27 = vand.u32 4294901760, %v19956_v39 }
 0xb55   :  { %17245 = vmatpush3.bf16.msra.mxu1 %v17242_v43  ;;  %15686 = vmatprep.mubr.f32.mxu1 %v19751_v6 }
 0xb56   :  { %17247 = vmatprep.subr.bf16.mxu1 %v19815_v49 }
 0xb5c   :  { %15687 = vmatmul.mubr.f32.vlgmr.msra.gmra.mrb[6].mxu1 %v19810_v1 }
 0xb5d   :  { %17249 = vmatpush3.bf16.msra.mxu1 %v19815_v49  ;;  %15693 = vmatprep.mubr.f32.mxu1 %v19756_v40 }
 0xb5e   :  { %17251 = vmatprep.subr.bf16.mxu1 %v17250_v12 }
 0xb64   :  { %15694 = vmatmul.mubr.f32.vlgmr.msra.gmra.mrb[6].mxu1 %v19813_v56 }
 0xb65   :  { %17253 = vmatpush3.bf16.msra.mxu1 %v17250_v12  ;;  %15700 = vmatprep.mubr.f32.mxu1 %v19744_v31 }
 0xb66   :  { %17255 = vmatprep.subr.bf16.mxu1 %v19815_v49 }
 0xb6c   :  { %15701 = vmatmul.mubr.f32.vlgmr.msra.gmra.mrb[6].mxu1 %v19807_v55 }
 0xb6d   :  { %17257 = vmatpush3.bf16.msra.mxu1 %v19815_v49  ;;  %15707 = vmatprep.mubr.f32.mxu1 %v19744_v31 }
 0xb6e   :  { %17259 = vmatprep.subr.bf16.mxu1 %v19815_v49 }
 0xb74   :  { %15708 = vmatmul.mubr.f32.vlgmr.msra.gmra.mrb[6].mxu1 %v19807_v55 }
 0xb75   :  { %17261 = vmatpush3.bf16.msra.mxu1 %v19815_v49  ;;  %15714 = vmatprep.mubr.f32.mxu1 %v19860_v2 }
 0xb76   :  { %17263 = vmatprep.subr.bf16.mxu1 %v17238_v4 }
 0xb78   :  { %15715 = vmatmul.mubr.f32.vlgmr.msra.gmra.mrb[8].mxu1 %v19865_v20 }
 0xb79   :  { %17265 = vmatpush3.bf16.msra.mxu1 %v17238_v4  ;;  %15721 = vmatprep.mubr.f32.mxu1 %v19833_v5  ;;  %v21942_v4 = vand.u32 4294901760, %v19888_v58 }
 0xb7a   :  { %17267 = vmatprep.subr.bf16.mxu1 %v17242_v43 }
 0xb80   :  { %15722 = vmatmul.mubr.f32.vlgmr.msra.gmra.mrb[8].mxu1 %v19837_v17 }
 0xb81   :  { %17269 = vmatpush3.bf16.msra.mxu1 %v17242_v43  ;;  %15728 = vmatprep.mubr.f32.mxu1 %v19841_v63  ;;  %v21941_v43 = vand.u32 4294901760, %v19890_v61 }
 0xb82   :  { %17271 = vmatprep.subr.bf16.mxu1 %v19815_v49 }
 0xb83   :  { %v19910_v42 = vpack.c.bf16 %v21941_v43, %v21942_v4  ;;  %v19924_v43 = vld [vmem:[#allocation8 + $0x40] sm:$0xff]  ;;  %v657_v4 = vld [vmem:[#allocation8 + $0x48] sm:$0xff] }
 0xb84   :  { %v4893_v28 = vand.u32 4294901760, %v657_v4 }
 0xb88   :  { %15729 = vmatmul.mubr.f32.vlgmr.msra.gmra.mrb[8].mxu1 %v19844_v53 }
 0xb89   :  { %17273 = vmatpush3.bf16.msra.mxu1 %v19815_v49  ;;  %15735 = vmatprep.mubr.f32.mxu1 %v19847_v47 }
 0xb8a   :  { %17275 = vmatprep.subr.bf16.mxu1 %v17250_v12 }
 0xb90   :  { %15736 = vmatmul.mubr.f32.vlgmr.msra.gmra.mrb[8].mxu1 %v19854_v34 }
 0xb91   :  { %17277 = vmatpush3.bf16.msra.mxu1 %v17250_v12  ;;  %15742 = vmatprep.mubr.f32.mxu1 %v19833_v5 }
 0xb92   :  { %17279 = vmatprep.subr.bf16.mxu1 %v19815_v49 }
 0xb98   :  { %15743 = vmatmul.mubr.f32.vlgmr.msra.gmra.mrb[8].mxu1 %v19837_v17 }
 0xb99   :  { %17281 = vmatpush3.bf16.msra.mxu1 %v19815_v49  ;;  %15749 = vmatprep.mubr.f32.mxu1 %v19833_v5  ;;  %v21939_v49 = vand.u32 4294901760, %v19885_v3 }
 0xb9b   :  { %v19901_v12 = vpack.c.bf16 %v21939_v49, %v21940_v19  ;;  %v4887_v49 = vand.u32 4294901760, %v655_v62 }
 0xb9d   :  { %17287 = vmatprep.subr.bf16.mxu0 %v19901_v12  ;;  %v19922_v19 = vpack.c.bf16 %v4887_v49, %v4884_v13  ;;  %v19958_v30 = vsub.f32 %v655_v62, %v4887_v49 }
 0xb9e   :  { %17289 = vmatpush3.bf16.msra.mxu0 %v19901_v12 }
 0xb9f   :  { %17291 = vmatprep.subr.bf16.mxu0 %v19910_v42  ;;  %v21975_v0 = vand.u32 4294901760, %v19958_v30 }
 0xba0   :  { %15750 = vmatmul.mubr.f32.vlgmr.msra.gmra.mrb[8].mxu1 %v19837_v17 }
 0xba1   :  { %15918 = vmatprep.mubr.f32.mxu1 %v19763_v22  ;;  %v4890_v22 = vand.u32 4294901760, %v19924_v43  ;;  %v5015_v51 = vsub.f32 %v19958_v30, %v21975_v0  ;;  %v19990_v0 = vsub.f32 %v658_v52, %v4896_v33 }
 0xba2   :  { %17293 = vmatpush3.bf16.msra.mxu0 %v19910_v42 }
 0xba3   :  { %17295 = vmatprep.subr.bf16.mxu0 %v19922_v19  ;;  %v19929_v35 = vpack.c.bf16 %v4893_v28, %v4890_v22  ;;  %v19972_v60 = vsub.f32 %v19924_v43, %v4890_v22  ;;  %v5016_v49 = vand.u32 4294901760, %v5015_v51 }
 0xba5   :  { %v21977_v13 = vand.u32 4294901760, %v19972_v60 }
 0xba6   :  { %17297 = vmatpush3.bf16.msra.mxu0 %v19922_v19 }
 0xba7   :  { %17299 = vmatprep.subr.bf16.mxu0 %v19929_v35  ;;  %v5022_v22 = vsub.f32 %v19972_v60, %v21977_v13 }
 0xba9   :  { %v5023_v51 = vand.u32 4294901760, %v5022_v22 }
 0xbaa   :  { %17301 = vmatpush3.bf16.msra.mxu0 %v19929_v35 }
 0xbab   :  { %17303 = vmatprep.subr.bf16.mxu0 %v19939_v37 }
 0xbae   :  { %17305 = vmatpush3.bf16.msra.mxu0 %v19939_v37 }
 0xbaf   :  { %17307 = vmatprep.subr.bf16.mxu0 %v19951_v59 }
 0xc47   :  { %v19915_v48 = vpop.f32.mrb[6].mxu1 }
 0xc48   :  { %v19917_v15 = vpop.f32.mrb[7].mxu1 }
 0xc73   :  { %v15751_v41 = vpop.f32.mrb[8].mxu1 }
 0xc74   :  { %4846 = vrot.lane.b32.xlu0 %v15751_v41, %s18944_s19  ;;  %v4826_v45 = vpop.f32.mrb[9].mxu1 }
 0xc75   :  { %4844 = vrot.lane.b32.xlu1 %v4826_v45, %s18944_s19  ;;  %v5008_v45 = vsub.f32 %v19956_v39, %v21974_v27 }
 0xc78   :  { %6539 = vrot.lane.b32.xlu0 %v649_v21, %s18944_s19  ;;  %v19974_v21 = vsub.f32 %v657_v4, %v4893_v28 }
 0xc79   :  { %6537 = vrot.lane.b32.xlu1 %v648_v36, %s18944_s19  ;;  %v5009_v36 = vand.u32 4294901760, %v5008_v45  ;;  %v19994_v45 = vsub.f32 %v659_v10, %v4899_v32 }
 0xc7a   :  { %v21980_v41 = vand.u32 4294901760, %v19974_v21 }
 0xc7b   :  { %v19982_v27 = vpack.c.bf16 %v5016_v49, %v5009_v36  ;;  %v21979_v36 = vand.u32 4294901760, %v19990_v0  ;;  %v21978_v49 = vand.u32 4294901760, %v19994_v45 }
 0xc7c   :  { %6543 = vrot.lane.b32.xlu0 %v19885_v3, %s18944_s19  ;;  %v5029_v28 = vsub.f32 %v19974_v21, %v21980_v41 }
 0xc7d   :  { %6541 = vrot.lane.b32.xlu1 %v19883_v38, %s18944_s19  ;;  %v5036_v33 = vsub.f32 %v19990_v0, %v21979_v36  ;;  %v5043_v32 = vsub.f32 %v19994_v45, %v21978_v49 }
 0xc7e   :  { %v5030_v25 = vand.u32 4294901760, %v5029_v28 }
 0xc7f   :  { %v5037_v22 = vand.u32 4294901760, %v5036_v33  ;;  %v5044_v28 = vand.u32 4294901760, %v5043_v32  ;;  %v4837_v32 = vpop.permute.xlu1 %4836 }
 0xc80   :  { %6547 = vrot.lane.b32.xlu0 %v19890_v61, %s18944_s19  ;;  %v19999_v13 = vpack.c.bf16 %v5030_v25, %v5023_v51  ;;  %v4839_v51 = vpop.permute.xlu0 %4838  ;;  %v4850_v49 = vsel %vm111_vm0, %v19917_v15, %v4837_v32 }
 0xc81   :  { %6545 = vrot.lane.b32.xlu1 %v19888_v58, %s18944_s19  ;;  %v20012_v25 = vpack.c.bf16 %v5044_v28, %v5037_v22  ;;  %v4851_v28 = vsel %vm111_vm0, %v19915_v48, %v4839_v51 }
 0xc84   :  { %6551 = vrot.lane.b32.xlu0 %v655_v62, %s18944_s19  ;;  %v20017_v62 = vpack.c.bf16 %v19933_v7, %v19931_v14 }
 0xc85   :  { %6549 = vrot.lane.b32.xlu1 %v19919_v16, %s18944_s19  ;;  %v20022_v16 = vpack.c.bf16 %v19958_v30, %v19956_v39 }
 0xc88   :  { %6555 = vrot.lane.b32.xlu0 %v657_v4, %s18944_s19  ;;  %v20026_v4 = vpack.c.bf16 %v19974_v21, %v19972_v60 }
 0xc89   :  { %6553 = vrot.lane.b32.xlu1 %v19924_v43, %s18944_s19  ;;  %v20030_v43 = vpack.c.bf16 %v19994_v45, %v19990_v0 }
 0xc8c   :  { %6559 = vrot.lane.b32.xlu0 %v659_v10, %s18944_s19  ;;  %v22125_v10 = vand.u32 4294901760, %v19883_v38 }
 0xc8d   :  { %6557 = vrot.lane.b32.xlu1 %v658_v52, %s18944_s19  ;;  %v22126_v52 = vand.u32 4294901760, %v19885_v3 }
 0xc8e   :  { %v20035_v33 = vsub.f32 %v19883_v38, %v22125_v10 }
 0xc8f   :  { %v20040_v22 = vsub.f32 %v19885_v3, %v22126_v52  ;;  %v20052_v3 = vsub.f32 %v19888_v58, %v22127_v57  ;;  %v22128_v52 = vand.u32 4294901760, %v19890_v61 }
 0xc90   :  { %v21984_v41 = vand.u32 4294901760, %v20035_v33 }
 0xc91   :  { %v21986_v10 = vand.u32 4294901760, %v20040_v22  ;;  %v20057_v48 = vsub.f32 %v19890_v61, %v22128_v52  ;;  %6561 = vrot.lane.b32.xlu1 %v660_v11, %s18944_s19 }
 0xc92   :  { %v4980_v57 = vsub.f32 %v20035_v33, %v21984_v41 }
 0xc93   :  { %v4987_v61 = vsub.f32 %v20040_v22, %v21986_v10 }
 0xc94   :  { %v4981_v9 = vand.u32 4294901760, %v4980_v57 }
 0xc95   :  { %v4988_v10 = vand.u32 4294901760, %v4987_v61  ;;  %6565 = vrot.lane.b32.xlu1 %v662_v24, %s18944_s19  ;;  %v666_v24 = vld [vmem:[#allocation8 + $0x90] sm:$0xff] }
 0xce6   :  { %v4847_v36 = vpop.permute.xlu0 %4846 }
 0xce7   :  { %v4853_v18 = vsel %vm2005_vm10, %v4851_v28, %v4847_v36  ;;  %v4845_v38 = vpop.permute.xlu1 %4844 }
 0xce8   :  { %v4863_v15 = vsel %vm4858_vm15, %v4853_v18, 0  ;;  %v4852_v51 = vsel %vm2005_vm10, %v4850_v49, %v4845_v38  ;;  %v21998_v18 = vand.u32 4294901760, %v20052_v3  ;;  %v21999_v49 = vand.u32 4294901760, %v20057_v48 }
 0xce9   :  { %v20061_v32 = vand.u32 4294901760, %v4863_v15  ;;  %v4860_v36 = vsel %vm4858_vm15, %v4852_v51, 0  ;;  %v661_v51 = vld [vmem:[#allocation8 + $0x68] sm:$0xff] }
 0xcea   :  { %v20064_v28 = vand.u32 4294901760, %v4860_v36  ;;  %6563 = vrot.lane.b32.xlu0 %v661_v51, %s18944_s19  ;;  %v5001_v8 = vsub.f32 %v20057_v48, %v21999_v49 }
 0xceb   :  { %v20070_v58 = vsub.f32 %v4863_v15, %v20061_v32 }
 0xcec   :  { %v20078_v38 = vsub.f32 %v4860_v36, %v20064_v28  ;;  %v4994_v36 = vsub.f32 %v20052_v3, %v21998_v18  ;;  %v5002_v23 = vand.u32 4294901760, %v5001_v8  ;;  %v664_v18 = vld [vmem:[#allocation8 + $0x80] sm:$0xff]  ;;  %v22130_v8 = vand.u32 4294901760, %v19933_v7 }
 0xced   :  { %v21993_v52 = vand.u32 4294901760, %v20070_v58  ;;  %6569 = vrot.lane.b32.xlu1 %v664_v18, %s18944_s19  ;;  %v22135_v7 = vand.u32 4294901760, %v20057_v48 }
 0xcee   :  { %v4944_v41 = vand.u32 4294901760, %v20078_v38  ;;  %6567 = vrot.lane.b32.xlu0 %v663_v54, %s18944_s19  ;;  %v4995_v61 = vand.u32 4294901760, %v4994_v36  ;;  %v669_v54 = vld [vmem:[#allocation8 + $0xa8] sm:$0xff] }
 0xcef   :  { %v4955_v15 = vsub.f32 %v20070_v58, %v21993_v52  ;;  %v17310_v52 = vpack.c.bf16 %v4988_v10, %v4981_v9  ;;  %v22129_v9 = vand.u32 4294901760, %v19931_v14  ;;  %v22134_v14 = vand.u32 4294901760, %v20052_v3 }
 0xcf0   :  { %v4945_v57 = vsub.f32 %v20078_v38, %v4944_v41  ;;  %v17314_v49 = vpack.c.bf16 %v5002_v23, %v4995_v61  ;;  %v17338_v23 = vpack.c.bf16 %v20057_v48, %v20052_v3  ;;  %v22140_v3 = vand.u32 4294901760, %v19990_v0 }
 0xcf1   :  { %v4956_v11 = vand.u32 4294901760, %v4955_v15  ;;  %6573 = vrot.lane.b32.xlu1 %v666_v24, %s18944_s19  ;;  %v22141_v48 = vand.u32 4294901760, %v19994_v45 }
 0xcf2   :  { %v4946_v51 = vand.u32 4294901760, %v4945_v57  ;;  %6571 = vrot.lane.b32.xlu0 %v665_v44, %s18944_s19  ;;  %v667_v57 = vld [vmem:[#allocation8 + $0x98] sm:$0xff]  ;;  %v17334_v44 = vpack.c.bf16 %v20040_v22, %v20035_v33 }
 0xcf4   :  { %15776 = vmatprep.mubr.f32.mxu0 %v4946_v51 }
 0xcf5   :  { %15777 = vmatmul.mubr.f32.vlgmr.msra.gmra.mrb[6].mxu0 %v4956_v11 }
 0xcf6   :  { %17309 = vmatpush3.bf16.msra.mxu0 %v19951_v59  ;;  %15803 = vmatprep.mubr.f32.mxu0 %v20064_v28  ;;  %v17378_v59 = vpack.c.bf16 %v22130_v8, %v22129_v9  ;;  %v6540_v9 = vpop.permute.xlu0 %6539 }
 0xcf7   :  { %17311 = vmatprep.subr.bf16.mxu0 %v17310_v52  ;;  %6575 = vrot.lane.b32.xlu0 %v667_v57, %s18944_s19 }
 0xcfa   :  { %17313 = vmatpush3.bf16.msra.mxu0 %v17310_v52 }
 0xcfb   :  { %17315 = vmatprep.subr.bf16.mxu0 %v17314_v49  ;;  %6579 = vrot.lane.b32.xlu0 %v669_v54, %s18944_s19 }
 0xcfe   :  { %17317 = vmatpush3.bf16.msra.mxu0 %v17314_v49  ;;  %v671_v49 = vld [vmem:[#allocation8 + $0xb8] sm:$0xff] }
 0xcff   :  { %17319 = vmatprep.subr.bf16.mxu0 %v19982_v27 }
 0xd02   :  { %17321 = vmatpush3.bf16.msra.mxu0 %v19982_v27  ;;  %v22131_v27 = vand.u32 4294901760, %v20035_v33  ;;  %v22138_v33 = vand.u32 4294901760, %v19972_v60 }
 0xd03   :  { %17323 = vmatprep.subr.bf16.mxu0 %v19999_v13 }
 0xd06   :  { %17325 = vmatpush3.bf16.msra.mxu0 %v19999_v13  ;;  %v22132_v13 = vand.u32 4294901760, %v20040_v22  ;;  %v22139_v22 = vand.u32 4294901760, %v19974_v21 }
 0xd07   :  { %17327 = vmatprep.subr.bf16.mxu0 %v20012_v25 }
 0xd08   :  { %v17394_v10 = vpack.c.bf16 %v22139_v22, %v22138_v33 }
 0xd0a   :  { %17329 = vmatpush3.bf16.msra.mxu0 %v20012_v25  ;;  %v22133_v25 = vand.u32 4294901760, %v20070_v58 }
 0xd0b   :  { %17331 = vmatprep.subr.bf16.mxu0 %v20017_v62 }
 0xd0d   :  { %15804 = vmatmul.mubr.f32.vlgmr.msra.gmra.mrb[6].mxu0 %v20061_v32 }
 0xd0e   :  { %17333 = vmatpush3.bf16.msra.mxu0 %v20017_v62  ;;  %15830 = vmatprep.mubr.f32.mxu0 %v20078_v38  ;;  %v17386_v62 = vpack.c.bf16 %v22135_v7, %v22134_v14 }
 0xd0f   :  { %17335 = vmatprep.subr.bf16.mxu0 %v17334_v44 }
 0xd12   :  { %17337 = vmatpush3.bf16.msra.mxu0 %v17334_v44 }
 0xd13   :  { %17339 = vmatprep.subr.bf16.mxu0 %v17338_v23 }
 0xd16   :  { %17341 = vmatpush3.bf16.msra.mxu0 %v17338_v23  ;;  %v6538_v23 = vpop.permute.xlu1 %6537 }
 0xd17   :  { %17343 = vmatprep.subr.bf16.mxu0 %v20022_v16 }
 0xd1a   :  { %17345 = vmatpush3.bf16.msra.mxu0 %v20022_v16  ;;  %v22136_v16 = vand.u32 4294901760, %v19956_v39  ;;  %v670_v39 = vld [vmem:[#allocation8 + $0xb0] sm:$0xff]  ;;  %v6542_v8 = vpop.permute.xlu1 %6541 }
 0xd1b   :  { %17347 = vmatprep.subr.bf16.mxu0 %v20026_v4  ;;  %6581 = vrot.lane.b32.xlu0 %v670_v39, %s18944_s19 }
 0xd1e   :  { %17349 = vmatpush3.bf16.msra.mxu0 %v20026_v4  ;;  %v22137_v4 = vand.u32 4294901760, %v19958_v30  ;;  %v668_v30 = vld [vmem:[#allocation8 + $0xa0] sm:$0xff] }
 0xd1f   :  { %17351 = vmatprep.subr.bf16.mxu0 %v20030_v43  ;;  %6577 = vrot.lane.b32.xlu1 %v668_v30, %s18944_s19 }
 0xd22   :  { %17353 = vmatpush3.bf16.msra.mxu0 %v20030_v43  ;;  %v17390_v43 = vpack.c.bf16 %v22137_v4, %v22136_v16  ;;  %v6619_v16 = vand.u32 4294901760, %v6540_v9  ;;  %v6616_v4 = vand.u32 4294901760, %v6538_v23 }
 0xd23   :  { %17355 = vmatprep.subr.bf16.mxu0 %v19893_v46 }
 0xd24   :  { %v20222_v22 = vsub.f32 %v6540_v9, %v6619_v16  ;;  %v20228_v30 = vpack.c.bf16 %v6619_v16, %v6616_v4 }
 0xd25   :  { %15831 = vmatmul.mubr.f32.vlgmr.msra.gmra.mrb[6].mxu0 %v20070_v58  ;;  %v17398_v58 = vpack.c.bf16 %v22141_v48, %v22140_v3  ;;  %v6622_v3 = vand.u32 4294901760, %v6542_v8 }
 0xd26   :  { %17357 = vmatpush3.bf16.msra.mxu0 %v19893_v46  ;;  %15857 = vmatprep.mubr.f32.mxu0 %v4944_v41  ;;  %v17382_v41 = vpack.c.bf16 %v22132_v13, %v22131_v27  ;;  %v6546_v27 = vpop.permute.xlu1 %6545 }
 0xd27   :  { %17359 = vmatprep.subr.bf16.mxu0 %v19901_v12 }
 0xd2a   :  { %17361 = vmatpush3.bf16.msra.mxu0 %v19901_v12 }
 0xd2b   :  { %17363 = vmatprep.subr.bf16.mxu0 %v19910_v42 }
 0xd2e   :  { %17365 = vmatpush3.bf16.msra.mxu0 %v19910_v42 }
 0xd2f   :  { %17367 = vmatprep.subr.bf16.mxu0 %v19922_v19 }
 0xd32   :  { %17369 = vmatpush3.bf16.msra.mxu0 %v19922_v19 }
 0xd33   :  { %17371 = vmatprep.subr.bf16.mxu0 %v19929_v35 }
 0xd36   :  { %17373 = vmatpush3.bf16.msra.mxu0 %v19929_v35 }
 0xd37   :  { %17375 = vmatprep.subr.bf16.mxu0 %v19939_v37 }
 0xd3a   :  { %17377 = vmatpush3.bf16.msra.mxu0 %v19939_v37 }
 0xd3b   :  { %17379 = vmatprep.subr.bf16.mxu0 %v17378_v59 }
 0xd3d   :  { %15858 = vmatmul.mubr.f32.vlgmr.msra.gmra.mrb[6].mxu0 %v22133_v25 }
 0xd3e   :  { %17381 = vmatpush3.bf16.msra.mxu0 %v17378_v59  ;;  %15884 = vmatprep.mubr.f32.mxu0 %v20064_v28  ;;  %v6544_v59 = vpop.permute.xlu0 %6543 }
 0xd3f   :  { %17383 = vmatprep.subr.bf16.mxu0 %v17382_v41  ;;  %v6625_v33 = vand.u32 4294901760, %v6544_v59 }
 0xd42   :  { %17385 = vmatpush3.bf16.msra.mxu0 %v17382_v41  ;;  %v6548_v13 = vpop.permute.xlu0 %6547  ;;  %v6550_v41 = vpop.permute.xlu1 %6549 }
 0xd43   :  { %17387 = vmatprep.subr.bf16.mxu0 %v17386_v62  ;;  %v6631_v48 = vand.u32 4294901760, %v6548_v13 }
 0xd46   :  { %17389 = vmatpush3.bf16.msra.mxu0 %v17386_v62  ;;  %v6552_v25 = vpop.permute.xlu0 %6551  ;;  %v20214_v14 = vpop.permute.xlu1 %6553 }
 0xd47   :  { %17391 = vmatprep.subr.bf16.mxu0 %v17390_v43 }
 0xd4a   :  { %17393 = vmatpush3.bf16.msra.mxu0 %v17390_v43  ;;  %v20216_v7 = vpop.permute.xlu0 %6555  ;;  %v20218_v62 = vpop.permute.xlu1 %6557 }
 0xd4b   :  { %17395 = vmatprep.subr.bf16.mxu0 %v17394_v10 }
 0xd4e   :  { %17397 = vmatpush3.bf16.msra.mxu0 %v17394_v10  ;;  %v20220_v43 = vpop.permute.xlu0 %6559  ;;  %v20224_v10 = vsub.f32 %v6538_v23, %v6616_v4  ;;  %v20226_v39 = vpop.permute.xlu1 %6561 }
 0xd4f   :  { %17399 = vmatprep.subr.bf16.mxu0 %v17398_v58 }
 0xd52   :  { %17401 = vmatpush3.bf16.msra.mxu0 %v17398_v58  ;;  %v6637_v58 = vand.u32 4294901760, %v6552_v25 }
 0xd53   :  { %17403 = vmatprep.subr.bf16.mxu0 %v19893_v46 }
 0xd55   :  { %15885 = vmatmul.mubr.f32.vlgmr.msra.gmra.mrb[6].mxu0 %v20061_v32 }
 0xd56   :  { %17405 = vmatpush3.bf16.msra.mxu0 %v19893_v46  ;;  %15911 = vmatprep.mubr.f32.mxu0 %v20064_v28  ;;  %v22142_v46 = vld [vmem:[#allocation15_spill] sm:$0xff] }
 0xd57   :  { %17407 = vmatprep.subr.bf16.mxu0 %v19901_v12 }
 0xd5a   :  { %17409 = vmatpush3.bf16.msra.mxu0 %v19901_v12  ;;  %v4856_v12 = vsub.s32 2, %v22142_v46 }
 0xd5b   :  { %17411 = vmatprep.subr.bf16.mxu0 %v19910_v42 }
 0xd5e   :  { %17413 = vmatpush3.bf16.msra.mxu0 %v19910_v42 }
 0xd5f   :  { %17415 = vmatprep.subr.bf16.mxu0 %v19922_v19 }
 0xd62   :  { %17417 = vmatpush3.bf16.msra.mxu0 %v19922_v19  ;;  %v20184_v19 = vld [vmem:[%s21911_s4] sm:$0xff] }
 0xd63   :  { %17419 = vmatprep.subr.bf16.mxu0 %v19929_v35  ;;  %22143 = vst [vmem:[#allocation67_spill] sm:$0xff] %v20184_v19 }
 0xd66   :  { %17421 = vmatpush3.bf16.msra.mxu0 %v19929_v35  ;;  %v4857_v35 = vrot.slane %v20184_v19, %v4856_v12  ;;  %v6628_v12 = vand.u32 4294901760, %v6546_v27 }
 0xd67   :  { %17423 = vmatprep.subr.bf16.mxu0 %v19939_v37 }
 0xd6a   :  { %17425 = vmatpush3.bf16.msra.mxu0 %v19939_v37 }
 0xd6d   :  { %15912 = vmatmul.mubr.f32.vlgmr.msra.gmra.mrb[6].mxu0 %v20061_v32 }
 0xe40   :  { %v15913_v42 = vpop.f32.mrb[6].mxu0 }
 0xe41   :  { %v18532_v0 = vadd.f32 %v15913_v42, %v4857_v35  ;;  %v5487_v37 = vpop.f32.mrb[7].mxu0  ;;  %v20230_v42 = vsub.f32 %v6544_v59, %v6625_v33 }
 0xe42   :  { %v18533_v60 = vadd.f32 %v5487_v37, %v4857_v35  ;;  %v6643_v37 = vand.u32 4294901760, %v20216_v7 }
 0xe43   :  { %v5498_v21 = vmax.f32 %v18532_v0, 0.0  ;;  %v20232_v0 = vsub.f32 %v6542_v8, %v6622_v3 }
 0xe44   :  { %v5497_v45 = vmax.f32 %v18533_v60, 0.0  ;;  %v20235_v60 = vpop.permute.xlu0 %6563 }
 0xe45   :  { %v5503_v32 = vand.u32 4294901760, %v5498_v21  ;;  %6507 = vrot.lane.b32.xlu0 %v5498_v21, %s18944_s19  ;;  %v6655_v8 = vand.u32 4294901760, %v20235_v60 }
 0xe46   :  { %v5500_v28 = vand.u32 4294901760, %v5497_v45  ;;  %6505 = vrot.lane.b32.xlu1 %v5497_v45, %s18944_s19 }
 0xe47   :  { %v5595_v18 = vsub.f32 %v5498_v21, %v5503_v32  ;;  %v17547_v21 = vpack.c.bf16 %v20222_v22, %v20224_v10 }
 0xe48   :  { %v17426_v38 = vpack.c.bf16 %v5503_v32, %v5500_v28  ;;  %v5588_v52 = vsub.f32 %v5497_v45, %v5500_v28  ;;  %v20239_v45 = vsub.f32 %v6548_v13, %v6631_v48  ;;  %v20241_v32 = vsub.f32 %v6552_v25, %v6637_v58  ;;  %v20268_v23 = vpop.permute.xlu0 %6567 }
 0xe49   :  { %v5596_v15 = vand.u32 4294901760, %v5595_v18  ;;  %v22006_v28 = vmov 0.0|0.0   ;;  %v6652_v25 = vand.u32 4294901760, %v20226_v39 }
 0xe4a   :  { %v5589_v36 = vand.u32 4294901760, %v5588_v52  ;;  %17427 = vmatprep.subr.bf16.mxu1 %v17426_v38  ;;  %v17434_v51 = vpack.c.bf16 %v5595_v18, %v5588_v52  ;;  %6583 = vrot.lane.b32.xlu1 %v671_v49, %s18944_s19  ;;  %v20247_v49 = vsub.f32 %v6546_v27, %v6628_v12 }
 0xe4b   :  { %17429 = vmatpush3.bf16.msra.mxu1 %v17426_v38  ;;  %v5597_v11 = vsub.f32 %v5595_v18, %v5596_v15  ;;  %17546 = vmatprep.subr.bf16.mxu0 %v22006_v28  ;;  %v20245_v18 = vpack.c.bf16 %v6625_v33, %v6622_v3  ;;  %v6661_v3 = vand.u32 4294901760, %v20268_v23 }
 0xe4c   :  { %v5590_v61 = vsub.f32 %v5588_v52, %v5589_v36  ;;  %v17442_v57 = vpack.c.bf16 %v5596_v15, %v5589_v36  ;;  %v6640_v52 = vand.u32 4294901760, %v20214_v14  ;;  %17548 = vmatpush1.bf16.msra.mxu0 %v17547_v21  ;;  %v20251_v15 = vpop.permute.xlu1 %6565  ;;  %v20256_v36 = vsub.f32 %v20216_v7, %v6643_v37 }
 0xe4d   :  { %v5598_v24 = vand.u32 4294901760, %v5597_v11  ;;  %17549 = vmatprep.subr.bf16.mxu0 %v22006_v28  ;;  %v17550_v11 = vpack.c.bf16 %v20230_v42, %v20232_v0  ;;  %v17553_v9 = vpack.c.bf16 %v20239_v45, %v20247_v49  ;;  %v20305_v21 = vsub.f32 %v20226_v39, %v6652_v25 }
 0xe4e   :  { %15919 = vmatmul.mubr.f32.vlgmr.msra.gmra.mrb[10].mxu1 %v19821_v26  ;;  %v5591_v54 = vand.u32 4294901760, %v5590_v61  ;;  %7432 = vrot.lane.b32.xlu1 %v4857_v35, %s18944_s19  ;;  %v6634_v35 = vand.u32 4294901760, %v6550_v41  ;;  %v6786_v61 = vand.u32 4294901760, %v20241_v32  ;;  %v6800_v59 = vand.u32 4294901760, %v20256_v36 }
 0xe4f   :  { %15925 = vmatprep.mubr.f32.mxu1 %v19744_v31 }
 0xe50   :  { %v17430_v44 = vpack.c.bf16 %v5598_v24, %v5591_v54  ;;  %v20265_v54 = vsub.f32 %v20214_v14, %v6640_v52  ;;  %17551 = vmatpush1.bf16.msra.mxu0 %v17550_v11  ;;  %v6787_v13 = vsub.f32 %v20241_v32, %v6786_v61  ;;  %v20284_v14 = vpop.permute.xlu1 %6569 }
 0xe51   :  { %17552 = vmatprep.subr.bf16.mxu0 %v22006_v28 }
 0xe52   :  { %17431 = vmatprep.subr.bf16.mxu1 %v17430_v44  ;;  %v6793_v4 = vand.u32 4294901760, %v20265_v54  ;;  %v17559_v11 = vpack.c.bf16 %v20256_v36, %v20265_v54 }
 0xe53   :  { %17433 = vmatpush3.bf16.msra.mxu1 %v17430_v44 }
 0xe54   :  { %17435 = vmatprep.subr.bf16.mxu1 %v17434_v51  ;;  %17554 = vmatpush1.bf16.msra.mxu0 %v17553_v9  ;;  %v20317_v39 = vpop.permute.xlu1 %6573 }
 0xe55   :  { %17555 = vmatprep.subr.bf16.mxu0 %v22006_v28 }
 0xe56   :  { %15926 = vmatmul.mubr.f32.vlgmr.msra.gmra.mrb[10].mxu1 %v19807_v55 }
 0xe57   :  { %17437 = vmatpush3.bf16.msra.mxu1 %v17434_v51  ;;  %15932 = vmatprep.mubr.f32.mxu1 %v19751_v6 }
 0xe58   :  { %17439 = vmatprep.subr.bf16.mxu1 %v17426_v38 }
 0xe5e   :  { %15933 = vmatmul.mubr.f32.vlgmr.msra.gmra.mrb[10].mxu1 %v19810_v1 }
 0xe5f   :  { %17441 = vmatpush3.bf16.msra.mxu1 %v17426_v38  ;;  %15939 = vmatprep.mubr.f32.mxu1 %v19756_v40 }
 0xe60   :  { %17443 = vmatprep.subr.bf16.mxu1 %v17442_v57 }
 0xe66   :  { %15940 = vmatmul.mubr.f32.vlgmr.msra.gmra.mrb[10].mxu1 %v19813_v56 }
 0xe67   :  { %17445 = vmatpush3.bf16.msra.mxu1 %v17442_v57  ;;  %15946 = vmatprep.mubr.f32.mxu1 %v19744_v31 }
 0xe68   :  { %17447 = vmatprep.subr.bf16.mxu1 %v17426_v38 }
 0xe6e   :  { %15947 = vmatmul.mubr.f32.vlgmr.msra.gmra.mrb[10].mxu1 %v19807_v55 }
 0xe6f   :  { %17449 = vmatpush3.bf16.msra.mxu1 %v17426_v38  ;;  %15953 = vmatprep.mubr.f32.mxu1 %v19744_v31 }
 0xe70   :  { %17451 = vmatprep.subr.bf16.mxu1 %v17426_v38 }
 0xe76   :  { %15954 = vmatmul.mubr.f32.vlgmr.msra.gmra.mrb[10].mxu1 %v19807_v55 }
 0xe77   :  { %17453 = vmatpush3.bf16.msra.mxu1 %v17426_v38  ;;  %15960 = vmatprep.mubr.f32.mxu1 %v19860_v2 }
 0xe78   :  { %17455 = vmatprep.subr.bf16.mxu1 %v17430_v44 }
 0xe7a   :  { %15961 = vmatmul.mubr.f32.vlgmr.msra.gmra.mrb[12].mxu1 %v19865_v20 }
 0xe7b   :  { %17457 = vmatpush3.bf16.msra.mxu1 %v17430_v44  ;;  %15967 = vmatprep.mubr.f32.mxu1 %v19833_v5  ;;  %v6646_v44 = vand.u32 4294901760, %v20218_v62 }
 0xe7c   :  { %17459 = vmatprep.subr.bf16.mxu1 %v17434_v51 }
 0xe7d   :  { %v20289_v33 = vsub.f32 %v20218_v62, %v6646_v44  ;;  %v6788_v62 = vand.u32 4294901760, %v6787_v13  ;;  %v6821_v13 = vand.u32 4294901760, %v20305_v21 }
 0xe7f   :  { %v6807_v9 = vand.u32 4294901760, %v20289_v33 }
 0xe82   :  { %15968 = vmatmul.mubr.f32.vlgmr.msra.gmra.mrb[12].mxu1 %v19837_v17 }
 0xe83   :  { %17461 = vmatpush3.bf16.msra.mxu1 %v17434_v51  ;;  %15974 = vmatprep.mubr.f32.mxu1 %v19841_v63  ;;  %v6649_v51 = vand.u32 4294901760, %v20220_v43 }
 0xe84   :  { %17463 = vmatprep.subr.bf16.mxu1 %v17426_v38 }
 0xe85   :  { %v20278_v27 = vsub.f32 %v20220_v43, %v6649_v51  ;;  %v20293_v43 = vsub.f32 %v20235_v60, %v6655_v8  ;;  %v6658_v60 = vand.u32 4294901760, %v20251_v15 }
 0xe8a   :  { %15975 = vmatmul.mubr.f32.vlgmr.msra.gmra.mrb[12].mxu1 %v19844_v53  ;;  %v20359_v53 = vpop.permute.xlu1 %6577 }
 0xe8b   :  { %17465 = vmatpush3.bf16.msra.mxu1 %v17426_v38  ;;  %15981 = vmatprep.mubr.f32.mxu1 %v19847_v47  ;;  %v6808_v47 = vsub.f32 %v20289_v33, %v6807_v9 }
 0xe8c   :  { %17467 = vmatprep.subr.bf16.mxu1 %v17442_v57 }
 0xe8d   :  { %v6809_v1 = vand.u32 4294901760, %v6808_v47  ;;  %v20371_v47 = vpack.c.bf16 %v6661_v3, %v6658_v60 }
 0xe92   :  { %15982 = vmatmul.mubr.f32.vlgmr.msra.gmra.mrb[12].mxu1 %v19854_v34  ;;  %v6664_v34 = vand.u32 4294901760, %v20284_v14 }
 0xe93   :  { %17469 = vmatpush3.bf16.msra.mxu1 %v17442_v57  ;;  %15988 = vmatprep.mubr.f32.mxu1 %v19833_v5  ;;  %v20262_v57 = vpack.c.bf16 %v6631_v48, %v6628_v12  ;;  %v6801_v48 = vsub.f32 %v20256_v36, %v6800_v59  ;;  %v20300_v12 = vpop.permute.xlu0 %6571 }
 0xe94   :  { %17471 = vmatprep.subr.bf16.mxu1 %v17426_v38  ;;  %v6667_v36 = vand.u32 4294901760, %v20300_v12  ;;  %v20357_v40 = vsub.f32 %v20284_v14, %v6664_v34 }
 0xe9a   :  { %15989 = vmatmul.mubr.f32.vlgmr.msra.gmra.mrb[12].mxu1 %v19837_v17 }
 0xe9b   :  { %17473 = vmatpush3.bf16.msra.mxu1 %v17426_v38  ;;  %15995 = vmatprep.mubr.f32.mxu1 %v19833_v5  ;;  %v6778_v38 = vsub.f32 %v6550_v41, %v6634_v35  ;;  %v20281_v41 = vpack.c.bf16 %v6637_v58, %v6634_v35  ;;  %v6814_v58 = vand.u32 4294901760, %v20278_v27  ;;  %v20302_v35 = vpack.c.bf16 %v6643_v37, %v6640_v52 }
 0xe9c   :  { %17474 = vmatprep.subr.bf16.mxu1 %v22006_v28  ;;  %v20315_v37 = vsub.f32 %v20268_v23, %v6661_v3  ;;  %v6802_v52 = vand.u32 4294901760, %v6801_v48  ;;  %v20329_v23 = vsub.f32 %v20251_v15, %v6658_v60  ;;  %v17562_v48 = vpack.c.bf16 %v20278_v27, %v20289_v33 }
 0xe9d   :  { %v6779_v24 = vand.u32 4294901760, %v6778_v38  ;;  %v17556_v16 = vpack.c.bf16 %v20241_v32, %v6778_v38  ;;  %v6676_v3 = vand.u32 4294901760, %v20359_v53 }
 0xe9e   :  { %v17568_v6 = vpack.c.bf16 %v20315_v37, %v20329_v23 }
 0xe9f   :  { %v6780_v7 = vsub.f32 %v6778_v38, %v6779_v24  ;;  %v6794_v38 = vsub.f32 %v20265_v54, %v6793_v4  ;;  %17557 = vmatpush1.bf16.msra.mxu0 %v17556_v16  ;;  %v20323_v54 = vpack.c.bf16 %v6786_v61, %v6779_v24  ;;  %v20325_v16 = vpack.c.bf16 %v6649_v51, %v6646_v44 }
 0xea0   :  { %17558 = vmatprep.subr.bf16.mxu0 %v22006_v28  ;;  %v22144_v61 = vand.u32 4294901760, %v20293_v43  ;;  %v6842_v24 = vand.u32 4294901760, %v20315_v37  ;;  %v22145_v44 = vmov 0.0|0.0  }
 0xea1   :  { %v6781_v32 = vand.u32 4294901760, %v6780_v7  ;;  %v6815_v7 = vsub.f32 %v20278_v27, %v6814_v58  ;;  %v6795_v56 = vand.u32 4294901760, %v6794_v38  ;;  %v20347_v27 = vsub.f32 %v20300_v12, %v6667_v36 }
 0xea2   :  { %15996 = vmatmul.mubr.f32.vlgmr.msra.gmra.mrb[12].mxu1 %v19837_v17  ;;  %v6829_v15 = vsub.f32 %v20293_v43, %v22144_v61  ;;  %v6835_v61 = vand.u32 4294901760, %v20329_v23  ;;  %v17565_v12 = vpack.c.bf16 %v20293_v43, %v20305_v21 }
 0xea3   :  { %17476 = vmatpush1.bf16.msra.mxu1 %v20228_v30  ;;  %17560 = vmatpush1.bf16.msra.mxu0 %v17559_v11  ;;  %v20338_v51 = vpack.c.bf16 %v6788_v62, %v6781_v32  ;;  %v6816_v38 = vand.u32 4294901760, %v6815_v7  ;;  %v20350_v11 = vpack.c.bf16 %v6800_v59, %v6793_v4  ;;  %v20352_v62 = vpack.c.bf16 %v6655_v8, %v6652_v25 }
 0xea4   :  { %17477 = vmatprep.subr.bf16.mxu1 %v22006_v28  ;;  %17561 = vmatprep.subr.bf16.mxu0 %v22145_v44  ;;  %v6822_v32 = vsub.f32 %v20305_v21, %v6821_v13  ;;  %v6670_v7 = vand.u32 4294901760, %v20317_v39  ;;  %v20365_v8 = vpack.c.bf16 %v6802_v52, %v6795_v56  ;;  %v6830_v59 = vand.u32 4294901760, %v6829_v15 }
 0xea5   :  { %v6843_v25 = vsub.f32 %v20315_v37, %v6842_v24  ;;  %v6856_v14 = vand.u32 4294901760, %v20347_v27  ;;  %v6836_v56 = vsub.f32 %v20329_v23, %v6835_v61  ;;  %v6849_v52 = vand.u32 4294901760, %v20357_v40 }
 0xea6   :  { %v6823_v63 = vand.u32 4294901760, %v6822_v32  ;;  %v6862_v17 = vsub.f32 %v20317_v39, %v6670_v7  ;;  %v22146_v39 = vand.u32 4294901760, %v20293_v43  ;;  %v17571_v55 = vpack.c.bf16 %v20347_v27, %v20357_v40 }
 0xea7   :  { %17479 = vmatpush1.bf16.msra.mxu1 %v20245_v18  ;;  %17563 = vmatpush1.bf16.msra.mxu0 %v17562_v48  ;;  %v20376_v48 = vpack.c.bf16 %v6814_v58, %v6807_v9  ;;  %v6844_v60 = vand.u32 4294901760, %v6843_v25  ;;  %v6857_v9 = vsub.f32 %v20347_v27, %v6856_v14  ;;  %v6837_v32 = vand.u32 4294901760, %v6836_v56 }
 0xea8   :  { %17480 = vmatprep.subr.bf16.mxu1 %v22006_v28  ;;  %17564 = vmatprep.subr.bf16.mxu0 %v22145_v44  ;;  %v20395_v23 = vpack.c.bf16 %v22146_v39, %v6821_v13  ;;  %v6863_v5 = vand.u32 4294901760, %v6862_v17  ;;  %v6876_v25 = vsub.f32 %v20359_v53, %v6676_v3  ;;  %v20404_v31 = vpack.c.bf16 %v6830_v59, %v6823_v63 }
 0xea9   :  { %v6858_v43 = vand.u32 4294901760, %v6857_v9  ;;  %v20415_v20 = vpack.c.bf16 %v6844_v60, %v6837_v32 }
 0xeaa   :  { %v6864_v63 = vsub.f32 %v6862_v17, %v6863_v5  ;;  %v6877_v59 = vand.u32 4294901760, %v6876_v25 }
 0xeab   :  { %17482 = vmatpush1.bf16.msra.mxu1 %v20262_v57  ;;  %17566 = vmatpush1.bf16.msra.mxu0 %v17565_v12  ;;  %v20397_v12 = vpack.c.bf16 %v6667_v36, %v6664_v34 }
 0xeac   :  { %17483 = vmatprep.subr.bf16.mxu1 %v22006_v28  ;;  %17567 = vmatprep.subr.bf16.mxu0 %v22145_v44  ;;  %v6865_v9 = vand.u32 4294901760, %v6864_v63 }
 0xeaf   :  { %17485 = vmatpush1.bf16.msra.mxu1 %v20281_v41  ;;  %17569 = vmatpush1.bf16.msra.mxu0 %v17568_v6 }
 0xeb0   :  { %17486 = vmatprep.subr.bf16.mxu1 %v22006_v28  ;;  %v20335_v28 = vpop.permute.xlu0 %6575  ;;  %17570 = vmatprep.subr.bf16.mxu0 %v22145_v44 }
 0xeb1   :  { %v6673_v33 = vand.u32 4294901760, %v20335_v28 }
 0xeb3   :  { %17488 = vmatpush1.bf16.msra.mxu1 %v20302_v35  ;;  %v20374_v4 = vsub.f32 %v20335_v28, %v6673_v33  ;;  %v20385_v28 = vpack.c.bf16 %v6816_v38, %v6809_v1  ;;  %v6850_v1 = vsub.f32 %v20357_v40, %v6849_v52  ;;  %v20409_v36 = vpack.c.bf16 %v6673_v33, %v6670_v7 }
 0xeb4   :  { %17489 = vmatprep.subr.bf16.mxu1 %v22145_v44  ;;  %v6580_v21 = vpop.permute.xlu0 %6579  ;;  %v20411_v40 = vpack.c.bf16 %v6842_v24, %v6835_v61  ;;  %17572 = vmatpush1.bf16.msra.mxu0 %v17571_v55  ;;  %v20419_v24 = vpack.c.bf16 %v6856_v14, %v6849_v52  ;;  %v6878_v55 = vsub.f32 %v6876_v25, %v6877_v59 }
 0xeb5   :  { %v6679_v15 = vand.u32 4294901760, %v6580_v21  ;;  %v6870_v37 = vand.u32 4294901760, %v20374_v4  ;;  %v6851_v27 = vand.u32 4294901760, %v6850_v1  ;;  %v17574_v6 = vpack.c.bf16 %v20374_v4, %v6862_v17  ;;  %17573 = vmatprep.subr.bf16.mxu0 %v22145_v44 }
 0xeb6   :  { %v6879_v32 = vand.u32 4294901760, %v6878_v55 }
 0xeb7   :  { %17491 = vmatpush1.bf16.msra.mxu1 %v20325_v16  ;;  %v6883_v38 = vsub.f32 %v6580_v21, %v6679_v15  ;;  %v6871_v13 = vsub.f32 %v20374_v4, %v6870_v37  ;;  %v20423_v4 = vpack.c.bf16 %v6679_v15, %v6676_v3  ;;  %v20428_v60 = vpack.c.bf16 %v6858_v43, %v6851_v27 }
 0xeb8   :  { %17492 = vmatprep.subr.bf16.mxu1 %v22145_v44  ;;  %v20387_v58 = vpop.permute.xlu1 %6505  ;;  %v6582_v21 = vpop.permute.xlu0 %6581  ;;  %17575 = vmatpush1.bf16.msra.mxu0 %v17574_v6  ;;  %v20432_v14 = vpack.c.bf16 %v6870_v37, %v6863_v5  ;;  %v6737_v6 = vand.u32 4294901760, %v20224_v10 }
 0xeb9   :  { %v6884_v53 = vand.u32 4294901760, %v6883_v38  ;;  %v6682_v56 = vand.u32 4294901760, %v6582_v21  ;;  %v6872_v33 = vand.u32 4294901760, %v6871_v13  ;;  %v17577_v17 = vpack.c.bf16 %v6883_v38, %v6876_v25  ;;  %17576 = vmatprep.subr.bf16.mxu0 %v22145_v44 }
 0xebb   :  { %17494 = vmatpush1.bf16.msra.mxu1 %v20352_v62  ;;  %v6885_v61 = vsub.f32 %v6883_v38, %v6884_v53  ;;  %v20421_v7 = vsub.f32 %v6582_v21, %v6682_v56  ;;  %v20439_v38 = vpack.c.bf16 %v6872_v33, %v6865_v9  ;;  %v20443_v25 = vpack.c.bf16 %v6884_v53, %v6877_v59 }
 0xebc   :  { %17495 = vmatprep.subr.bf16.mxu1 %v22145_v44  ;;  %v6584_v34 = vpop.permute.xlu1 %6583  ;;  %17578 = vmatpush1.bf16.msra.mxu0 %v17577_v17  ;;  %v6508_v13 = vpop.permute.xlu0 %6507  ;;  %v6744_v53 = vand.u32 4294901760, %v20222_v22  ;;  %v6758_v9 = vand.u32 4294901760, %v20230_v42 }
 0xebd   :  { %v6685_v39 = vand.u32 4294901760, %v6584_v34  ;;  %v6886_v52 = vand.u32 4294901760, %v6885_v61  ;;  %17579 = vmatprep.subr.bf16.mxu0 %v22145_v44 }
 0xebe   :  { %v6745_v17 = vsub.f32 %v20222_v22, %v6744_v53 }
 0xebf   :  { %17497 = vmatpush1.bf16.msra.mxu1 %v20371_v47  ;;  %v20425_v1 = vsub.f32 %v6584_v34, %v6685_v39  ;;  %v20434_v15 = vpack.c.bf16 %v6685_v39, %v6682_v56  ;;  %v20446_v5 = vpack.c.bf16 %v6886_v52, %v6879_v32  ;;  %v6738_v52 = vsub.f32 %v20224_v10, %v6737_v6 }
 0xec0   :  { %17498 = vmatprep.subr.bf16.mxu1 %v22145_v44 }
 0xec1   :  { %v17580_v3 = vpack.c.bf16 %v20425_v1, %v20421_v7 }
 0xec3   :  { %17500 = vmatpush1.bf16.msra.mxu1 %v20397_v12  ;;  %17581 = vmatpush1.bf16.msra.mxu0 %v17580_v3  ;;  %v6772_v3 = vand.u32 4294901760, %v20239_v45 }
 0xec4   :  { %17501 = vmatprep.subr.bf16.mxu1 %v22145_v44  ;;  %17618 = vmatprep.subr.bf16.mxu0 %v22145_v44 }
 0xec7   :  { %17503 = vmatpush1.bf16.msra.mxu1 %v20409_v36 }
 0xec8   :  { %17504 = vmatprep.subr.bf16.mxu1 %v22145_v44 }
 0xecb   :  { %17506 = vmatpush1.bf16.msra.mxu1 %v20423_v4 }
 0xecc   :  { %17507 = vmatprep.subr.bf16.mxu1 %v22145_v44 }
 0xecf   :  { %17509 = vmatpush1.bf16.msra.mxu1 %v20434_v15 }
 0xed0   :  { %17510 = vmatprep.subr.bf16.mxu1 %v22145_v44 }
 0xf49   :  { %v15955_v37 = vpop.f32.mrb[10].mxu1 }
 0xf4a   :  { %v5991_v34 = vpop.f32.mrb[11].mxu1  ;;  %v6512_v27 = vsel %vm2005_vm10, %v15955_v37, %v6508_v13  ;;  %v6746_v13 = vand.u32 4294901760, %v6745_v17 }
 0xf4b   :  { %v6511_v43 = vsel %vm2005_vm10, %v5991_v34, %v20387_v58  ;;  %v20457_v56 = vand.u32 4294901760, %v6512_v27  ;;  %v6751_v34 = vand.u32 4294901760, %v20232_v0 }
 0xf4c   :  { %v20452_v21 = vand.u32 4294901760, %v6511_v43 }
 0xf4d   :  { %v20472_v32 = vsub.f32 %v6512_v27, %v20457_v56  ;;  %v17619_v27 = vpack.c.bf16 %v6744_v53, %v6737_v6  ;;  %v6752_v17 = vsub.f32 %v20232_v0, %v6751_v34  ;;  %v6773_v0 = vsub.f32 %v20239_v45, %v6772_v3 }
 0xf4e   :  { %v20460_v63 = vsub.f32 %v6511_v43, %v20452_v21 }
 0xf4f   :  { %v22148_v2 = vand.u32 4294901760, %v20472_v32  ;;  %v6753_v46 = vand.u32 4294901760, %v6752_v17 }
 0xf51   :  { %v6727_v19 = vsub.f32 %v20472_v32, %v22148_v2 }
 0xf75   :  { %v15997_v59 = vpop.f32.mrb[12].mxu1 }
 0xf76   :  { %v6613_v39 = vsel %vm2005_vm10, %v15997_v59, 0  ;;  %v6493_v33 = vpop.f32.mrb[13].mxu1  ;;  %v6759_v59 = vsub.f32 %v20230_v42, %v6758_v9  ;;  %v6765_v42 = vand.u32 4294901760, %v20247_v49 }
 0xf77   :  { %v20463_v61 = vand.u32 4294901760, %v6613_v39  ;;  %v6610_v58 = vsel %vm2005_vm10, %v6493_v33, 0  ;;  %v6739_v33 = vand.u32 4294901760, %v6738_v52  ;;  %v17622_v52 = vpack.c.bf16 %v6758_v9, %v6751_v34 }
 0xf78   :  { %v20468_v55 = vand.u32 4294901760, %v6610_v58  ;;  %v17625_v45 = vpack.c.bf16 %v6772_v3, %v6765_v42  ;;  %v6774_v9 = vand.u32 4294901760, %v6773_v0  ;;  %v22154_v0 = vld [vmem:[#allocation15_spill] sm:$0xff] }
 0xf79   :  { %v20476_v37 = vsub.f32 %v6613_v39, %v20463_v61  ;;  %v22147_v39 = vand.u32 4294901760, %v20460_v63 }
 0xf7a   :  { %v20480_v43 = vsub.f32 %v6610_v58, %v20468_v55  ;;  %v6760_v58 = vand.u32 4294901760, %v6759_v59 }
 0xf7b   :  { %v22034_v22 = vand.u32 4294901760, %v20476_v37  ;;  %v6712_v26 = vsub.f32 %v20460_v63, %v22147_v39 }
 0xf7c   :  { %v22033_v10 = vand.u32 4294901760, %v20480_v43  ;;  %7047 = vmatprep.mubr.f32.mxu0 %v20480_v43  ;;  %v17514_v34 = vpack.c.bf16 %v6760_v58, %v6753_v46  ;;  %v6891_v46 = vand.u32 4294901760, %v20421_v7 }
 0xf7d   :  { %7050 = vmatmul.mubr.f32.vlgmr.msra.gmra.mrb[8].mxu0 %v20460_v63  ;;  %v6721_v6 = vsub.f32 %v20476_v37, %v22034_v22  ;;  %v17511_v22 = vpack.c.bf16 %v6746_v13, %v6739_v33  ;;  %v7433_v13 = vpop.permute.xlu1 %7432 }
 0xf7e   :  { %17620 = vmatpush1.bf16.msra.mxu0 %v17619_v27  ;;  %7056 = vmatprep.mubr.f32.mxu0 %v20476_v37  ;;  %v6706_v53 = vsub.f32 %v20480_v43, %v22033_v10  ;;  %v6713_v27 = vand.u32 4294901760, %v6712_v26  ;;  %v6766_v10 = vsub.f32 %v20247_v49, %v6765_v42  ;;  %v6728_v26 = vand.u32 4294901760, %v6727_v19  ;;  %v22153_v42 = vld [vmem:[#allocation55_spill] sm:$0xff] }
 0xf7f   :  { %17621 = vmatprep.subr.bf16.mxu0 %v22145_v44  ;;  %v6722_v29 = vand.u32 4294901760, %v6721_v6  ;;  %v6898_v19 = vand.u32 4294901760, %v20425_v1 }
 0xf80   :  { %v6707_v39 = vand.u32 4294901760, %v6706_v53  ;;  %v6767_v2 = vand.u32 4294901760, %v6766_v10 }
 0xf81   :  { %7059 = vmatmul.mubr.f32.gmra.mrb[10].mxu0 %v20472_v32  ;;  %v6899_v49 = vsub.f32 %v20425_v1, %v6898_v19 }
 0xf82   :  { %17623 = vmatpush1.bf16.msra.mxu0 %v17622_v52  ;;  %6708 = vmatprep.mubr.f32.mxu1 %v6707_v39 }
 0xf83   :  { %7312 = vmatprep.mubr.f32.mxu0 %v20468_v55  ;;  %6714 = vmatmul.mubr.f32.vlgmr.msra.gmra.mrb[14].mxu1 %v6713_v27  ;;  %v7489_v27 = vsub.s32 1, %v22154_v0 }
 0xf84   :  { %17512 = vmatpush1.bf16.msra.mxu1 %v17511_v22  ;;  %6723 = vmatprep.mubr.f32.mxu1 %v6722_v29  ;;  %v17517_v29 = vpack.c.bf16 %v6774_v9, %v6767_v2 }
 0xf85   :  { %17624 = vmatprep.subr.bf16.mxu0 %v22145_v44  ;;  %17513 = vmatprep.subr.bf16.mxu1 %v22145_v44 }
 0xf86   :  { %17626 = vmatpush1.bf16.msra.mxu0 %v17625_v45 }
 0xf87   :  { %6729 = vmatmul.mubr.f32.gmra.mrb[16].mxu1 %v6728_v26  ;;  %17627 = vmatprep.subr.bf16.mxu0 %v22145_v44 }
 0xf88   :  { %17515 = vmatpush1.bf16.msra.mxu1 %v17514_v34  ;;  %6919 = vmatprep.mubr.f32.mxu1 %v20468_v55 }
 0xf89   :  { %17516 = vmatprep.subr.bf16.mxu1 %v22145_v44 }
 0xf8a   :  { %17629 = vmatpush1.bf16.msra.mxu0 %v20323_v54 }
 0xf8b   :  { %17630 = vmatprep.subr.bf16.mxu0 %v22145_v44 }
 0xf8c   :  { %17518 = vmatpush1.bf16.msra.mxu1 %v17517_v29 }
 0xf8d   :  { %17519 = vmatprep.subr.bf16.mxu1 %v22145_v44 }
 0xf8e   :  { %17632 = vmatpush1.bf16.msra.mxu0 %v20350_v11 }
 0xf8f   :  { %17633 = vmatprep.subr.bf16.mxu0 %v22145_v44 }
 0xf90   :  { %17521 = vmatpush1.bf16.msra.mxu1 %v20338_v51  ;;  %v6900_v51 = vand.u32 4294901760, %v6899_v49 }
 0xf91   :  { %17522 = vmatprep.subr.bf16.mxu1 %v22145_v44 }
 0xf92   :  { %17635 = vmatpush1.bf16.msra.mxu0 %v20376_v48  ;;  %v22150_v48 = vand.u32 4294901760, %v20460_v63 }
 0xf93   :  { %17636 = vmatprep.subr.bf16.mxu0 %v22145_v44 }
 0xf94   :  { %17524 = vmatpush1.bf16.msra.mxu1 %v20365_v8  ;;  %v22149_v8 = vand.u32 4294901760, %v20480_v43 }
 0xf95   :  { %17525 = vmatprep.subr.bf16.mxu1 %v22145_v44 }
 0xf96   :  { %17638 = vmatpush1.bf16.msra.mxu0 %v20395_v23  ;;  %v22152_v23 = vand.u32 4294901760, %v20472_v32 }
 0xf97   :  { %17639 = vmatprep.subr.bf16.mxu0 %v22145_v44 }
 0xf98   :  { %17527 = vmatpush1.bf16.msra.mxu1 %v20385_v28  ;;  %v22151_v28 = vand.u32 4294901760, %v20476_v37 }
 0xf99   :  { %17528 = vmatprep.subr.bf16.mxu1 %v22145_v44 }
 0xf9a   :  { %17641 = vmatpush1.bf16.msra.mxu0 %v20411_v40 }
 0xf9b   :  { %17642 = vmatprep.subr.bf16.mxu0 %v22145_v44 }
 0xf9c   :  { %17530 = vmatpush1.bf16.msra.mxu1 %v20404_v31  ;;  %v6892_v31 = vsub.f32 %v20421_v7, %v6891_v46 }
 0xf9d   :  { %17531 = vmatprep.subr.bf16.mxu1 %v22145_v44 }
 0xf9e   :  { %17644 = vmatpush1.bf16.msra.mxu0 %v20419_v24  ;;  %v6893_v54 = vand.u32 4294901760, %v6892_v31 }
 0xf9f   :  { %17645 = vmatprep.subr.bf16.mxu0 %v22145_v44 }
 0xfa0   :  { %17533 = vmatpush1.bf16.msra.mxu1 %v20415_v20  ;;  %v17652_v20 = vpack.c.bf16 %v6898_v19, %v6891_v46  ;;  %v17544_v11 = vpack.c.bf16 %v6900_v51, %v6893_v54  ;;  %v20645_v54 = vld [vmem:[#allocation7 + $0x20] sm:$0xff]  ;;  %v20647_v51 = vld [vmem:[#allocation7 + $0x28] sm:$0xff] }
 0xfa1   :  { %17534 = vmatprep.subr.bf16.mxu1 %v22145_v44 }
 0xfa2   :  { %17647 = vmatpush1.bf16.msra.mxu0 %v20432_v14 }
 0xfa3   :  { %17648 = vmatprep.subr.bf16.mxu0 %v22145_v44 }
 0xfa4   :  { %17536 = vmatpush1.bf16.msra.mxu1 %v20428_v60 }
 0xfa5   :  { %17537 = vmatprep.subr.bf16.mxu1 %v22145_v44 }
 0xfa6   :  { %17650 = vmatpush1.bf16.msra.mxu0 %v20443_v25 }
 0xfa7   :  { %17651 = vmatprep.subr.bf16.mxu0 %v22145_v44 }
 0xfa8   :  { %17539 = vmatpush1.bf16.msra.mxu1 %v20439_v38 }
 0xfa9   :  { %17540 = vmatprep.subr.bf16.mxu1 %v22145_v44 }
 0xfaa   :  { %17653 = vmatpush1.bf16.msra.mxu0 %v17652_v20 }
 0xfac   :  { %17542 = vmatpush1.bf16.msra.mxu1 %v20446_v5 }
 0xfad   :  { %7314 = vmatmul.mubr.f32.vlgmr.msra.gmra.mrb[12].mxu0 %v20452_v21  ;;  %17543 = vmatprep.subr.bf16.mxu1 %v22145_v44 }
 0xfae   :  { %7319 = vmatprep.mubr.f32.mxu0 %v20463_v61 }
 0xfb0   :  { %17545 = vmatpush1.bf16.msra.mxu1 %v17544_v11  ;;  %v7526_v11 = vand.u32 4294901760, %v20645_v54 }
 0xfb1   :  { %7321 = vmatmul.mubr.f32.gmra.mrb[14].mxu0 %v20457_v56  ;;  %17582 = vmatprep.subr.bf16.mxu1 %v22145_v44 }
 0xfb3   :  { %6921 = vmatmul.mubr.f32.vlgmr.msra.gmra.mrb[18].mxu1 %v20452_v21 }
 0xfb4   :  { %6926 = vmatprep.mubr.f32.mxu1 %v20463_v61  ;;  %17584 = vmatpush1.bf16.msra.mxu1 %v20228_v30 }
 0xfb5   :  { %17585 = vmatprep.subr.bf16.mxu1 %v22145_v44 }
 0xfb7   :  { %6928 = vmatmul.mubr.f32.gmra.mrb[20].mxu1 %v20457_v56 }
 0xfb8   :  { %17587 = vmatpush1.bf16.msra.mxu1 %v20245_v18  ;;  %7155 = vmatprep.mubr.f32.mxu1 %v22149_v8  ;;  %v7529_v8 = vand.u32 4294901760, %v20647_v51 }
 0xfb9   :  { %17588 = vmatprep.subr.bf16.mxu1 %v22145_v44 }
 0xfbc   :  { %17590 = vmatpush1.bf16.msra.mxu1 %v20262_v57 }
 0xfbd   :  { %17591 = vmatprep.subr.bf16.mxu1 %v22145_v44 }
 0xfc0   :  { %17593 = vmatpush1.bf16.msra.mxu1 %v20281_v41 }
 0xfc1   :  { %17594 = vmatprep.subr.bf16.mxu1 %v22145_v44 }
 0xfc4   :  { %17596 = vmatpush1.bf16.msra.mxu1 %v20302_v35 }
 0xfc5   :  { %17597 = vmatprep.subr.bf16.mxu1 %v22145_v44 }
 0xfc8   :  { %17599 = vmatpush1.bf16.msra.mxu1 %v20325_v16 }
 0xfc9   :  { %17600 = vmatprep.subr.bf16.mxu1 %v22145_v44 }
 0xfcc   :  { %17602 = vmatpush1.bf16.msra.mxu1 %v20352_v62 }
 0xfcd   :  { %17603 = vmatprep.subr.bf16.mxu1 %v22145_v44 }
 0xfd0   :  { %17605 = vmatpush1.bf16.msra.mxu1 %v20371_v47 }
 0xfd1   :  { %17606 = vmatprep.subr.bf16.mxu1 %v22145_v44 }
 0xfd4   :  { %17608 = vmatpush1.bf16.msra.mxu1 %v20397_v12 }
 0xfd5   :  { %17609 = vmatprep.subr.bf16.mxu1 %v22145_v44 }
 0xfd8   :  { %17611 = vmatpush1.bf16.msra.mxu1 %v20409_v36 }
 0xfd9   :  { %17612 = vmatprep.subr.bf16.mxu1 %v22145_v44 }
 0xfdc   :  { %17614 = vmatpush1.bf16.msra.mxu1 %v20423_v4 }
 0xfdd   :  { %17615 = vmatprep.subr.bf16.mxu1 %v22145_v44 }
 0xfe0   :  { %17617 = vmatpush1.bf16.msra.mxu1 %v20434_v15 }
 0xfe1   :  { %17654 = vmatprep.subr.bf16.mxu1 %v22145_v44 }
 0xfe3   :  { %7159 = vmatmul.mubr.f32.vlgmr.msra.gmra.mrb[22].mxu1 %v22150_v48  ;;  %v20651_v48 = vpack.c.bf16 %v7529_v8, %v7526_v11 }
 0xfe4   :  { %7166 = vmatprep.mubr.f32.mxu1 %v22151_v28  ;;  %17656 = vmatpush1.bf16.msra.mxu1 %v20228_v30  ;;  %v7616_v28 = vsub.f32 %v20645_v54, %v7526_v11 }
 0xfe5   :  { %17657 = vmatprep.subr.bf16.mxu1 %v22145_v44  ;;  %17691 = vmatprep.subr.bf16.mxu0 %v20651_v48 }
 0xfe6   :  { %17693 = vmatpush3.bf16.msra.mxu0 %v20651_v48 }
 0xfe7   :  { %7170 = vmatmul.mubr.f32.gmra.mrb[24].mxu1 %v22152_v23  ;;  %v7623_v23 = vsub.f32 %v20647_v51, %v7529_v8 }
 0xfe8   :  { %17659 = vmatpush1.bf16.msra.mxu1 %v20245_v18  ;;  %7415 = vmatprep.mubr.f32.mxu1 %v20468_v55 }
 0xfe9   :  { %17660 = vmatprep.subr.bf16.mxu1 %v22145_v44 }
 0xfec   :  { %17662 = vmatpush1.bf16.msra.mxu1 %v20262_v57 }
 0xfed   :  { %17663 = vmatprep.subr.bf16.mxu1 %v22145_v44 }
 0xff0   :  { %17665 = vmatpush1.bf16.msra.mxu1 %v20281_v41 }
 0xff1   :  { %17666 = vmatprep.subr.bf16.mxu1 %v22145_v44 }
 0xff4   :  { %17668 = vmatpush1.bf16.msra.mxu1 %v20302_v35 }
 0xff5   :  { %17669 = vmatprep.subr.bf16.mxu1 %v22145_v44 }
 0xff8   :  { %17671 = vmatpush1.bf16.msra.mxu1 %v20325_v16 }
 0xff9   :  { %17672 = vmatprep.subr.bf16.mxu1 %v22145_v44 }
 0xffc   :  { %17674 = vmatpush1.bf16.msra.mxu1 %v20352_v62 }
 0xffd   :  { %17675 = vmatprep.subr.bf16.mxu1 %v22145_v44 }
0x1000   :  { %17677 = vmatpush1.bf16.msra.mxu1 %v20371_v47 }
0x1001   :  { %17678 = vmatprep.subr.bf16.mxu1 %v22145_v44 }
0x1004   :  { %17680 = vmatpush1.bf16.msra.mxu1 %v20397_v12 }
0x1005   :  { %17681 = vmatprep.subr.bf16.mxu1 %v22145_v44 }
0x1008   :  { %17683 = vmatpush1.bf16.msra.mxu1 %v20409_v36 }
0x1009   :  { %17684 = vmatprep.subr.bf16.mxu1 %v22145_v44 }
0x100c   :  { %17686 = vmatpush1.bf16.msra.mxu1 %v20423_v4 }
0x100d   :  { %17687 = vmatprep.subr.bf16.mxu1 %v22145_v44 }
0x1010   :  { %17689 = vmatpush1.bf16.msra.mxu1 %v20434_v15 }
0x1013   :  { %7417 = vmatmul.mubr.f32.vlgmr.msra.gmra.mrb[26].mxu1 %v20452_v21 }
0x1014   :  { %7422 = vmatprep.mubr.f32.mxu1 %v20463_v61 }
0x1017   :  { %7424 = vmatmul.mubr.f32.gmra.mrb[28].mxu1 %v20457_v56 }
0x1050   :  { %v7051_v30 = vpop.f32.mrb[8].mxu0 }
0x1051   :  { %v7053_v18 = vpop.f32.mrb[9].mxu0 }
0x1052   :  { %v20657_v18 = vld [vmem:[#allocation7 + $0x38] sm:$0xff] }
0x1054   :  { %v7060_v57 = vpop.f32.mrb[10].mxu0 }
0x1055   :  { %v7062_v41 = vpop.f32.mrb[11].mxu0 }
0x1056   :  { %v6715_v35 = vpop.f32.mrb[14].mxu1  ;;  %v7535_v41 = vand.u32 4294901760, %v20657_v18 }
0x1057   :  { %v6717_v16 = vpop.f32.mrb[15].mxu1 }
0x1058   :  { %v7624_v16 = vand.u32 4294901760, %v7623_v23 }
0x105a   :  { %v6730_v62 = vpop.f32.mrb[16].mxu1 }
0x105b   :  { %v6732_v47 = vpop.f32.mrb[17].mxu1 }
0x1080   :  { %v7315_v12 = vpop.f32.mrb[12].mxu0 }
0x1081   :  { %v7317_v36 = vpop.f32.mrb[13].mxu0 }
0x1084   :  { %v7322_v40 = vpop.f32.mrb[14].mxu0 }
0x1085   :  { %v7324_v24 = vpop.f32.mrb[15].mxu0 }
0x1086   :  { %v6922_v7 = vpop.f32.mrb[18].mxu1 }
0x1087   :  { %v6923_v4 = vadd.f32 %v6922_v7, %v6715_v35  ;;  %v6924_v1 = vpop.f32.mrb[19].mxu1  ;;  %v7617_v35 = vand.u32 4294901760, %v7616_v28 }
0x1089   :  { %v7052_v60 = vadd.f32 %v7051_v30, %v6923_v4  ;;  %v20655_v30 = vld [vmem:[#allocation7 + $0x30] sm:$0xff]  ;;  %v7618_v47 = vsub.f32 %v7616_v28, %v7617_v35 }
0x108a   :  { %v6929_v14 = vpop.f32.mrb[20].mxu1 }
0x108b   :  { %v6930_v15 = vadd.f32 %v6929_v14, %v6730_v62  ;;  %v6931_v38 = vpop.f32.mrb[21].mxu1  ;;  %v7619_v24 = vand.u32 4294901760, %v7618_v47 }
0x108d   :  { %v7061_v25 = vadd.f32 %v7060_v57, %v6930_v15  ;;  %v7532_v57 = vand.u32 4294901760, %v20655_v30 }
0x108f   :  { %v20663_v62 = vpack.c.bf16 %v7535_v41, %v7532_v57  ;;  %v7630_v36 = vsub.f32 %v20655_v30, %v7532_v57 }
0x1091   :  { %17695 = vmatprep.subr.bf16.mxu0 %v20663_v62  ;;  %v7631_v4 = vand.u32 4294901760, %v7630_v36 }
0x1092   :  { %17697 = vmatpush3.bf16.msra.mxu0 %v20663_v62 }
0x1093   :  { %v7632_v14 = vsub.f32 %v7630_v36, %v7631_v4 }
0x1095   :  { %v7633_v38 = vand.u32 4294901760, %v7632_v14  ;;  %v22162_v14 = vld [vmem:[#allocation21_spill] sm:$0xff] }
0x10b6   :  { %v7160_v5 = vpop.f32.mrb[22].mxu1 }
0x10b7   :  { %v7161_v21 = vadd.f32 %v7160_v5, %v7052_v60  ;;  %v7162_v56 = vpop.f32.mrb[23].mxu1 }
0x10b9   :  { %v7316_v63 = vadd.f32 %v7315_v12, %v7161_v21  ;;  %v7625_v12 = vsub.f32 %v7623_v23, %v7624_v16  ;;  %v17706_v21 = vpack.c.bf16 %v7623_v23, %v7616_v28 }
0x10ba   :  { %v7171_v61 = vpop.f32.mrb[24].mxu1 }
0x10bb   :  { %v7172_v55 = vadd.f32 %v7171_v61, %v7061_v25  ;;  %v7173_v32 = vpop.f32.mrb[25].mxu1  ;;  %v7626_v7 = vand.u32 4294901760, %v7625_v12 }
0x10bd   :  { %v7323_v3 = vadd.f32 %v7322_v40, %v7172_v55  ;;  %v7637_v40 = vsub.f32 %v20657_v18, %v7535_v41  ;;  %v17698_v60 = vpack.c.bf16 %v7626_v7, %v7619_v24  ;;  %v22158_v24 = vld [vmem:[#allocation19_spill] sm:$0xff]  ;;  %v22159_v7 = vld [vmem:[#allocation20_spill] sm:$0xff] }
0x10bf   :  { %v7638_v1 = vand.u32 4294901760, %v7637_v40  ;;  %17699 = vmatprep.subr.bf16.mxu0 %v17698_v60  ;;  %v17710_v56 = vpack.c.bf16 %v7637_v40, %v7630_v36  ;;  %v22156_v36 = vld [vmem:[#allocation17_spill] sm:$0xff] }
0x10c1   :  { %v7639_v15 = vsub.f32 %v7637_v40, %v7638_v1  ;;  %v20671_v61 = vpack.c.bf16 %v7638_v1, %v7631_v4  ;;  %v22157_v40 = vld [vmem:[#allocation18_spill] sm:$0xff] }
0x10c2   :  { %v22161_v1 = vld [vmem:[#allocation22_spill] sm:$0xff] }
0x10c3   :  { %v7640_v25 = vand.u32 4294901760, %v7639_v15 }
0x10c5   :  { %v17702_v5 = vpack.c.bf16 %v7640_v25, %v7633_v38 }
0x10e6   :  { %v7418_v37 = vpop.f32.mrb[26].mxu1 }
0x10e7   :  { %v7419_v43 = vadd.f32 %v7418_v37, %v7316_v63  ;;  %v7420_v22 = vpop.f32.mrb[27].mxu1  ;;  %v20669_v63 = vpack.c.bf16 %v7624_v16, %v7617_v35 }
0x10e9   :  { %v7429_v59 = vadd.f32 %v7419_v43, %v19785_v50  ;;  %v22155_v50 = vld [vmem:[#allocation67_spill] sm:$0xff] }
0x10ea   :  { %v7425_v10 = vpop.f32.mrb[28].mxu1  ;;  %v20629_v45 = vrot.slane %v22155_v50, %v7489_v27 }
0x10eb   :  { %v7426_v33 = vadd.f32 %v7425_v10, %v7323_v3  ;;  %v20618_v58 = vadd.f32 %v7433_v13, %v7429_v59  ;;  %v7427_v17 = vpop.f32.mrb[29].mxu1 }
0x10ed   :  { %v7430_v53 = vadd.f32 %v7426_v33, %v22153_v42  ;;  %v7467_v6 = vsel %vm111_vm0, %v20618_v58, 0.0 }
0x10ee   :  { %7468 = vadd.xlane.f32.xlu0 %v7467_v6 }
0x10ef   :  { %v20623_v52 = vadd.f32 %v7433_v13, %v7430_v53 }
0x10f1   :  { %v7470_v39 = vsel %vm111_vm0, %v20623_v52, 0.0 }
0x10f2   :  { %7471 = vadd.xlane.f32.xlu1 %v7470_v39 }
0x1103   :  { %7514 = vrot.lane.b32.xlu1 %v20629_v45, %s18942_s1 }
0x117b   :  { %v7469_v26 = vpop.xlane.xlu0 %7468 }
0x117c   :  { %v7473_v9 = vmul.f32 0.03125, %v7469_v26 }
0x117e   :  { %v20634_v2 = vsub.f32 %v20618_v58, %v7473_v9 }
0x117f   :  { %v7472_v34 = vpop.xlane.xlu1 %7471 }
0x1180   :  { %v7474_v29 = vmul.f32 0.03125, %v7472_v34  ;;  %v7477_v46 = vmul.f32 %v20634_v2, %v20634_v2  ;;  %v7491_v50 = vmul.f32 %v20629_v45, %v20634_v2 }
0x1182   :  { %v20639_v19 = vsub.f32 %v20623_v52, %v7474_v29  ;;  %v7479_v31 = vsel %vm111_vm0, %v7477_v46, 0.0 }
0x1183   :  { %7480 = vadd.xlane.f32.xlu0 %v7479_v31  ;;  %v20675_v9 = vpop.permute.xlu1 %7514 }
0x1184   :  { %v7478_v49 = vmul.f32 %v20639_v19, %v20639_v19  ;;  %v7492_v29 = vmul.f32 %v20629_v45, %v20639_v19 }
0x1186   :  { %v7482_v20 = vsel %vm111_vm0, %v7478_v49, 0.0 }
0x1187   :  { %7483 = vadd.xlane.f32.xlu0 %v7482_v20 }
0x1210   :  { %v7481_v55 = vpop.xlane.xlu0 %7480 }
0x1211   :  { %v7485_v32 = vmul.f32 0.032258064, %v7481_v55 }
0x1213   :  { %18782 = vrsqrt.f32 %v7485_v32  ;;  %vm7495_vm1 = vcmp.eq.f32.partialorder %v7485_v32, inf  ;;  %v7498_v13 = vand.u32 2147483648, %v7485_v32  ;;  %vm7497_vm2 = vcmp.eq.f32.partialorder %v7485_v32, 0.0 }
0x1214   :  { %v7484_v3 = vpop.xlane.xlu0 %7483 }
0x1215   :  { %v7486_v37 = vmul.f32 0.032258064, %v7484_v3 }
0x1217   :  { %18784 = vrsqrt.f32 %v7486_v37  ;;  %vm7502_vm3 = vcmp.eq.f32.partialorder %v7486_v37, inf  ;;  %v7505_v53 = vand.u32 2147483648, %v7486_v37  ;;  %vm7504_vm4 = vcmp.eq.f32.partialorder %v7486_v37, 0.0 }
0x121d   :  { %v18783_v43 = vpop.eup %18782 }
0x121e   :  { %v7494_v22 = vmul.f32 %v18783_v43, %v7485_v32  ;;  %v22166_v43 = vld [vmem:[#allocation25_spill] sm:$0xff] }
0x1220   :  { %v7496_v59 = vsel %vm7495_vm1, %v7485_v32, %v7494_v22  ;;  %v22165_v32 = vld [vmem:[#allocation26_spill] sm:$0xff] }
0x1221   :  { %v18785_v10 = vpop.eup %18784  ;;  %v7499_v33 = vsel %vm7497_vm2, %v7498_v13, %v7496_v59  ;;  %v22167_v59 = vld [vmem:[#allocation28_spill] sm:$0xff] }
0x1222   :  { %v7501_v17 = vmul.f32 %v18785_v10, %v7486_v37  ;;  %v7507_v42 = vadd.f32 1e-06, %v7499_v33  ;;  %v22168_v33 = vld [vmem:[#allocation27_spill] sm:$0xff] }
0x1224   :  { %v7503_v6 = vsel %vm7502_vm3, %v7486_v37, %v7501_v17  ;;  %18786 = vrcp.f32 %v7507_v42 }
0x1225   :  { %v7506_v39 = vsel %vm7504_vm4, %v7505_v53, %v7503_v6 }
0x1226   :  { %v7508_v27 = vadd.f32 1e-06, %v7506_v39 }
0x1228   :  { %18788 = vrcp.f32 %v7508_v27 }
0x122e   :  { %v18787_v26 = vpop.eup %18786 }
0x122f   :  { %v7510_v34 = vmul.f32 %v18787_v26, %v7491_v50 }
0x1231   :  { %v7517_v46 = vadd.f32 %v20675_v9, %v7510_v34 }
0x1232   :  { %v18789_v31 = vpop.eup %18788 }
0x1233   :  { %v7512_v49 = vmul.f32 %v18789_v31, %v7492_v29  ;;  %v7520_v20 = vsel %vm111_vm0, %v7517_v46, 0 }
0x1234   :  { %v7594_v11 = vand.u32 4294901760, %v7520_v20 }
0x1235   :  { %v7518_v8 = vadd.f32 %v20675_v9, %v7512_v49 }
0x1236   :  { %v7595_v28 = vsub.f32 %v7520_v20, %v7594_v11 }
0x1237   :  { %v7523_v23 = vsel %vm111_vm0, %v7518_v8, 0 }
0x1238   :  { %v7604_v2 = vand.u32 4294901760, %v7523_v23  ;;  %v7596_v57 = vand.u32 4294901760, %v7595_v28 }
0x123a   :  { %v7605_v41 = vsub.f32 %v7523_v23, %v7604_v2  ;;  %v7597_v35 = vsub.f32 %v7595_v28, %v7596_v57 }
0x123c   :  { %v7606_v16 = vand.u32 4294901760, %v7605_v41  ;;  %v7598_v47 = vand.u32 4294901760, %v7597_v35 }
0x123e   :  { %16006 = vmatprep.mubr.f32.mxu0 %v7598_v47  ;;  %v7607_v19 = vsub.f32 %v7605_v41, %v7606_v16 }
0x1240   :  { %v7608_v12 = vand.u32 4294901760, %v7607_v19 }
0x1242   :  { %16007 = vmatmul.mubr.f32.vlgmr.msra.gmra.mrb[16].mxu0 %v7608_v12 }
0x1243   :  { %17701 = vmatpush3.bf16.msra.mxu0 %v17698_v60  ;;  %16017 = vmatprep.mubr.f32.mxu0 %v7594_v11 }
0x1244   :  { %17703 = vmatprep.subr.bf16.mxu0 %v17702_v5 }
0x1247   :  { %17705 = vmatpush3.bf16.msra.mxu0 %v17702_v5  ;;  %v22163_v5 = vld [vmem:[#allocation24_spill] sm:$0xff] }
0x1248   :  { %17707 = vmatprep.subr.bf16.mxu0 %v17706_v21 }
0x124a   :  { %16018 = vmatmul.mubr.f32.vlgmr.msra.gmra.mrb[16].mxu0 %v7604_v2 }
0x124b   :  { %17709 = vmatpush3.bf16.msra.mxu0 %v17706_v21  ;;  %16028 = vmatprep.mubr.f32.mxu0 %v7595_v28 }
0x124c   :  { %17711 = vmatprep.subr.bf16.mxu0 %v17710_v56 }
0x124f   :  { %17713 = vmatpush3.bf16.msra.mxu0 %v17710_v56 }
0x1250   :  { %17715 = vmatprep.subr.bf16.mxu0 %v20651_v48 }
0x1252   :  { %16029 = vmatmul.mubr.f32.vlgmr.msra.gmra.mrb[16].mxu0 %v7605_v41 }
0x1253   :  { %17717 = vmatpush3.bf16.msra.mxu0 %v20651_v48  ;;  %16039 = vmatprep.mubr.f32.mxu0 %v7596_v57 }
0x1254   :  { %17719 = vmatprep.subr.bf16.mxu0 %v20663_v62 }
0x1257   :  { %17721 = vmatpush3.bf16.msra.mxu0 %v20663_v62 }
0x1258   :  { %17723 = vmatprep.subr.bf16.mxu0 %v20669_v63 }
0x125a   :  { %16040 = vmatmul.mubr.f32.vlgmr.msra.gmra.mrb[16].mxu0 %v7606_v16 }
0x125b   :  { %17725 = vmatpush3.bf16.msra.mxu0 %v20669_v63  ;;  %16050 = vmatprep.mubr.f32.mxu0 %v7594_v11  ;;  %v22164_v63 = vld [vmem:[#allocation23_spill] sm:$0xff] }
0x125c   :  { %17727 = vmatprep.subr.bf16.mxu0 %v20671_v61 }
0x125f   :  { %17729 = vmatpush3.bf16.msra.mxu0 %v20671_v61 }
0x1260   :  { %17731 = vmatprep.subr.bf16.mxu0 %v20651_v48 }
0x1262   :  { %16051 = vmatmul.mubr.f32.vlgmr.msra.gmra.mrb[16].mxu0 %v7604_v2 }
0x1263   :  { %17733 = vmatpush3.bf16.msra.mxu0 %v20651_v48  ;;  %16061 = vmatprep.mubr.f32.mxu0 %v7594_v11  ;;  %v22160_v48 = vld [vmem:[#allocation31_spill] sm:$0xff] }
0x1264   :  { %17735 = vmatprep.subr.bf16.mxu0 %v20663_v62 }
0x1267   :  { %17737 = vmatpush3.bf16.msra.mxu0 %v20663_v62 }
0x1268   :  { %17835 = vmatprep.subr.bf16.mxu0 %v22156_v36 }
0x126a   :  { %16062 = vmatmul.mubr.f32.vlgmr.msra.gmra.mrb[16].mxu0 %v7604_v2 }
0x126b   :  { %17837 = vmatpush3.bf16.msra.mxu0 %v22156_v36 }
0x126c   :  { %17839 = vmatprep.subr.bf16.mxu0 %v22157_v40 }
0x126f   :  { %17841 = vmatpush3.bf16.msra.mxu0 %v22157_v40 }
0x1270   :  { %17843 = vmatprep.subr.bf16.mxu0 %v22158_v24 }
0x1273   :  { %17845 = vmatpush3.bf16.msra.mxu0 %v22158_v24 }
0x1274   :  { %17847 = vmatprep.subr.bf16.mxu0 %v22159_v7 }
0x1277   :  { %17849 = vmatpush3.bf16.msra.mxu0 %v22159_v7 }
0x1278   :  { %17851 = vmatprep.subr.bf16.mxu0 %v22160_v48 }
0x133d   :  { %v20704_v62 = vpop.f32.mrb[16].mxu0 }
0x133e   :  { %v20706_v4 = vpop.f32.mrb[17].mxu0  ;;  %v8054_v60 = vmul.f32 %v20704_v62, %v22161_v1  ;;  %v8056_v61 = vmul.f32 %v20704_v62, %v22164_v63  ;;  %v8058_v22 = vmul.f32 %v20704_v62, %v22166_v43  ;;  %v8060_v17 = vmul.f32 %v20704_v62, %v22168_v33 }
0x133f   :  { %v8053_v15 = vmul.f32 %v20706_v4, %v22162_v14  ;;  %v8094_v38 = vsel %vm111_vm0, %v20706_v4, 0  ;;  %v8055_v21 = vmul.f32 %v20706_v4, %v22163_v5  ;;  %v8057_v3 = vmul.f32 %v20706_v4, %v22165_v32 }
0x1340   :  { %8079 = vrot.lane.b32.xlu1 %v8054_v60, %s18942_s1  ;;  %v20715_v25 = vand.u32 4294901760, %v8094_v38  ;;  %v8059_v10 = vmul.f32 %v20706_v4, %v22167_v59 }
0x1341   :  { %8077 = vrot.lane.b32.xlu0 %v8053_v15, %s18942_s1 }
0x1342   :  { %v20721_v56 = vsub.f32 %v8094_v38, %v20715_v25 }
0x1344   :  { %8081 = vrot.lane.b32.xlu1 %v8055_v21, %s18942_s1  ;;  %v8190_v55 = vand.u32 4294901760, %v20721_v56 }
0x1345   :  { %8083 = vrot.lane.b32.xlu0 %v8056_v61, %s18942_s1 }
0x1346   :  { %v8191_v37 = vsub.f32 %v20721_v56, %v8190_v55 }
0x1348   :  { %8085 = vrot.lane.b32.xlu1 %v8057_v3, %s18942_s1  ;;  %v8192_v13 = vand.u32 4294901760, %v8191_v37 }
0x1349   :  { %8087 = vrot.lane.b32.xlu0 %v8058_v22, %s18942_s1 }
0x134a   :  { %16080 = vmatprep.mubr.f32.mxu1 %v8192_v13 }
0x134c   :  { %8089 = vrot.lane.b32.xlu1 %v8059_v10, %s18942_s1 }
0x134d   :  { %8091 = vrot.lane.b32.xlu0 %v8060_v17, %s18942_s1 }
0x13b2   :  { %v8080_v42 = vpop.permute.xlu1 %8079 }
0x13b3   :  { %v8101_v53 = vsel %vm111_vm0, %v8080_v42, 0  ;;  %v8078_v6 = vpop.permute.xlu0 %8077  ;;  %v8097_v42 = vsel %vm111_vm0, %v20704_v62, 0 }
0x13b4   :  { %v8119_v39 = vand.u32 4294901760, %v8101_v53  ;;  %v8099_v27 = vsel %vm111_vm0, %v8078_v6, 0 }
0x13b5   :  { %v8116_v50 = vand.u32 4294901760, %v8099_v27 }
0x13b6   :  { %v20745_v26 = vsub.f32 %v8101_v53, %v8119_v39  ;;  %v8082_v34 = vpop.permute.xlu1 %8081 }
0x13b7   :  { %v20747_v29 = vpack.c.bf16 %v8119_v39, %v8116_v50  ;;  %v20749_v46 = vsub.f32 %v8099_v27, %v8116_v50  ;;  %v8103_v31 = vsel %vm111_vm0, %v8082_v34, 0  ;;  %v8084_v49 = vpop.permute.xlu0 %8083  ;;  %v20788_v39 = vand.u32 4294901760, %v8097_v42 }
0x13b8   :  { %v8122_v20 = vand.u32 4294901760, %v8103_v31  ;;  %v8105_v11 = vsel %vm111_vm0, %v8084_v49, 0  ;;  %v8218_v28 = vand.u32 4294901760, %v20745_v26 }
0x13b9   :  { %v8125_v8 = vand.u32 4294901760, %v8105_v11  ;;  %17739 = vmatprep.subr.bf16.mxu1 %v20747_v29  ;;  %v8211_v23 = vand.u32 4294901760, %v20749_v46  ;;  %v8199_v49 = vsub.f32 %v8097_v42, %v20788_v39 }
0x13ba   :  { %v20756_v2 = vsub.f32 %v8103_v31, %v8122_v20  ;;  %v8086_v57 = vpop.permute.xlu1 %8085  ;;  %17741 = vmatpush3.bf16.xpose.msra.mxu1 %v20747_v29  ;;  %v8219_v50 = vsub.f32 %v20745_v26, %v8218_v28 }
0x13bb   :  { %v20759_v41 = vpack.c.bf16 %v8125_v8, %v8122_v20  ;;  %v20761_v35 = vsub.f32 %v8105_v11, %v8125_v8  ;;  %v8107_v16 = vsel %vm111_vm0, %v8086_v57, 0  ;;  %v8088_v47 = vpop.permute.xlu0 %8087  ;;  %v20770_v5 = vpack.c.bf16 %v8218_v28, %v8211_v23 }
0x13bc   :  { %v8128_v19 = vand.u32 4294901760, %v8107_v16  ;;  %v8109_v12 = vsel %vm111_vm0, %v8088_v47, 0  ;;  %v8225_v60 = vand.u32 4294901760, %v20756_v2  ;;  %v8212_v34 = vsub.f32 %v20749_v46, %v8211_v23 }
0x13bd   :  { %v8131_v1 = vand.u32 4294901760, %v8109_v12  ;;  %17743 = vmatprep.subr.bf16.mxu1 %v20759_v41  ;;  %v8232_v14 = vand.u32 4294901760, %v20761_v35  ;;  %v8220_v11 = vand.u32 4294901760, %v8219_v50  ;;  %v8200_v8 = vand.u32 4294901760, %v8199_v49 }
0x13be   :  { %v20768_v15 = vsub.f32 %v8107_v16, %v8128_v19  ;;  %v8090_v38 = vpop.permute.xlu1 %8089  ;;  %v8213_v20 = vand.u32 4294901760, %v8212_v34  ;;  %v8226_v57 = vsub.f32 %v20756_v2, %v8225_v60 }
0x13bf   :  { %v20772_v21 = vsub.f32 %v8109_v12, %v8131_v1  ;;  %v8111_v63 = vsel %vm111_vm0, %v8090_v38, 0  ;;  %v8092_v61 = vpop.permute.xlu0 %8091  ;;  %v20777_v43 = vpack.c.bf16 %v8131_v1, %v8128_v19  ;;  %v20781_v10 = vpack.c.bf16 %v8232_v14, %v8225_v60 }
0x13c0   :  { %v8239_v32 = vand.u32 4294901760, %v20768_v15  ;;  %v8134_v3 = vand.u32 4294901760, %v8111_v63  ;;  %v8113_v37 = vsel %vm111_vm0, %v8092_v61, 0  ;;  %v8233_v16 = vsub.f32 %v20761_v35, %v8232_v14 }
0x13c1   :  { %v8246_v22 = vand.u32 4294901760, %v20772_v21  ;;  %v8137_v13 = vand.u32 4294901760, %v8113_v37  ;;  %v17754_v47 = vpack.c.bf16 %v8220_v11, %v8213_v20  ;;  %v8201_v28 = vsub.f32 %v8199_v49, %v8200_v8  ;;  %v22174_v20 = vld [vmem:[#allocation47_spill] sm:$0xff] }
0x13c2   :  { %v8252_v59 = vsub.f32 %v8111_v63, %v8134_v3  ;;  %17745 = vmatpush3.bf16.xpose.msra.mxu1 %v20759_v41  ;;  %v8227_v23 = vand.u32 4294901760, %v8226_v57  ;;  %v8234_v19 = vand.u32 4294901760, %v8233_v16  ;;  %v8240_v1 = vsub.f32 %v20768_v15, %v8239_v32  ;;  %v22176_v16 = vld [vmem:[#allocation49_spill] sm:$0xff] }
0x13c3   :  { %v8259_v33 = vsub.f32 %v8113_v37, %v8137_v13  ;;  %17747 = vmatprep.subr.bf16.mxu1 %v20777_v43  ;;  %v20786_v53 = vpack.c.bf16 %v8246_v22, %v8239_v32  ;;  %v20794_v31 = vpack.c.bf16 %v8137_v13, %v8134_v3  ;;  %v8202_v12 = vand.u32 4294901760, %v8201_v28  ;;  %v22177_v28 = vld [vmem:[#allocation48_spill] sm:$0xff] }
0x13c4   :  { %v8253_v17 = vand.u32 4294901760, %v8252_v59  ;;  %v8247_v38 = vsub.f32 %v20772_v21, %v8246_v22  ;;  %v17758_v63 = vpack.c.bf16 %v8234_v19, %v8227_v23  ;;  %v8241_v60 = vand.u32 4294901760, %v8240_v1  ;;  %v22178_v19 = vld [vmem:[#allocation50_spill] sm:$0xff] }
0x13c5   :  { %v8260_v6 = vand.u32 4294901760, %v8259_v33  ;;  %v17770_v32 = vpack.c.bf16 %v20745_v26, %v20749_v46  ;;  %v17774_v22 = vpack.c.bf16 %v20761_v35, %v20756_v2  ;;  %v22169_v46 = vld [vmem:[#allocation29_spill] sm:$0xff]  ;;  %v22170_v2 = vld [vmem:[#allocation30_spill] sm:$0xff]  ;;  %v8065_v11 = vmul.f32 %v20706_v4, %v22174_v20 }
0x13c6   :  { %v8248_v14 = vand.u32 4294901760, %v8247_v38  ;;  %v8254_v61 = vsub.f32 %v8252_v59, %v8253_v17  ;;  %v8066_v23 = vmul.f32 %v20704_v62, %v22177_v28 }
0x13c7   :  { %v20790_v27 = vpack.c.bf16 %v8260_v6, %v8253_v17  ;;  %v8261_v3 = vsub.f32 %v8259_v33, %v8260_v6  ;;  %v17778_v17 = vpack.c.bf16 %v20772_v21, %v20768_v15  ;;  %v17782_v6 = vpack.c.bf16 %v8259_v33, %v8252_v59 }
0x13c8   :  { %v17762_v37 = vpack.c.bf16 %v8248_v14, %v8241_v60  ;;  %v8255_v13 = vand.u32 4294901760, %v8254_v61 }
0x13c9   :  { %v8262_v42 = vand.u32 4294901760, %v8261_v3 }
0x13ca   :  { %17749 = vmatpush3.bf16.xpose.msra.mxu1 %v20777_v43 }
0x13cb   :  { %17751 = vmatprep.subr.bf16.mxu1 %v20794_v31  ;;  %v17766_v50 = vpack.c.bf16 %v8262_v42, %v8255_v13 }
0x13d2   :  { %17753 = vmatpush3.bf16.xpose.msra.mxu1 %v20794_v31 }
0x13d3   :  { %17755 = vmatprep.subr.bf16.mxu1 %v17754_v47 }
0x13d9   :  { %16081 = vmatmul.mubr.f32.vlgmr.msra.gmra.mrb[30].mxu1 %v8202_v12  ;;  %v8068_v12 = vmul.f32 %v20704_v62, %v22178_v19 }
0x13da   :  { %17757 = vmatpush3.bf16.xpose.msra.mxu1 %v17754_v47  ;;  %16099 = vmatprep.mubr.f32.mxu1 %v20715_v25  ;;  %v8067_v47 = vmul.f32 %v20706_v4, %v22176_v16 }
0x13db   :  { %17759 = vmatprep.subr.bf16.mxu1 %v17758_v63 }
0x13e2   :  { %17761 = vmatpush3.bf16.xpose.msra.mxu1 %v17758_v63 }
0x13e3   :  { %17763 = vmatprep.subr.bf16.mxu1 %v17762_v37 }
0x13ea   :  { %17765 = vmatpush3.bf16.xpose.msra.mxu1 %v17762_v37 }
0x13eb   :  { %17767 = vmatprep.subr.bf16.mxu1 %v17766_v50 }
0x13f2   :  { %17769 = vmatpush3.bf16.xpose.msra.mxu1 %v17766_v50 }
0x13f3   :  { %17771 = vmatprep.subr.bf16.mxu1 %v17770_v32 }
0x13f9   :  { %16100 = vmatmul.mubr.f32.vlgmr.msra.gmra.mrb[30].mxu1 %v20788_v39 }
0x13fa   :  { %17773 = vmatpush3.bf16.xpose.msra.mxu1 %v17770_v32  ;;  %16118 = vmatprep.mubr.f32.mxu1 %v20721_v56 }
0x13fb   :  { %17775 = vmatprep.subr.bf16.mxu1 %v17774_v22 }
0x1402   :  { %17777 = vmatpush3.bf16.xpose.msra.mxu1 %v17774_v22 }
0x1403   :  { %17779 = vmatprep.subr.bf16.mxu1 %v17778_v17 }
0x140a   :  { %17781 = vmatpush3.bf16.xpose.msra.mxu1 %v17778_v17 }
0x140b   :  { %17783 = vmatprep.subr.bf16.mxu1 %v17782_v6 }
0x1412   :  { %17785 = vmatpush3.bf16.xpose.msra.mxu1 %v17782_v6 }
0x1413   :  { %17787 = vmatprep.subr.bf16.mxu1 %v20747_v29 }
0x1419   :  { %16119 = vmatmul.mubr.f32.vlgmr.msra.gmra.mrb[30].mxu1 %v8199_v49 }
0x141a   :  { %17789 = vmatpush3.bf16.xpose.msra.mxu1 %v20747_v29  ;;  %16137 = vmatprep.mubr.f32.mxu1 %v8190_v55 }
0x141b   :  { %17791 = vmatprep.subr.bf16.mxu1 %v20759_v41 }
0x1422   :  { %17793 = vmatpush3.bf16.xpose.msra.mxu1 %v20759_v41 }
0x1423   :  { %17795 = vmatprep.subr.bf16.mxu1 %v20777_v43 }
0x142a   :  { %17797 = vmatpush3.bf16.xpose.msra.mxu1 %v20777_v43 }
0x142b   :  { %17799 = vmatprep.subr.bf16.mxu1 %v20794_v31 }
0x1432   :  { %17801 = vmatpush3.bf16.xpose.msra.mxu1 %v20794_v31 }
0x1433   :  { %17803 = vmatprep.subr.bf16.mxu1 %v20770_v5 }
0x1439   :  { %16138 = vmatmul.mubr.f32.vlgmr.msra.gmra.mrb[30].mxu1 %v8200_v8  ;;  %v22175_v8 = vld [vmem:[#allocation46_spill] sm:$0xff] }
0x143a   :  { %17805 = vmatpush3.bf16.xpose.msra.mxu1 %v20770_v5  ;;  %16156 = vmatprep.mubr.f32.mxu1 %v20715_v25  ;;  %v8064_v57 = vmul.f32 %v20704_v62, %v22175_v8 }
0x143b   :  { %17807 = vmatprep.subr.bf16.mxu1 %v20781_v10 }
0x1442   :  { %17809 = vmatpush3.bf16.xpose.msra.mxu1 %v20781_v10 }
0x1443   :  { %17811 = vmatprep.subr.bf16.mxu1 %v20786_v53 }
0x144a   :  { %17813 = vmatpush3.bf16.xpose.msra.mxu1 %v20786_v53  ;;  %v22171_v53 = vld [vmem:[#allocation43_spill] sm:$0xff] }
0x144b   :  { %17815 = vmatprep.subr.bf16.mxu1 %v20790_v27 }
0x1452   :  { %17817 = vmatpush3.bf16.xpose.msra.mxu1 %v20790_v27  ;;  %v22172_v27 = vld [vmem:[#allocation45_spill] sm:$0xff] }
0x1453   :  { %17819 = vmatprep.subr.bf16.mxu1 %v20747_v29  ;;  %v8063_v34 = vmul.f32 %v20706_v4, %v22172_v27  ;;  %v22187_v27 = vld [vmem:[#allocation40_spill] sm:$0xff] }
0x1459   :  { %16157 = vmatmul.mubr.f32.vlgmr.msra.gmra.mrb[30].mxu1 %v20788_v39 }
0x145a   :  { %17821 = vmatpush3.bf16.xpose.msra.mxu1 %v20747_v29  ;;  %16175 = vmatprep.mubr.f32.mxu1 %v20715_v25 }
0x145b   :  { %17823 = vmatprep.subr.bf16.mxu1 %v20759_v41 }
0x1462   :  { %17825 = vmatpush3.bf16.xpose.msra.mxu1 %v20759_v41 }
0x1463   :  { %17827 = vmatprep.subr.bf16.mxu1 %v20777_v43 }
0x146a   :  { %17829 = vmatpush3.bf16.xpose.msra.mxu1 %v20777_v43 }
0x146b   :  { %17831 = vmatprep.subr.bf16.mxu1 %v20794_v31 }
0x1472   :  { %17833 = vmatpush3.bf16.xpose.msra.mxu1 %v20794_v31  ;;  %v22173_v31 = vld [vmem:[#allocation44_spill] sm:$0xff] }
0x1473   :  { %v8061_v49 = vmul.f32 %v20706_v4, %v22173_v31  ;;  %v22189_v31 = vld [vmem:[#allocation42_spill] sm:$0xff] }
0x1479   :  { %16176 = vmatmul.mubr.f32.vlgmr.msra.gmra.mrb[30].mxu1 %v20788_v39  ;;  %v8062_v39 = vmul.f32 %v20704_v62, %v22171_v53  ;;  %v22185_v53 = vld [vmem:[#allocation38_spill] sm:$0xff] }
0x154c   :  { %v16177_v56 = vpop.f32.mrb[30].mxu1 }
0x154d   :  { %v8696_v55 = vmul.f32 0.35355338, %v16177_v56  ;;  %v8685_v26 = vpop.f32.mrb[31].mxu1 }
0x154e   :  { %v8695_v29 = vmul.f32 0.35355338, %v8685_v26 }
0x154f   :  { %v8698_v25 = vadd.f32 %v8696_v55, %v22169_v46 }
0x1550   :  { %v8697_v35 = vadd.f32 %v8695_v29, %v22170_v2 }
0x1551   :  { %v8708_v41 = vsel %vm1971_vm5, %v8698_v25, -inf  ;;  %v8702_v15 = vsel %vm1964_vm6, %v8698_v25, -inf  ;;  %v8714_v5 = vsel %vm1978_vm7, %v8698_v25, -inf  ;;  %v8720_v33 = vsel %vm1985_vm8, %v8698_v25, -inf }
0x1552   :  { %8709 = vmax.xlane.f32.xlu1 %v8708_v41  ;;  %8703 = vmax.xlane.f32.xlu0 %v8702_v15  ;;  %v8705_v21 = vsel %vm1971_vm5, %v8697_v35, -inf  ;;  %v8711_v43 = vsel %vm1978_vm7, %v8697_v35, -inf  ;;  %v8699_v59 = vsel %vm1964_vm6, %v8697_v35, -inf  ;;  %v8717_v10 = vsel %vm1985_vm8, %v8697_v35, -inf }
0x1556   :  { %8715 = vmax.xlane.f32.xlu1 %v8714_v5  ;;  %8706 = vmax.xlane.f32.xlu0 %v8705_v21  ;;  %v22179_v21 = vld [vmem:[#allocation32_spill] sm:$0xff] }
0x155a   :  { %8712 = vmax.xlane.f32.xlu0 %v8711_v43  ;;  %8700 = vmax.xlane.f32.xlu1 %v8699_v59  ;;  %v22180_v43 = vld [vmem:[#allocation33_spill] sm:$0xff]  ;;  %v22181_v59 = vld [vmem:[#allocation34_spill] sm:$0xff] }
0x155e   :  { %8718 = vmax.xlane.f32.xlu0 %v8717_v10  ;;  %8721 = vmax.xlane.f32.xlu1 %v8720_v33  ;;  %v22182_v10 = vld [vmem:[#allocation35_spill] sm:$0xff]  ;;  %v22184_v33 = vld [vmem:[#allocation37_spill] sm:$0xff] }
0x156f   :  { %9331 = vrot.lane.b32.xlu1 %v8062_v39, %s18944_s19  ;;  %v22186_v39 = vld [vmem:[#allocation39_spill] sm:$0xff] }
0x1573   :  { %9333 = vrot.lane.b32.xlu1 %v8063_v34, %s18944_s19  ;;  %v22188_v34 = vld [vmem:[#allocation41_spill] sm:$0xff] }
0x1574   :  { %9329 = vrot.lane.b32.xlu0 %v8061_v49, %s18944_s19 }
0x1577   :  { %9337 = vrot.lane.b32.xlu1 %v8065_v11, %s18944_s19 }
0x1578   :  { %9335 = vrot.lane.b32.xlu0 %v8064_v57, %s18944_s19 }
0x157b   :  { %9341 = vrot.lane.b32.xlu1 %v8067_v47, %s18944_s19 }
0x157c   :  { %9339 = vrot.lane.b32.xlu0 %v8066_v23, %s18944_s19 }
0x157f   :  { %9941 = vrot.lane.b32.xlu1 %v20645_v54, %s18943_s18 }
0x1580   :  { %9343 = vrot.lane.b32.xlu0 %v8068_v12, %s18944_s19 }
0x1583   :  { %9945 = vrot.lane.b32.xlu1 %v20655_v30, %s18943_s18 }
0x1584   :  { %9943 = vrot.lane.b32.xlu0 %v20647_v51, %s18943_s18 }
0x1588   :  { %9947 = vrot.lane.b32.xlu0 %v20657_v18, %s18943_s18 }
0x15df   :  { %v8710_v4 = vpop.xlane.xlu1 %8709  ;;  %v8704_v1 = vpop.xlane.xlu0 %8703 }
0x15e0   :  { %v8724_v54 = vsel %vm1964_vm6, %v8704_v1, %v8710_v4 }
0x15e3   :  { %v8716_v38 = vpop.xlane.xlu1 %8715  ;;  %v8707_v63 = vpop.xlane.xlu0 %8706 }
0x15e4   :  { %v8726_v61 = vsel %vm111_vm0, %v8724_v54, %v8716_v38 }
0x15e7   :  { %v8713_v60 = vpop.xlane.xlu0 %8712  ;;  %v8701_v62 = vpop.xlane.xlu1 %8700 }
0x15e8   :  { %v8723_v14 = vsel %vm1964_vm6, %v8701_v62, %v8707_v63 }
0x15e9   :  { %v8725_v30 = vsel %vm111_vm0, %v8723_v14, %v8713_v60 }
0x15eb   :  { %v8719_v3 = vpop.xlane.xlu0 %8718  ;;  %v8722_v37 = vpop.xlane.xlu1 %8721 }
0x15ec   :  { %v8727_v51 = vsel %vm1996_vm9, %v8725_v30, %v8719_v3  ;;  %v8728_v18 = vsel %vm1996_vm9, %v8726_v61, %v8722_v37 }
0x15ed   :  { %v8729_v13 = vsub.f32 %v8697_v35, %v8727_v51  ;;  %v8730_v42 = vsub.f32 %v8698_v25, %v8728_v18 }
0x15ef   :  { %v8731_v50 = vmul.f32 1.442695, %v8729_v13  ;;  %v8733_v32 = vmul.f32 1.442695, %v8730_v42  ;;  %v9330_v49 = vpop.permute.xlu0 %9329  ;;  %v9332_v20 = vpop.permute.xlu1 %9331 }
0x15f0   :  { %v9354_v57 = vand.u32 4294901760, %v9330_v49  ;;  %v9357_v16 = vand.u32 4294901760, %v9332_v20 }
0x15f1   :  { %18790 = vpow2.f32 %v8731_v50 }
0x15f2   :  { %18792 = vpow2.f32 %v8733_v32  ;;  %v20965_v47 = vsub.f32 %v9330_v49, %v9354_v57  ;;  %v20968_v28 = vsub.f32 %v9332_v20, %v9357_v16  ;;  %v20970_v4 = vpack.c.bf16 %v9357_v16, %v9354_v57 }
0x15f3   :  { %v9336_v11 = vpop.permute.xlu0 %9335  ;;  %v9334_v8 = vpop.permute.xlu1 %9333 }
0x15f4   :  { %v9360_v23 = vand.u32 4294901760, %v9334_v8  ;;  %v17962_v16 = vpack.c.bf16 %v20968_v28, %v20965_v47 }
0x15f6   :  { %v20978_v38 = vsub.f32 %v9334_v8, %v9360_v23 }
0x15f7   :  { %v9340_v19 = vpop.permute.xlu0 %9339  ;;  %v9338_v12 = vpop.permute.xlu1 %9337 }
0x15f8   :  { %v9369_v63 = vand.u32 4294901760, %v9340_v19  ;;  %v9366_v62 = vand.u32 4294901760, %v9338_v12  ;;  %v9463_v30 = vand.u32 4294901760, %v20978_v38 }
0x15fa   :  { %v20994_v37 = vsub.f32 %v9340_v19, %v9369_v63  ;;  %v20996_v51 = vpack.c.bf16 %v9369_v63, %v9366_v62  ;;  %v20998_v18 = vsub.f32 %v9338_v12, %v9366_v62 }
0x15fb   :  { %v18791_v22 = vpop.eup %18790  ;;  %v9344_v14 = vpop.permute.xlu0 %9343 }
0x15fc   :  { %v18793_v17 = vpop.eup %18792  ;;  %v8736_v56 = vsel %vm2005_vm10, %v18791_v22, 0  ;;  %v9342_v54 = vpop.permute.xlu1 %9341  ;;  %v9375_v13 = vand.u32 4294901760, %v9344_v14  ;;  %v9464_v22 = vsub.f32 %v20978_v38, %v9463_v30 }
0x15fd   :  { %v8739_v6 = vsel %vm2005_vm10, %v18793_v17, 0  ;;  %v20895_v26 = vand.u32 4294901760, %v8736_v56  ;;  %v9372_v42 = vand.u32 4294901760, %v9342_v54  ;;  %v9484_v17 = vand.u32 4294901760, %v20994_v37 }
0x15fe   :  { %v20893_v55 = vand.u32 4294901760, %v8739_v6 }
0x15ff   :  { %v20901_v46 = vsub.f32 %v8736_v56, %v20895_v26  ;;  %v9477_v56 = vand.u32 4294901760, %v20998_v18 }
0x1600   :  { %v20898_v29 = vsub.f32 %v8739_v6, %v20893_v55 }
0x1601   :  { %v20907_v2 = vand.u32 4294901760, %v20901_v46 }
0x1602   :  { %v20904_v25 = vand.u32 4294901760, %v20898_v29 }
0x1603   :  { %v8817_v41 = vsub.f32 %v20901_v46, %v20907_v2 }
0x1604   :  { %v8827_v35 = vsub.f32 %v20898_v29, %v20904_v25 }
0x1605   :  { %v20915_v5 = vand.u32 4294901760, %v8817_v41  ;;  %v21012_v41 = vpack.c.bf16 %v9375_v13, %v9372_v42 }
0x1606   :  { %v20913_v15 = vand.u32 4294901760, %v8827_v35  ;;  %v21010_v35 = vsub.f32 %v9344_v14, %v9375_v13 }
0x1607   :  { %16194 = vmatprep.mubr.f32.mxu0 %v20915_v5 }
0x1608   :  { %16195 = vmatmul.mubr.f32.vlgmr.msra.gmra.mrb[18].mxu0 %v20913_v15 }
0x1609   :  { %17853 = vmatpush3.bf16.msra.mxu0 %v22160_v48  ;;  %16213 = vmatprep.mubr.f32.mxu0 %v20895_v26  ;;  %v22183_v48 = vld [vmem:[#allocation36_spill] sm:$0xff] }
0x160a   :  { %17855 = vmatprep.subr.bf16.mxu0 %v22179_v21 }
0x160d   :  { %17857 = vmatpush3.bf16.msra.mxu0 %v22179_v21 }
0x160e   :  { %17859 = vmatprep.subr.bf16.mxu0 %v22180_v43 }
0x1611   :  { %17861 = vmatpush3.bf16.msra.mxu0 %v22180_v43  ;;  %v9465_v43 = vand.u32 4294901760, %v9464_v22 }
0x1612   :  { %17863 = vmatprep.subr.bf16.mxu0 %v22181_v59 }
0x1615   :  { %17865 = vmatpush3.bf16.msra.mxu0 %v22181_v59 }
0x1616   :  { %17867 = vmatprep.subr.bf16.mxu0 %v22182_v10 }
0x1618   :  { %16214 = vmatmul.mubr.f32.vlgmr.msra.gmra.mrb[18].mxu0 %v20893_v55 }
0x1619   :  { %17869 = vmatpush3.bf16.msra.mxu0 %v22182_v10  ;;  %16232 = vmatprep.mubr.f32.mxu0 %v20901_v46  ;;  %v9485_v10 = vsub.f32 %v20994_v37, %v9484_v17 }
0x161a   :  { %17871 = vmatprep.subr.bf16.mxu0 %v22183_v48 }
0x161b   :  { %v9486_v49 = vand.u32 4294901760, %v9485_v10 }
0x161d   :  { %17873 = vmatpush3.bf16.msra.mxu0 %v22183_v48  ;;  %v9478_v48 = vsub.f32 %v20998_v18, %v9477_v56 }
0x161e   :  { %17875 = vmatprep.subr.bf16.mxu0 %v22184_v33 }
0x1621   :  { %17877 = vmatpush3.bf16.msra.mxu0 %v22184_v33  ;;  %v9498_v33 = vand.u32 4294901760, %v21010_v35 }
0x1622   :  { %17879 = vmatprep.subr.bf16.mxu0 %v22185_v53 }
0x1625   :  { %17881 = vmatpush3.bf16.msra.mxu0 %v22185_v53 }
0x1626   :  { %17883 = vmatprep.subr.bf16.mxu0 %v22156_v36 }
0x1628   :  { %16233 = vmatmul.mubr.f32.vlgmr.msra.gmra.mrb[18].mxu0 %v20898_v29 }
0x1629   :  { %17885 = vmatpush3.bf16.msra.mxu0 %v22156_v36  ;;  %16251 = vmatprep.mubr.f32.mxu0 %v20907_v2 }
0x162a   :  { %17887 = vmatprep.subr.bf16.mxu0 %v22157_v40 }
0x162d   :  { %17889 = vmatpush3.bf16.msra.mxu0 %v22157_v40 }
0x162e   :  { %17891 = vmatprep.subr.bf16.mxu0 %v22158_v24 }
0x1631   :  { %17893 = vmatpush3.bf16.msra.mxu0 %v22158_v24 }
0x1632   :  { %17895 = vmatprep.subr.bf16.mxu0 %v22159_v7 }
0x1635   :  { %17897 = vmatpush3.bf16.msra.mxu0 %v22159_v7 }
0x1636   :  { %17899 = vmatprep.subr.bf16.mxu0 %v22186_v39 }
0x1638   :  { %16252 = vmatmul.mubr.f32.vlgmr.msra.gmra.mrb[18].mxu0 %v20904_v25 }
0x1639   :  { %17901 = vmatpush3.bf16.msra.mxu0 %v22186_v39  ;;  %16270 = vmatprep.mubr.f32.mxu0 %v20895_v26 }
0x163a   :  { %17903 = vmatprep.subr.bf16.mxu0 %v22187_v27 }
0x163d   :  { %17905 = vmatpush3.bf16.msra.mxu0 %v22187_v27  ;;  %v9499_v27 = vsub.f32 %v21010_v35, %v9498_v33 }
0x163e   :  { %17907 = vmatprep.subr.bf16.mxu0 %v22188_v34 }
0x163f   :  { %v9500_v8 = vand.u32 4294901760, %v9499_v27 }
0x1641   :  { %17909 = vmatpush3.bf16.msra.mxu0 %v22188_v34 }
0x1642   :  { %17911 = vmatprep.subr.bf16.mxu0 %v22189_v31 }
0x1645   :  { %17913 = vmatpush3.bf16.msra.mxu0 %v22189_v31  ;;  %v9479_v31 = vand.u32 4294901760, %v9478_v48 }
0x1646   :  { %17915 = vmatprep.subr.bf16.mxu0 %v22156_v36 }
0x1647   :  { %v17954_v20 = vpack.c.bf16 %v9486_v49, %v9479_v31 }
0x1648   :  { %16271 = vmatmul.mubr.f32.vlgmr.msra.gmra.mrb[18].mxu0 %v20893_v55 }
0x1649   :  { %17917 = vmatpush3.bf16.msra.mxu0 %v22156_v36  ;;  %16289 = vmatprep.mubr.f32.mxu0 %v20895_v26  ;;  %v9363_v36 = vand.u32 4294901760, %v9336_v11 }
0x164a   :  { %17919 = vmatprep.subr.bf16.mxu0 %v22157_v40 }
0x164b   :  { %v20976_v1 = vsub.f32 %v9336_v11, %v9363_v36  ;;  %v20980_v60 = vpack.c.bf16 %v9363_v36, %v9360_v23  ;;  %v17970_v36 = vpack.c.bf16 %v20994_v37, %v20998_v18 }
0x164d   :  { %17921 = vmatpush3.bf16.msra.mxu0 %v22157_v40  ;;  %v9449_v40 = vand.u32 4294901760, %v20965_v47  ;;  %v9470_v3 = vand.u32 4294901760, %v20976_v1 }
0x164e   :  { %17923 = vmatprep.subr.bf16.mxu0 %v22158_v24 }
0x164f   :  { %v9471_v32 = vsub.f32 %v20976_v1, %v9470_v3 }
0x1651   :  { %17925 = vmatpush3.bf16.msra.mxu0 %v22158_v24  ;;  %v9456_v24 = vand.u32 4294901760, %v20968_v28  ;;  %v9472_v59 = vand.u32 4294901760, %v9471_v32 }
0x1652   :  { %17927 = vmatprep.subr.bf16.mxu0 %v22159_v7 }
0x1653   :  { %v9457_v61 = vsub.f32 %v20968_v28, %v9456_v24  ;;  %v17950_v39 = vpack.c.bf16 %v9472_v59, %v9465_v43  ;;  %v9942_v28 = vpop.permute.xlu1 %9941 }
0x1654   :  { %v9960_v12 = vand.u32 4294901760, %v9942_v28 }
0x1655   :  { %17929 = vmatpush3.bf16.msra.mxu0 %v22159_v7  ;;  %v9450_v7 = vsub.f32 %v20965_v47, %v9449_v40  ;;  %v9458_v6 = vand.u32 4294901760, %v9457_v61 }
0x1656   :  { %17931 = vmatprep.subr.bf16.mxu0 %v20970_v4 }
0x1657   :  { %v9451_v50 = vand.u32 4294901760, %v9450_v7 }
0x1658   :  { %16290 = vmatmul.mubr.f32.vlgmr.msra.gmra.mrb[18].mxu0 %v20893_v55 }
0x1659   :  { %17933 = vmatpush3.bf16.msra.mxu0 %v20970_v4  ;;  %16308 = vmatprep.mubr.f32.mxu0 %v20915_v5  ;;  %v21014_v5 = vsub.f32 %v9342_v54, %v9372_v42  ;;  %v17946_v21 = vpack.c.bf16 %v9458_v6, %v9451_v50 }
0x165a   :  { %17935 = vmatprep.subr.bf16.mxu0 %v20980_v60 }
0x165b   :  { %v9491_v53 = vand.u32 4294901760, %v21014_v5  ;;  %v17974_v23 = vpack.c.bf16 %v21010_v35, %v21014_v5 }
0x165d   :  { %17937 = vmatpush3.bf16.msra.mxu0 %v20980_v60  ;;  %v9492_v34 = vsub.f32 %v21014_v5, %v9491_v53  ;;  %v18006_v47 = vpack.c.bf16 %v9498_v33, %v9491_v53 }
0x165e   :  { %17939 = vmatprep.subr.bf16.mxu0 %v20996_v51 }
0x165f   :  { %v9493_v11 = vand.u32 4294901760, %v9492_v34 }
0x1661   :  { %17941 = vmatpush3.bf16.msra.mxu0 %v20996_v51  ;;  %v17958_v57 = vpack.c.bf16 %v9500_v8, %v9493_v11 }
0x1662   :  { %17943 = vmatprep.subr.bf16.mxu0 %v21012_v41 }
0x1665   :  { %17945 = vmatpush3.bf16.msra.mxu0 %v21012_v41 }
0x1666   :  { %17947 = vmatprep.subr.bf16.mxu0 %v17946_v21 }
0x1668   :  { %16309 = vmatmul.mubr.f32.vlgmr.msra.gmra.mrb[20].mxu0 %v20913_v15  ;;  %v17966_v15 = vpack.c.bf16 %v20976_v1, %v20978_v38 }
0x1669   :  { %17949 = vmatpush3.bf16.msra.mxu0 %v17946_v21  ;;  %16327 = vmatprep.mubr.f32.mxu0 %v20895_v26 }
0x166a   :  { %17951 = vmatprep.subr.bf16.mxu0 %v17950_v39 }
0x166d   :  { %17953 = vmatpush3.bf16.msra.mxu0 %v17950_v39 }
0x166e   :  { %17955 = vmatprep.subr.bf16.mxu0 %v17954_v20 }
0x1671   :  { %17957 = vmatpush3.bf16.msra.mxu0 %v17954_v20 }
0x1672   :  { %17959 = vmatprep.subr.bf16.mxu0 %v17958_v57 }
0x1675   :  { %17961 = vmatpush3.bf16.msra.mxu0 %v17958_v57 }
0x1676   :  { %17963 = vmatprep.subr.bf16.mxu0 %v17962_v16 }
0x1678   :  { %16328 = vmatmul.mubr.f32.vlgmr.msra.gmra.mrb[20].mxu0 %v20893_v55 }
0x1679   :  { %17965 = vmatpush3.bf16.msra.mxu0 %v17962_v16  ;;  %16346 = vmatprep.mubr.f32.mxu0 %v20901_v46  ;;  %v17994_v46 = vpack.c.bf16 %v9456_v24, %v9449_v40 }
0x167a   :  { %17967 = vmatprep.subr.bf16.mxu0 %v17966_v15 }
0x167d   :  { %17969 = vmatpush3.bf16.msra.mxu0 %v17966_v15 }
0x167e   :  { %17971 = vmatprep.subr.bf16.mxu0 %v17970_v36 }
0x1681   :  { %17973 = vmatpush3.bf16.msra.mxu0 %v17970_v36 }
0x1682   :  { %17975 = vmatprep.subr.bf16.mxu0 %v17974_v23 }
0x1685   :  { %17977 = vmatpush3.bf16.msra.mxu0 %v17974_v23  ;;  %v22191_v23 = vld [vmem:[#allocation65_spill] sm:$0xff] }
0x1686   :  { %17979 = vmatprep.subr.bf16.mxu0 %v20970_v4 }
0x1688   :  { %16347 = vmatmul.mubr.f32.vlgmr.msra.gmra.mrb[20].mxu0 %v20898_v29  ;;  %v17998_v29 = vpack.c.bf16 %v9470_v3, %v9463_v30 }
0x1689   :  { %17981 = vmatpush3.bf16.msra.mxu0 %v20970_v4  ;;  %16365 = vmatprep.mubr.f32.mxu0 %v20907_v2  ;;  %v18002_v2 = vpack.c.bf16 %v9484_v17, %v9477_v56 }
0x168a   :  { %17983 = vmatprep.subr.bf16.mxu0 %v20980_v60 }
0x168d   :  { %17985 = vmatpush3.bf16.msra.mxu0 %v20980_v60 }
0x168e   :  { %17987 = vmatprep.subr.bf16.mxu0 %v20996_v51 }
0x1691   :  { %17989 = vmatpush3.bf16.msra.mxu0 %v20996_v51 }
0x1692   :  { %17991 = vmatprep.subr.bf16.mxu0 %v21012_v41 }
0x1695   :  { %17993 = vmatpush3.bf16.msra.mxu0 %v21012_v41 }
0x1696   :  { %17995 = vmatprep.subr.bf16.mxu0 %v17994_v46 }
0x1698   :  { %16366 = vmatmul.mubr.f32.vlgmr.msra.gmra.mrb[20].mxu0 %v20904_v25  ;;  %v9944_v25 = vpop.permute.xlu0 %9943 }
0x1699   :  { %17997 = vmatpush3.bf16.msra.mxu0 %v17994_v46  ;;  %16384 = vmatprep.mubr.f32.mxu0 %v20895_v26  ;;  %v9963_v19 = vand.u32 4294901760, %v9944_v25 }
0x169a   :  { %17999 = vmatprep.subr.bf16.mxu0 %v17998_v29 }
0x169b   :  { %v21072_v40 = vpack.c.bf16 %v9963_v19, %v9960_v12  ;;  %v21083_v24 = vsub.f32 %v9944_v25, %v9963_v19 }
0x169c   :  { %v9948_v62 = vpop.permute.xlu0 %9947 }
0x169d   :  { %18001 = vmatpush3.bf16.msra.mxu0 %v17998_v29  ;;  %18027 = vmatprep.subr.bf16.mxu1 %v21072_v40  ;;  %v10058_v38 = vand.u32 4294901760, %v21083_v24  ;;  %v9969_v14 = vand.u32 4294901760, %v9948_v62 }
0x169e   :  { %18003 = vmatprep.subr.bf16.mxu0 %v18002_v2  ;;  %18029 = vmatpush3.bf16.msra.mxu1 %v21072_v40 }
0x169f   :  { %v10071_v7 = vsub.f32 %v9948_v62, %v9969_v14 }
0x16a1   :  { %18005 = vmatpush3.bf16.msra.mxu0 %v18002_v2 }
0x16a2   :  { %18007 = vmatprep.subr.bf16.mxu0 %v18006_v47 }
0x16a5   :  { %18009 = vmatpush3.bf16.msra.mxu0 %v18006_v47 }
0x16a6   :  { %18011 = vmatprep.subr.bf16.mxu0 %v20970_v4 }
0x16a8   :  { %16385 = vmatmul.mubr.f32.vlgmr.msra.gmra.mrb[20].mxu0 %v20893_v55 }
0x16a9   :  { %18013 = vmatpush3.bf16.msra.mxu0 %v20970_v4  ;;  %16403 = vmatprep.mubr.f32.mxu0 %v20895_v26  ;;  %v22190_v26 = vld [vmem:[#allocation54_spill] sm:$0xff]  ;;  %v21081_v4 = vsub.f32 %v9942_v28, %v9960_v12 }
0x16aa   :  { %18015 = vmatprep.subr.bf16.mxu0 %v20980_v60 }
0x16ab   :  { %v10051_v1 = vand.u32 4294901760, %v21081_v4  ;;  %v18042_v15 = vpack.c.bf16 %v21083_v24, %v21081_v4 }
0x16ad   :  { %18017 = vmatpush3.bf16.msra.mxu0 %v20980_v60  ;;  %v10052_v63 = vsub.f32 %v21081_v4, %v10051_v1  ;;  %v10059_v60 = vsub.f32 %v21083_v24, %v10058_v38  ;;  %v18058_v36 = vpack.c.bf16 %v10058_v38, %v10051_v1 }
0x16ae   :  { %18019 = vmatprep.subr.bf16.mxu0 %v20996_v51 }
0x16af   :  { %v10053_v30 = vand.u32 4294901760, %v10052_v63  ;;  %v10060_v37 = vand.u32 4294901760, %v10059_v60 }
0x16b1   :  { %18021 = vmatpush3.bf16.msra.mxu0 %v20996_v51  ;;  %v10072_v51 = vand.u32 4294901760, %v10071_v7  ;;  %v18034_v13 = vpack.c.bf16 %v10060_v37, %v10053_v30 }
0x16b2   :  { %18023 = vmatprep.subr.bf16.mxu0 %v21012_v41 }
0x16b3   :  { %v10073_v42 = vsub.f32 %v10071_v7, %v10072_v51 }
0x16b5   :  { %18025 = vmatpush3.bf16.msra.mxu0 %v21012_v41  ;;  %v10074_v17 = vand.u32 4294901760, %v10073_v42 }
0x16b8   :  { %16404 = vmatmul.mubr.f32.vlgmr.msra.gmra.mrb[20].mxu0 %v20893_v55  ;;  %v9946_v55 = vpop.permute.xlu1 %9945 }
0x16b9   :  { %16476 = vmatprep.mubr.f32.mxu0 %v22190_v26  ;;  %v9966_v54 = vand.u32 4294901760, %v9946_v55 }
0x16bb   :  { %v21093_v61 = vpack.c.bf16 %v9969_v14, %v9966_v54  ;;  %v10064_v3 = vsub.f32 %v9946_v55, %v9966_v54 }
0x16bd   :  { %v10065_v18 = vand.u32 4294901760, %v10064_v3  ;;  %18031 = vmatprep.subr.bf16.mxu1 %v21093_v61  ;;  %v18046_v32 = vpack.c.bf16 %v10071_v7, %v10064_v3 }
0x16be   :  { %18033 = vmatpush3.bf16.msra.mxu1 %v21093_v61 }
0x16bf   :  { %v10066_v50 = vsub.f32 %v10064_v3, %v10065_v18  ;;  %18035 = vmatprep.subr.bf16.mxu1 %v18034_v13  ;;  %v18062_v6 = vpack.c.bf16 %v10072_v51, %v10065_v18 }
0x16c1   :  { %v10067_v22 = vand.u32 4294901760, %v10066_v50 }
0x16c3   :  { %v18038_v56 = vpack.c.bf16 %v10074_v17, %v10067_v22 }
0x172b   :  { %v16291_v35 = vpop.f32.mrb[18].mxu0 }
0x172c   :  { %v9311_v41 = vpop.f32.mrb[19].mxu0  ;;  %18794 = vrcp.f32 %v16291_v35 }
0x172d   :  { %18796 = vrcp.f32 %v9311_v41 }
0x1736   :  { %v18795_v5 = vpop.eup %18794 }
0x1737   :  { %v18797_v43 = vpop.eup %18796 }
0x178b   :  { %v16405_v21 = vpop.f32.mrb[20].mxu0 }
0x178c   :  { %v9936_v59 = vmul.f32 %v18795_v5, %v16405_v21  ;;  %v9923_v10 = vpop.f32.mrb[21].mxu0 }
0x178d   :  { %v9935_v48 = vmul.f32 %v18797_v43, %v9923_v10 }
0x178e   :  { %v9957_v33 = vsel %vm111_vm0, %v9936_v59, 0 }
0x178f   :  { %v10038_v53 = vand.u32 4294901760, %v9957_v33  ;;  %v9954_v39 = vsel %vm111_vm0, %v9935_v48, 0 }
0x1790   :  { %v10028_v27 = vand.u32 4294901760, %v9954_v39 }
0x1791   :  { %v10039_v34 = vsub.f32 %v9957_v33, %v10038_v53 }
0x1792   :  { %v10029_v31 = vsub.f32 %v9954_v39, %v10028_v27 }
0x1793   :  { %v10040_v49 = vand.u32 4294901760, %v10039_v34 }
0x1794   :  { %v10030_v20 = vand.u32 4294901760, %v10029_v31 }
0x1795   :  { %v10041_v11 = vsub.f32 %v10039_v34, %v10040_v49 }
0x1796   :  { %v10031_v8 = vsub.f32 %v10029_v31, %v10030_v20 }
0x1797   :  { %v10042_v16 = vand.u32 4294901760, %v10041_v11 }
0x1798   :  { %v10032_v57 = vand.u32 4294901760, %v10031_v8  ;;  %v22194_v8 = vld [vmem:[#allocation58_spill] sm:$0xff] }
0x179a   :  { %16414 = vmatprep.mubr.f32.mxu1 %v10032_v57  ;;  %v22195_v57 = vld [vmem:[#allocation66_spill] sm:$0xff] }
0x179b   :  { %16415 = vmatmul.mubr.f32.vlgmr.msra.gmra.mrb[32].mxu1 %v10042_v16  ;;  %v22196_v16 = vld [vmem:[#allocation51_spill] sm:$0xff] }
0x179c   :  { %18037 = vmatpush3.bf16.msra.mxu1 %v18034_v13  ;;  %16425 = vmatprep.mubr.f32.mxu1 %v10028_v27 }
0x179d   :  { %18039 = vmatprep.subr.bf16.mxu1 %v18038_v56 }
0x17a0   :  { %18041 = vmatpush3.bf16.msra.mxu1 %v18038_v56 }
0x17a1   :  { %18043 = vmatprep.subr.bf16.mxu1 %v18042_v15 }
0x17a3   :  { %16426 = vmatmul.mubr.f32.vlgmr.msra.gmra.mrb[32].mxu1 %v10038_v53 }
0x17a4   :  { %18045 = vmatpush3.bf16.msra.mxu1 %v18042_v15  ;;  %16436 = vmatprep.mubr.f32.mxu1 %v10029_v31  ;;  %v22197_v15 = vld [vmem:[#allocation59_spill] sm:$0xff] }
0x17a5   :  { %18047 = vmatprep.subr.bf16.mxu1 %v18046_v32 }
0x17a8   :  { %18049 = vmatpush3.bf16.msra.mxu1 %v18046_v32 }
0x17a9   :  { %18051 = vmatprep.subr.bf16.mxu1 %v21072_v40 }
0x17ab   :  { %16437 = vmatmul.mubr.f32.vlgmr.msra.gmra.mrb[32].mxu1 %v10039_v34 }
0x17ac   :  { %18053 = vmatpush3.bf16.msra.mxu1 %v21072_v40  ;;  %16447 = vmatprep.mubr.f32.mxu1 %v10030_v20 }
0x17ad   :  { %18055 = vmatprep.subr.bf16.mxu1 %v21093_v61 }
0x17b0   :  { %18057 = vmatpush3.bf16.msra.mxu1 %v21093_v61 }
0x17b1   :  { %18059 = vmatprep.subr.bf16.mxu1 %v18058_v36 }
0x17b3   :  { %16448 = vmatmul.mubr.f32.vlgmr.msra.gmra.mrb[32].mxu1 %v10040_v49 }
0x17b4   :  { %18061 = vmatpush3.bf16.msra.mxu1 %v18058_v36  ;;  %16458 = vmatprep.mubr.f32.mxu1 %v10028_v27 }
0x17b5   :  { %18063 = vmatprep.subr.bf16.mxu1 %v18062_v6 }
0x17b8   :  { %18065 = vmatpush3.bf16.msra.mxu1 %v18062_v6 }
0x17b9   :  { %18067 = vmatprep.subr.bf16.mxu1 %v21072_v40 }
0x17bb   :  { %16459 = vmatmul.mubr.f32.vlgmr.msra.gmra.mrb[32].mxu1 %v10038_v53 }
0x17bc   :  { %18069 = vmatpush3.bf16.msra.mxu1 %v21072_v40  ;;  %16469 = vmatprep.mubr.f32.mxu1 %v10028_v27 }
0x17bd   :  { %18071 = vmatprep.subr.bf16.mxu1 %v21093_v61 }
0x17c0   :  { %18073 = vmatpush3.bf16.msra.mxu1 %v21093_v61 }
0x17c3   :  { %16470 = vmatmul.mubr.f32.vlgmr.msra.gmra.mrb[32].mxu1 %v10038_v53 }
0x17c4   :  { %16518 = vmatprep.mubr.f32.mxu1 %v22191_v23 }
0x1896   :  { %v16471_v46 = vpop.f32.mrb[32].mxu1 }
0x1897   :  { %v21115_v29 = vadd.f32 %v16471_v46, %v20623_v52  ;;  %v10477_v2 = vpop.f32.mrb[33].mxu1 }
0x1898   :  { %v21118_v47 = vadd.f32 %v10477_v2, %v20618_v58  ;;  %v22198_v2 = vld [vmem:[#allocation16_spill] sm:$0xff] }
0x1899   :  { %22192 = vst [vmem:[#allocation55_spill] sm:$0xff] %v21115_v29  ;;  %v10492_v25 = vsel %vm111_vm0, %v21115_v29, 0.0 }
0x189a   :  { %22193 = vst [vmem:[#allocation67_spill] sm:$0xff] %v21118_v47  ;;  %10493 = vadd.xlane.f32.xlu0 %v10492_v25  ;;  %v10489_v28 = vsel %vm111_vm0, %v21118_v47, 0.0  ;;  %v22199_v25 = vld [vmem:[#allocation60_spill] sm:$0xff] }
0x189b   :  { %10490 = vadd.xlane.f32.xlu1 %v10489_v28  ;;  %v22200_v28 = vld [vmem:[#allocation52_spill] sm:$0xff] }
0x1927   :  { %v10494_v19 = vpop.xlane.xlu0 %10493 }
0x1928   :  { %v10496_v12 = vmul.f32 0.03125, %v10494_v19  ;;  %v10491_v40 = vpop.xlane.xlu1 %10490  ;;  %v22201_v19 = vld [vmem:[#allocation61_spill] sm:$0xff] }
0x1929   :  { %v10495_v4 = vmul.f32 0.03125, %v10491_v40  ;;  %v22203_v40 = vld [vmem:[#allocation62_spill] sm:$0xff] }
0x192a   :  { %v10498_v24 = vsub.f32 %v21115_v29, %v10496_v12  ;;  %v22202_v12 = vld [vmem:[#allocation56_spill] sm:$0xff] }
0x192b   :  { %v10497_v52 = vsub.f32 %v21118_v47, %v10495_v4  ;;  %v7460_v47 = vld [vmem:[#allocation8 + $0x148] sm:$0xff] }
0x192c   :  { %v10500_v1 = vmul.f32 %v10498_v24, %v10498_v24 }
0x192d   :  { %v10499_v38 = vmul.f32 %v10497_v52, %v10497_v52 }
0x192e   :  { %v10504_v58 = vsel %vm111_vm0, %v10500_v1, 0.0  ;;  %v22206_v1 = vld [vmem:[#allocation57_spill] sm:$0xff] }
0x192f   :  { %10505 = vadd.xlane.f32.xlu1 %v10504_v58  ;;  %v10501_v63 = vsel %vm111_vm0, %v10499_v38, 0.0  ;;  %v22207_v38 = vld [vmem:[#allocation64_spill] sm:$0xff]  ;;  %v7443_v58 = vld [vmem:[#allocation8 + $0xc0] sm:$0xff] }
0x1930   :  { %10502 = vadd.xlane.f32.xlu0 %v10501_v63  ;;  %v7444_v63 = vld [vmem:[#allocation8 + $0xc8] sm:$0xff] }
0x1940   :  { %10513 = vrot.lane.b32.xlu1 %v10498_v24, %s18944_s19  ;;  %v22204_v24 = vld [vmem:[#allocation53_spill] sm:$0xff] }
0x1946   :  { %10511 = vrot.lane.b32.xlu0 %v10497_v52, %s18944_s19  ;;  %v22205_v52 = vld [vmem:[#allocation63_spill] sm:$0xff] }
0x19bc   :  { %v10506_v60 = vpop.xlane.xlu1 %10505 }
0x19bd   :  { %v10508_v62 = vmul.f32 0.032258064, %v10506_v60  ;;  %v10503_v55 = vpop.xlane.xlu0 %10502  ;;  %v21161_v60 = vld [vmem:[#allocation8 + $0xd0] sm:$0xff] }
0x19be   :  { %v10507_v14 = vmul.f32 0.032258064, %v10503_v55  ;;  %v11585_v55 = vand.u32 4294901760, %v7444_v63 }
0x19bf   :  { %18798 = vrsqrt.f32 %v10508_v62  ;;  %vm10528_vm5 = vcmp.eq.f32.partialorder %v10508_v62, inf  ;;  %v10531_v3 = vand.u32 2147483648, %v10508_v62  ;;  %vm10530_vm7 = vcmp.eq.f32.partialorder %v10508_v62, 0.0 }
0x19c0   :  { %18800 = vrsqrt.f32 %v10507_v14  ;;  %vm10521_vm6 = vcmp.eq.f32.partialorder %v10507_v14, inf  ;;  %v10524_v37 = vand.u32 2147483648, %v10507_v14  ;;  %vm10523_vm8 = vcmp.eq.f32.partialorder %v10507_v14, 0.0  ;;  %v10514_v22 = vpop.permute.xlu1 %10513 }
0x19c1   :  { %v10512_v17 = vpop.permute.xlu0 %10511  ;;  %v10518_v6 = vmul.f32 %v10514_v22, %v20629_v45 }
0x19c2   :  { %v10517_v35 = vmul.f32 %v10512_v17, %v20629_v45  ;;  %v21201_v17 = vld [vmem:[#allocation8 + $0x100] sm:$0xff] }
0x19c9   :  { %v18799_v54 = vpop.eup %18798 }
0x19ca   :  { %v18801_v7 = vpop.eup %18800  ;;  %v10527_v61 = vmul.f32 %v18799_v54, %v10508_v62  ;;  %v11588_v54 = vand.u32 4294901760, %v21161_v60 }
0x19cb   :  { %v10520_v30 = vmul.f32 %v18801_v7, %v10507_v14  ;;  %v21166_v7 = vld [vmem:[#allocation8 + $0xe0] sm:$0xff] }
0x19cc   :  { %v10529_v51 = vsel %vm10528_vm5, %v10508_v62, %v10527_v61  ;;  %v11582_v62 = vand.u32 4294901760, %v7443_v58  ;;  %v21168_v61 = vld [vmem:[#allocation8 + $0xe8] sm:$0xff] }
0x19cd   :  { %v10532_v18 = vsel %vm10530_vm7, %v10531_v3, %v10529_v51  ;;  %v10522_v13 = vsel %vm10521_vm6, %v10507_v14, %v10520_v30  ;;  %v21163_v14 = vld [vmem:[#allocation8 + $0xd8] sm:$0xff] }
0x19ce   :  { %v10534_v42 = vadd.f32 1e-06, %v10532_v18  ;;  %v10525_v50 = vsel %vm10523_vm8, %v10524_v37, %v10522_v13  ;;  %v11591_v3 = vand.u32 4294901760, %v21163_v14  ;;  %v21171_v30 = vpack.c.bf16 %v11585_v55, %v11582_v62  ;;  %v21193_v13 = vld [vmem:[#allocation8 + $0xf0] sm:$0xff] }
0x19cf   :  { %v10533_v32 = vadd.f32 1e-06, %v10525_v50  ;;  %v11597_v37 = vand.u32 4294901760, %v21168_v61  ;;  %v11600_v50 = vand.u32 4294901760, %v21193_v13 }
0x19d0   :  { %18802 = vrcp.f32 %v10534_v42  ;;  %v21179_v51 = vpack.c.bf16 %v11591_v3, %v11588_v54  ;;  %v21195_v42 = vld [vmem:[#allocation8 + $0xf8] sm:$0xff] }
0x19d1   :  { %18804 = vrcp.f32 %v10533_v32  ;;  %v11603_v32 = vand.u32 4294901760, %v21195_v42 }
0x19d3   :  { %v21199_v22 = vpack.c.bf16 %v11603_v32, %v11600_v50 }
0x19da   :  { %v18803_v56 = vpop.eup %18802 }
0x19db   :  { %v18805_v41 = vpop.eup %18804  ;;  %v10538_v5 = vmul.f32 %v18803_v56, %v10518_v6  ;;  %v21203_v6 = vld [vmem:[#allocation8 + $0x108] sm:$0xff]  ;;  %v11606_v56 = vand.u32 4294901760, %v21201_v17 }
0x19dc   :  { %v10536_v21 = vmul.f32 %v18805_v41, %v10517_v35  ;;  %v11609_v35 = vand.u32 4294901760, %v21203_v6 }
0x19dd   :  { %v10540_v43 = vadd.f32 %v10538_v5, %v20675_v9  ;;  %v21211_v5 = vsub.f32 %v7443_v58, %v11582_v62 }
0x19de   :  { %v10539_v59 = vadd.f32 %v10536_v21, %v20675_v9  ;;  %v21209_v41 = vpack.c.bf16 %v11609_v35, %v11606_v56  ;;  %v21213_v21 = vsub.f32 %v7444_v63, %v11585_v55 }
0x19df   :  { %10545 = vrot.lane.b32.xlu0 %v10540_v43, %s18944_s19 }
0x19e0   :  { %10543 = vrot.lane.b32.xlu1 %v10539_v59, %s18944_s19 }
0x19e3   :  { %11555 = vrot.lane.b32.xlu0 %v10540_v43, %s18942_s1  ;;  %v7453_v43 = vld [vmem:[#allocation8 + $0x110] sm:$0xff] }
0x19e4   :  { %11553 = vrot.lane.b32.xlu1 %v10539_v59, %s18942_s1  ;;  %v7454_v59 = vld [vmem:[#allocation8 + $0x118] sm:$0xff] }
0x1a51   :  { %v10546_v10 = vpop.permute.xlu0 %10545 }
0x1a52   :  { %v10553_v48 = vand.u32 4294901760, %v10546_v10  ;;  %v10544_v33 = vpop.permute.xlu1 %10543 }
0x1a53   :  { %v10550_v53 = vand.u32 4294901760, %v10544_v33 }
0x1a54   :  { %v10645_v45 = vsub.f32 %v10546_v10, %v10553_v48  ;;  %v11612_v10 = vand.u32 4294901760, %v7453_v43 }
0x1a55   :  { %v18074_v39 = vpack.c.bf16 %v10553_v48, %v10550_v53  ;;  %v10638_v27 = vsub.f32 %v10544_v33, %v10550_v53  ;;  %v11615_v48 = vand.u32 4294901760, %v7454_v59  ;;  %v22045_v33 = vand.u32 4294901760, %v21211_v5 }
0x1a56   :  { %v10646_v34 = vand.u32 4294901760, %v10645_v45  ;;  %v22044_v53 = vand.u32 4294901760, %v21213_v21 }
0x1a57   :  { %v10639_v31 = vand.u32 4294901760, %v10638_v27  ;;  %18075 = vmatprep.subr.bf16.mxu0 %v18074_v39  ;;  %18099 = vmatprep.subr.bf16.mxu1 %v18074_v39  ;;  %v18082_v46 = vpack.c.bf16 %v10645_v45, %v10638_v27 }
0x1a58   :  { %v10647_v9 = vsub.f32 %v10645_v45, %v10646_v34  ;;  %18077 = vmatpush3.bf16.msra.mxu0 %v18074_v39  ;;  %18101 = vmatpush3.bf16.msra.mxu1 %v18074_v39  ;;  %v21219_v45 = vpack.c.bf16 %v11615_v48, %v11612_v10 }
0x1a59   :  { %v10640_v49 = vsub.f32 %v10638_v27, %v10639_v31  ;;  %v18090_v4 = vpack.c.bf16 %v10646_v34, %v10639_v31  ;;  %v11689_v27 = vsub.f32 %v21213_v21, %v22044_v53  ;;  %v7458_v53 = vld [vmem:[#allocation8 + $0x138] sm:$0xff] }
0x1a5a   :  { %v10648_v20 = vand.u32 4294901760, %v10647_v9 }
0x1a5b   :  { %v10641_v11 = vand.u32 4294901760, %v10640_v49  ;;  %16477 = vmatmul.mubr.f32.vlgmr.msra.gmra.mrb[22].mxu0 %v22194_v8  ;;  %16519 = vmatmul.mubr.f32.vlgmr.msra.gmra.mrb[34].mxu1 %v22195_v57  ;;  %v11690_v31 = vand.u32 4294901760, %v11689_v27  ;;  %v21251_v27 = vsub.f32 %v21201_v17, %v11606_v56 }
0x1a5c   :  { %16483 = vmatprep.mubr.f32.mxu0 %v22196_v16  ;;  %16525 = vmatprep.mubr.f32.mxu1 %v22197_v15 }
0x1a5d   :  { %v18078_v36 = vpack.c.bf16 %v10648_v20, %v10641_v11 }
0x1a5f   :  { %18079 = vmatprep.subr.bf16.mxu0 %v18078_v36  ;;  %18103 = vmatprep.subr.bf16.mxu1 %v18078_v36 }
0x1a60   :  { %18081 = vmatpush3.bf16.msra.mxu0 %v18078_v36  ;;  %18105 = vmatpush3.bf16.msra.mxu1 %v18078_v36 }
0x1a61   :  { %18083 = vmatprep.subr.bf16.mxu0 %v18082_v46  ;;  %18107 = vmatprep.subr.bf16.mxu1 %v18082_v46 }
0x1a63   :  { %16484 = vmatmul.mubr.f32.vlgmr.msra.gmra.mrb[22].mxu0 %v22198_v2  ;;  %16526 = vmatmul.mubr.f32.vlgmr.msra.gmra.mrb[34].mxu1 %v22199_v25 }
0x1a64   :  { %18085 = vmatpush3.bf16.msra.mxu0 %v18082_v46  ;;  %16490 = vmatprep.mubr.f32.mxu0 %v22200_v28 }
0x1a65   :  { %18109 = vmatpush3.bf16.msra.mxu1 %v18082_v46  ;;  %16532 = vmatprep.mubr.f32.mxu1 %v22201_v19  ;;  %v21235_v46 = vsub.f32 %v21193_v13, %v11600_v50 }
0x1a66   :  { %18087 = vmatprep.subr.bf16.mxu0 %v18074_v39  ;;  %18111 = vmatprep.subr.bf16.mxu1 %v18074_v39 }
0x1a67   :  { %v22041_v62 = vand.u32 4294901760, %v21235_v46 }
0x1a6b   :  { %16491 = vmatmul.mubr.f32.vlgmr.msra.gmra.mrb[22].mxu0 %v22202_v12  ;;  %16533 = vmatmul.mubr.f32.vlgmr.msra.gmra.mrb[34].mxu1 %v22203_v40 }
0x1a6c   :  { %18089 = vmatpush3.bf16.msra.mxu0 %v18074_v39  ;;  %18113 = vmatpush3.bf16.msra.mxu1 %v18074_v39 }
0x1a6d   :  { %16497 = vmatprep.mubr.f32.mxu0 %v22204_v24  ;;  %18091 = vmatprep.subr.bf16.mxu0 %v18090_v4 }
0x1a6e   :  { %16539 = vmatprep.mubr.f32.mxu1 %v22205_v52  ;;  %18115 = vmatprep.subr.bf16.mxu1 %v18090_v4 }
0x1a73   :  { %16498 = vmatmul.mubr.f32.vlgmr.msra.gmra.mrb[22].mxu0 %v22206_v1  ;;  %16540 = vmatmul.mubr.f32.vlgmr.msra.gmra.mrb[34].mxu1 %v22207_v38 }
0x1a74   :  { %18093 = vmatpush3.bf16.msra.mxu0 %v18090_v4  ;;  %18117 = vmatpush3.bf16.msra.mxu1 %v18090_v4  ;;  %v21238_v4 = vsub.f32 %v21195_v42, %v11603_v32  ;;  %v21254_v32 = vsub.f32 %v21203_v6, %v11609_v35 }
0x1a75   :  { %16504 = vmatprep.mubr.f32.mxu0 %v22196_v16  ;;  %18095 = vmatprep.subr.bf16.mxu0 %v18074_v39 }
0x1a76   :  { %16546 = vmatprep.mubr.f32.mxu1 %v22197_v15  ;;  %18119 = vmatprep.subr.bf16.mxu1 %v18074_v39  ;;  %v22037_v55 = vand.u32 4294901760, %v21238_v4 }
0x1a78   :  { %v11731_v50 = vsub.f32 %v21238_v4, %v22037_v55 }
0x1a7b   :  { %16505 = vmatmul.mubr.f32.vlgmr.msra.gmra.mrb[22].mxu0 %v22198_v2  ;;  %16547 = vmatmul.mubr.f32.vlgmr.msra.gmra.mrb[34].mxu1 %v22199_v25 }
0x1a7c   :  { %18097 = vmatpush3.bf16.msra.mxu0 %v18074_v39  ;;  %18121 = vmatpush3.bf16.msra.mxu1 %v18074_v39  ;;  %v11682_v39 = vsub.f32 %v21211_v5, %v22045_v33  ;;  %v7457_v33 = vld [vmem:[#allocation8 + $0x130] sm:$0xff] }
0x1a7d   :  { %16511 = vmatprep.mubr.f32.mxu0 %v22196_v16  ;;  %16553 = vmatprep.mubr.f32.mxu1 %v22197_v15 }
0x1a7e   :  { %18123 = vmatprep.subr.bf16.mxu0 %v21171_v30  ;;  %v11683_v34 = vand.u32 4294901760, %v11682_v39  ;;  %v11724_v39 = vsub.f32 %v21235_v46, %v22041_v62 }
0x1a80   :  { %v21230_v36 = vpack.c.bf16 %v11690_v31, %v11683_v34  ;;  %v22036_v34 = vand.u32 4294901760, %v21251_v27  ;;  %v22040_v31 = vand.u32 4294901760, %v21254_v32 }
0x1a82   :  { %v11738_v56 = vsub.f32 %v21251_v27, %v22036_v34  ;;  %v11745_v35 = vsub.f32 %v21254_v32, %v22040_v31 }
0x1a83   :  { %16512 = vmatmul.mubr.f32.vlgmr.msra.gmra.mrb[22].mxu0 %v22198_v2  ;;  %16554 = vmatmul.mubr.f32.vlgmr.msra.gmra.mrb[34].mxu1 %v22199_v25 }
0x1a84   :  { %16722 = vmatprep.mubr.f32.mxu1 %v22190_v26  ;;  %v11594_v26 = vand.u32 4294901760, %v21166_v7  ;;  %18125 = vmatpush3.bf16.msra.mxu0 %v21171_v30 }
0x1a85   :  { %18127 = vmatprep.subr.bf16.mxu0 %v21179_v51 }
0x1a86   :  { %v21188_v18 = vpack.c.bf16 %v11597_v37, %v11594_v26 }
0x1a88   :  { %18129 = vmatpush3.bf16.msra.mxu0 %v21179_v51 }
0x1a89   :  { %18131 = vmatprep.subr.bf16.mxu0 %v21188_v18 }
0x1a8c   :  { %18133 = vmatpush3.bf16.msra.mxu0 %v21188_v18 }
0x1a8d   :  { %18135 = vmatprep.subr.bf16.mxu0 %v21199_v22 }
0x1a90   :  { %18137 = vmatpush3.bf16.msra.mxu0 %v21199_v22 }
0x1a91   :  { %18139 = vmatprep.subr.bf16.mxu0 %v21209_v41 }
0x1a94   :  { %18141 = vmatpush3.bf16.msra.mxu0 %v21209_v41 }
0x1a95   :  { %18143 = vmatprep.subr.bf16.mxu0 %v21219_v45 }
0x1a98   :  { %18145 = vmatpush3.bf16.msra.mxu0 %v21219_v45 }
0x1a99   :  { %18147 = vmatprep.subr.bf16.mxu0 %v21230_v36 }
0x1b56   :  { %v16513_v9 = vpop.f32.mrb[22].mxu0  ;;  %v16555_v49 = vpop.f32.mrb[34].mxu1 }
0x1b57   :  { %11563 = vrot.lane.b32.xlu0 %v16555_v49, %s18944_s19  ;;  %v11041_v20 = vpop.f32.mrb[23].mxu0  ;;  %v11543_v11 = vpop.f32.mrb[35].mxu1 }
0x1b58   :  { %11561 = vrot.lane.b32.xlu1 %v11543_v11, %s18944_s19  ;;  %v21270_v11 = vsub.f32 %v7453_v43, %v11612_v10 }
0x1b5b   :  { %13255 = vrot.lane.b32.xlu0 %v7444_v63, %s18944_s19  ;;  %v11732_v63 = vand.u32 4294901760, %v11731_v50  ;;  %v11739_v50 = vand.u32 4294901760, %v11738_v56 }
0x1b5c   :  { %13253 = vrot.lane.b32.xlu1 %v7443_v58, %s18944_s19  ;;  %v11725_v58 = vand.u32 4294901760, %v11724_v39  ;;  %v21274_v39 = vsub.f32 %v7454_v59, %v11615_v48 }
0x1b5e   :  { %v21262_v49 = vpack.c.bf16 %v11732_v63, %v11725_v58  ;;  %v11746_v58 = vand.u32 4294901760, %v11745_v35  ;;  %v22039_v63 = vand.u32 4294901760, %v21270_v11  ;;  %v22038_v34 = vand.u32 4294901760, %v21274_v39 }
0x1b5f   :  { %13259 = vrot.lane.b32.xlu0 %v21163_v14, %s18944_s19 }
0x1b60   :  { %13257 = vrot.lane.b32.xlu1 %v21161_v60, %s18944_s19  ;;  %v21280_v55 = vpack.c.bf16 %v11746_v58, %v11739_v50  ;;  %v11752_v10 = vsub.f32 %v21270_v11, %v22039_v63  ;;  %v11759_v48 = vsub.f32 %v21274_v39, %v22038_v34  ;;  %v21314_v58 = vpack.c.bf16 %v21274_v39, %v21270_v11 }
0x1b62   :  { %v11753_v56 = vand.u32 4294901760, %v11752_v10  ;;  %v11760_v35 = vand.u32 4294901760, %v11759_v48  ;;  %v21319_v10 = vsub.f32 %v21161_v60, %v11588_v54  ;;  %v21334_v60 = vsub.f32 %v21166_v7, %v11594_v26 }
0x1b63   :  { %13263 = vrot.lane.b32.xlu0 %v21168_v61, %s18944_s19 }
0x1b64   :  { %13261 = vrot.lane.b32.xlu1 %v21166_v7, %s18944_s19  ;;  %v21294_v50 = vpack.c.bf16 %v11760_v35, %v11753_v56  ;;  %v22043_v35 = vand.u32 4294901760, %v21319_v10 }
0x1b66   :  { %v11696_v7 = vsub.f32 %v21319_v10, %v22043_v35 }
0x1b67   :  { %13267 = vrot.lane.b32.xlu0 %v21195_v42, %s18944_s19  ;;  %v21300_v42 = vpack.c.bf16 %v21213_v21, %v21211_v5 }
0x1b68   :  { %13265 = vrot.lane.b32.xlu1 %v21193_v13, %s18944_s19  ;;  %v21306_v13 = vpack.c.bf16 %v21238_v4, %v21235_v46 }
0x1b6b   :  { %13271 = vrot.lane.b32.xlu0 %v21203_v6, %s18944_s19  ;;  %v21310_v6 = vpack.c.bf16 %v21254_v32, %v21251_v27 }
0x1b6c   :  { %13269 = vrot.lane.b32.xlu1 %v21201_v17, %s18944_s19  ;;  %v11556_v17 = vpop.permute.xlu0 %11555 }
0x1b6d   :  { %v11568_v48 = vsel %vm111_vm0, %v16513_v9, %v11556_v17 }
0x1b6f   :  { %13275 = vrot.lane.b32.xlu0 %v7454_v59, %s18944_s19  ;;  %v11554_v59 = vpop.permute.xlu1 %11553 }
0x1b70   :  { %13273 = vrot.lane.b32.xlu1 %v7453_v43, %s18944_s19  ;;  %v21324_v43 = vsub.f32 %v21163_v14, %v11591_v3  ;;  %v11567_v63 = vsel %vm111_vm0, %v11041_v20, %v11554_v59  ;;  %v21339_v14 = vsub.f32 %v21168_v61, %v11597_v37  ;;  %v22049_v37 = vand.u32 4294901760, %v21334_v60  ;;  %v7456_v59 = vld [vmem:[#allocation8 + $0x128] sm:$0xff] }
0x1b72   :  { %v22042_v34 = vand.u32 4294901760, %v21324_v43 }
0x1b73   :  { %13279 = vrot.lane.b32.xlu0 %v7456_v59, %s18944_s19 }
0x1b74   :  { %v11703_v61 = vsub.f32 %v21324_v43, %v22042_v34 }
0x1b76   :  { %v11704_v34 = vand.u32 4294901760, %v11703_v61 }
0x1b77   :  { %13283 = vrot.lane.b32.xlu0 %v7458_v53, %s18944_s19  ;;  %v7464_v53 = vld [vmem:[#allocation8 + $0x168] sm:$0xff] }
0x1b7b   :  { %13287 = vrot.lane.b32.xlu0 %v7460_v47, %s18944_s19  ;;  %v18178_v47 = vpack.c.bf16 %v21339_v14, %v21334_v60 }
0x1bc9   :  { %v11564_v56 = vpop.permute.xlu0 %11563 }
0x1bca   :  { %v11570_v31 = vsel %vm2005_vm10, %v11568_v48, %v11564_v56  ;;  %v11562_v62 = vpop.permute.xlu1 %11561  ;;  %v7455_v48 = vld [vmem:[#allocation8 + $0x120] sm:$0xff] }
0x1bcb   :  { %v11579_v54 = vsel %vm4858_vm15, %v11570_v31, 0  ;;  %v11569_v3 = vsel %vm2005_vm10, %v11567_v63, %v11562_v62  ;;  %v22050_v62 = vand.u32 4294901760, %v21339_v14  ;;  %13277 = vrot.lane.b32.xlu1 %v7455_v48, %s18944_s19 }
0x1bcc   :  { %v21343_v9 = vand.u32 4294901760, %v11579_v54  ;;  %v11576_v20 = vsel %vm4858_vm15, %v11569_v3, 0  ;;  %v11697_v3 = vand.u32 4294901760, %v11696_v7 }
0x1bcd   :  { %v21346_v17 = vand.u32 4294901760, %v11576_v20  ;;  %v11717_v35 = vsub.f32 %v21339_v14, %v22050_v62 }
0x1bce   :  { %v21352_v26 = vsub.f32 %v11579_v54, %v21343_v9 }
0x1bcf   :  { %v21360_v31 = vsub.f32 %v11576_v20, %v21346_v17  ;;  %v11710_v20 = vsub.f32 %v21334_v60, %v22049_v37  ;;  %13281 = vrot.lane.b32.xlu1 %v7457_v33, %s18944_s19  ;;  %v11718_v29 = vand.u32 4294901760, %v11717_v35  ;;  %v7459_v37 = vld [vmem:[#allocation8 + $0x140] sm:$0xff]  ;;  %v7461_v33 = vld [vmem:[#allocation8 + $0x150] sm:$0xff]  ;;  %v22217_v35 = vand.u32 4294901760, %v21251_v27 }
0x1bd0   :  { %v22046_v63 = vand.u32 4294901760, %v21352_v26 }
0x1bd1   :  { %v11660_v56 = vand.u32 4294901760, %v21360_v31  ;;  %v11711_v61 = vand.u32 4294901760, %v11710_v20 }
0x1bd2   :  { %v11671_v54 = vsub.f32 %v21352_v26, %v22046_v63  ;;  %v18150_v63 = vpack.c.bf16 %v11704_v34, %v11697_v3 }
0x1bd3   :  { %v11661_v7 = vsub.f32 %v21360_v31, %v11660_v56  ;;  %v18154_v62 = vpack.c.bf16 %v11718_v29, %v11711_v61  ;;  %13285 = vrot.lane.b32.xlu1 %v7459_v37, %s18944_s19  ;;  %v18174_v29 = vpack.c.bf16 %v21324_v43, %v21319_v10 }
0x1bd4   :  { %v11672_v48 = vand.u32 4294901760, %v11671_v54 }
0x1bd5   :  { %v11662_v59 = vand.u32 4294901760, %v11661_v7  ;;  %v7462_v7 = vld [vmem:[#allocation8 + $0x158] sm:$0xff] }
0x1bd6   :  { %13291 = vrot.lane.b32.xlu0 %v7462_v7, %s18944_s19 }
0x1bd7   :  { %16580 = vmatprep.mubr.f32.mxu0 %v11662_v59  ;;  %13289 = vrot.lane.b32.xlu1 %v7461_v33, %s18944_s19 }
0x1bd8   :  { %16581 = vmatmul.mubr.f32.vlgmr.msra.gmra.mrb[24].mxu0 %v11672_v48 }
0x1bd9   :  { %18149 = vmatpush3.bf16.msra.mxu0 %v21230_v36  ;;  %16607 = vmatprep.mubr.f32.mxu0 %v21346_v17  ;;  %v22208_v36 = vand.u32 4294901760, %v21211_v5  ;;  %v22213_v5 = vand.u32 4294901760, %v21334_v60  ;;  %v22219_v60 = vand.u32 4294901760, %v21270_v11 }
0x1bda   :  { %18151 = vmatprep.subr.bf16.mxu0 %v18150_v63  ;;  %13295 = vrot.lane.b32.xlu0 %v7464_v53, %s18944_s19 }
0x1bdd   :  { %18153 = vmatpush3.bf16.msra.mxu0 %v18150_v63 }
0x1bde   :  { %18155 = vmatprep.subr.bf16.mxu0 %v18154_v62 }
0x1be1   :  { %18157 = vmatpush3.bf16.msra.mxu0 %v18154_v62 }
0x1be2   :  { %18159 = vmatprep.subr.bf16.mxu0 %v21262_v49 }
0x1be5   :  { %18161 = vmatpush3.bf16.msra.mxu0 %v21262_v49  ;;  %v22210_v49 = vand.u32 4294901760, %v21319_v10  ;;  %v22216_v10 = vand.u32 4294901760, %v21238_v4  ;;  %v13254_v4 = vpop.permute.xlu1 %13253 }
0x1be6   :  { %18163 = vmatprep.subr.bf16.mxu0 %v21280_v55 }
0x1be9   :  { %18165 = vmatpush3.bf16.msra.mxu0 %v21280_v55  ;;  %v22209_v55 = vand.u32 4294901760, %v21213_v21  ;;  %v22214_v21 = vand.u32 4294901760, %v21339_v14  ;;  %v22220_v14 = vand.u32 4294901760, %v21274_v39 }
0x1bea   :  { %18167 = vmatprep.subr.bf16.mxu0 %v21294_v50 }
0x1beb   :  { %v18218_v34 = vpack.c.bf16 %v22209_v55, %v22208_v36  ;;  %v18238_v62 = vpack.c.bf16 %v22220_v14, %v22219_v60 }
0x1bed   :  { %18169 = vmatpush3.bf16.msra.mxu0 %v21294_v50  ;;  %v22211_v50 = vand.u32 4294901760, %v21324_v43 }
0x1bee   :  { %18171 = vmatprep.subr.bf16.mxu0 %v21300_v42 }
0x1bf0   :  { %16608 = vmatmul.mubr.f32.vlgmr.msra.gmra.mrb[24].mxu0 %v21343_v9 }
0x1bf1   :  { %18173 = vmatpush3.bf16.msra.mxu0 %v21300_v42  ;;  %16634 = vmatprep.mubr.f32.mxu0 %v21360_v31  ;;  %v18222_v42 = vpack.c.bf16 %v22211_v50, %v22210_v49 }
0x1bf2   :  { %18175 = vmatprep.subr.bf16.mxu0 %v18174_v29 }
0x1bf5   :  { %18177 = vmatpush3.bf16.msra.mxu0 %v18174_v29 }
0x1bf6   :  { %18179 = vmatprep.subr.bf16.mxu0 %v18178_v47 }
0x1bf9   :  { %18181 = vmatpush3.bf16.msra.mxu0 %v18178_v47 }
0x1bfa   :  { %18183 = vmatprep.subr.bf16.mxu0 %v21306_v13 }
0x1bfd   :  { %18185 = vmatpush3.bf16.msra.mxu0 %v21306_v13  ;;  %v22212_v13 = vand.u32 4294901760, %v21352_v26 }
0x1bfe   :  { %18187 = vmatprep.subr.bf16.mxu0 %v21310_v6 }
0x1c01   :  { %18189 = vmatpush3.bf16.msra.mxu0 %v21310_v6  ;;  %v18226_v6 = vpack.c.bf16 %v22214_v21, %v22213_v5 }
0x1c02   :  { %18191 = vmatprep.subr.bf16.mxu0 %v21314_v58 }
0x1c05   :  { %18193 = vmatpush3.bf16.msra.mxu0 %v21314_v58  ;;  %v22215_v58 = vand.u32 4294901760, %v21235_v46 }
0x1c06   :  { %18195 = vmatprep.subr.bf16.mxu0 %v21171_v30 }
0x1c07   :  { %v18230_v43 = vpack.c.bf16 %v22216_v10, %v22215_v58 }
0x1c08   :  { %16635 = vmatmul.mubr.f32.vlgmr.msra.gmra.mrb[24].mxu0 %v21352_v26  ;;  %v22218_v26 = vand.u32 4294901760, %v21254_v32  ;;  %v13332_v32 = vand.u32 4294901760, %v13254_v4 }
0x1c09   :  { %18197 = vmatpush3.bf16.msra.mxu0 %v21171_v30  ;;  %16661 = vmatprep.mubr.f32.mxu0 %v11660_v56 }
0x1c0a   :  { %18199 = vmatprep.subr.bf16.mxu0 %v21179_v51  ;;  %v18234_v37 = vpack.c.bf16 %v22218_v26, %v22217_v35 }
0x1c0d   :  { %18201 = vmatpush3.bf16.msra.mxu0 %v21179_v51 }
0x1c0e   :  { %18203 = vmatprep.subr.bf16.mxu0 %v21188_v18 }
0x1c11   :  { %18205 = vmatpush3.bf16.msra.mxu0 %v21188_v18 }
0x1c12   :  { %18207 = vmatprep.subr.bf16.mxu0 %v21199_v22 }
0x1c15   :  { %18209 = vmatpush3.bf16.msra.mxu0 %v21199_v22 }
0x1c16   :  { %18211 = vmatprep.subr.bf16.mxu0 %v21209_v41 }
0x1c19   :  { %18213 = vmatpush3.bf16.msra.mxu0 %v21209_v41 }
0x1c1a   :  { %18215 = vmatprep.subr.bf16.mxu0 %v21219_v45 }
0x1c1d   :  { %18217 = vmatpush3.bf16.msra.mxu0 %v21219_v45 }
0x1c1e   :  { %18219 = vmatprep.subr.bf16.mxu0 %v18218_v34 }
0x1c20   :  { %16662 = vmatmul.mubr.f32.vlgmr.msra.gmra.mrb[24].mxu0 %v22212_v13 }
0x1c21   :  { %18221 = vmatpush3.bf16.msra.mxu0 %v18218_v34  ;;  %16688 = vmatprep.mubr.f32.mxu0 %v21346_v17 }
0x1c22   :  { %18223 = vmatprep.subr.bf16.mxu0 %v18222_v42 }
0x1c25   :  { %18225 = vmatpush3.bf16.msra.mxu0 %v18222_v42 }
0x1c26   :  { %18227 = vmatprep.subr.bf16.mxu0 %v18226_v6 }
0x1c29   :  { %18229 = vmatpush3.bf16.msra.mxu0 %v18226_v6 }
0x1c2a   :  { %18231 = vmatprep.subr.bf16.mxu0 %v18230_v43 }
0x1c2d   :  { %18233 = vmatpush3.bf16.msra.mxu0 %v18230_v43 }
0x1c2e   :  { %18235 = vmatprep.subr.bf16.mxu0 %v18234_v37 }
0x1c31   :  { %18237 = vmatpush3.bf16.msra.mxu0 %v18234_v37 }
0x1c32   :  { %18239 = vmatprep.subr.bf16.mxu0 %v18238_v62 }
0x1c35   :  { %18241 = vmatpush3.bf16.msra.mxu0 %v18238_v62 }
0x1c36   :  { %18243 = vmatprep.subr.bf16.mxu0 %v21171_v30 }
0x1c38   :  { %16689 = vmatmul.mubr.f32.vlgmr.msra.gmra.mrb[24].mxu0 %v21343_v9 }
0x1c39   :  { %18245 = vmatpush3.bf16.msra.mxu0 %v21171_v30  ;;  %16715 = vmatprep.mubr.f32.mxu0 %v21346_v17  ;;  %v7465_v30 = vld [vmem:[#allocation8 + $0x170] sm:$0xff] }
0x1c3a   :  { %18247 = vmatprep.subr.bf16.mxu0 %v21179_v51  ;;  %13297 = vrot.lane.b32.xlu0 %v7465_v30, %s18944_s19 }
0x1c3d   :  { %18249 = vmatpush3.bf16.msra.mxu0 %v21179_v51  ;;  %v7463_v51 = vld [vmem:[#allocation8 + $0x160] sm:$0xff] }
0x1c3e   :  { %18251 = vmatprep.subr.bf16.mxu0 %v21188_v18  ;;  %13293 = vrot.lane.b32.xlu1 %v7463_v51, %s18944_s19 }
0x1c41   :  { %18253 = vmatpush3.bf16.msra.mxu0 %v21188_v18  ;;  %v13256_v18 = vpop.permute.xlu0 %13255 }
0x1c42   :  { %18255 = vmatprep.subr.bf16.mxu0 %v21199_v22 }
0x1c45   :  { %18257 = vmatpush3.bf16.msra.mxu0 %v21199_v22  ;;  %v13335_v22 = vand.u32 4294901760, %v13256_v18  ;;  %v13260_v46 = vpop.permute.xlu0 %13259 }
0x1c46   :  { %18259 = vmatprep.subr.bf16.mxu0 %v21209_v41 }
0x1c47   :  { %v21463_v27 = vsub.f32 %v13256_v18, %v13335_v22  ;;  %v21465_v11 = vpack.c.bf16 %v13335_v22, %v13332_v32 }
0x1c49   :  { %18261 = vmatpush3.bf16.msra.mxu0 %v21209_v41  ;;  %v13341_v41 = vand.u32 4294901760, %v13260_v46  ;;  %v13264_v39 = vpop.permute.xlu0 %13263 }
0x1c4a   :  { %18263 = vmatprep.subr.bf16.mxu0 %v21219_v45  ;;  %v13347_v63 = vand.u32 4294901760, %v13264_v39 }
0x1c4b   :  { %v21469_v17 = vsub.f32 %v13260_v46, %v13341_v41 }
0x1c4c   :  { %v21478_v48 = vsub.f32 %v13264_v39, %v13347_v63 }
0x1c4d   :  { %18265 = vmatpush3.bf16.msra.mxu0 %v21219_v45  ;;  %v21467_v45 = vsub.f32 %v13254_v4, %v13332_v32  ;;  %v13268_v20 = vpop.permute.xlu0 %13267 }
0x1c4e   :  { %18386 = vmatprep.subr.bf16.mxu0 %v22145_v44  ;;  %v13353_v7 = vand.u32 4294901760, %v13268_v20 }
0x1c4f   :  { %v18387_v31 = vpack.c.bf16 %v21463_v27, %v21467_v45 }
0x1c50   :  { %16716 = vmatmul.mubr.f32.vlgmr.msra.gmra.mrb[24].mxu0 %v21343_v9  ;;  %v13258_v9 = vpop.permute.xlu1 %13257  ;;  %v21487_v55 = vsub.f32 %v13268_v20, %v13353_v7 }
0x1c51   :  { %v13338_v56 = vand.u32 4294901760, %v13258_v9  ;;  %18388 = vmatpush1.bf16.msra.mxu0 %v18387_v31  ;;  %v13272_v47 = vpop.permute.xlu0 %13271 }
0x1c52   :  { %18389 = vmatprep.subr.bf16.mxu0 %v22145_v44  ;;  %v13359_v49 = vand.u32 4294901760, %v13272_v47 }
0x1c53   :  { %v21473_v3 = vpack.c.bf16 %v13341_v41, %v13338_v56  ;;  %v21475_v54 = vsub.f32 %v13258_v9, %v13338_v56 }
0x1c54   :  { %v13262_v59 = vpop.permute.xlu1 %13261  ;;  %v21496_v6 = vsub.f32 %v13272_v47, %v13359_v49 }
0x1c55   :  { %v18390_v61 = vpack.c.bf16 %v21469_v17, %v21475_v54  ;;  %v13344_v33 = vand.u32 4294901760, %v13262_v59  ;;  %v13276_v5 = vpop.permute.xlu0 %13275 }
0x1c56   :  { %v13365_v10 = vand.u32 4294901760, %v13276_v5 }
0x1c57   :  { %v21482_v53 = vpack.c.bf16 %v13347_v63, %v13344_v33  ;;  %v21484_v29 = vsub.f32 %v13262_v59, %v13344_v33  ;;  %18391 = vmatpush1.bf16.msra.mxu0 %v18390_v61 }
0x1c58   :  { %v13266_v36 = vpop.permute.xlu1 %13265  ;;  %18392 = vmatprep.subr.bf16.mxu0 %v22145_v44  ;;  %v21505_v14 = vsub.f32 %v13276_v5, %v13365_v10 }
0x1c59   :  { %v18393_v34 = vpack.c.bf16 %v21478_v48, %v21484_v29  ;;  %v13350_v50 = vand.u32 4294901760, %v13266_v36  ;;  %v13280_v37 = vpop.permute.xlu0 %13279 }
0x1c5a   :  { %v13371_v30 = vand.u32 4294901760, %v13280_v37 }
0x1c5b   :  { %v21491_v42 = vpack.c.bf16 %v13353_v7, %v13350_v50  ;;  %v21493_v13 = vsub.f32 %v13266_v36, %v13350_v50  ;;  %18394 = vmatpush1.bf16.msra.mxu0 %v18393_v34 }
0x1c5c   :  { %v13270_v21 = vpop.permute.xlu1 %13269  ;;  %18395 = vmatprep.subr.bf16.mxu0 %v22145_v44  ;;  %v21514_v41 = vsub.f32 %v13280_v37, %v13371_v30 }
0x1c5d   :  { %v18396_v58 = vpack.c.bf16 %v21487_v55, %v21493_v13  ;;  %v13356_v43 = vand.u32 4294901760, %v13270_v21  ;;  %v13284_v46 = vpop.permute.xlu0 %13283 }
0x1c5e   :  { %v13377_v39 = vand.u32 4294901760, %v13284_v46 }
0x1c5f   :  { %v21500_v35 = vpack.c.bf16 %v13359_v49, %v13356_v43  ;;  %v21502_v26 = vsub.f32 %v13270_v21, %v13356_v43  ;;  %18397 = vmatpush1.bf16.msra.mxu0 %v18396_v58 }
0x1c60   :  { %v13274_v60 = vpop.permute.xlu1 %13273  ;;  %18398 = vmatprep.subr.bf16.mxu0 %v22145_v44  ;;  %v21523_v59 = vsub.f32 %v13284_v46, %v13377_v39 }
0x1c61   :  { %v18399_v62 = vpack.c.bf16 %v21496_v6, %v21502_v26  ;;  %v13362_v51 = vand.u32 4294901760, %v13274_v60  ;;  %v13288_v56 = vpop.permute.xlu0 %13287 }
0x1c62   :  { %v13383_v7 = vand.u32 4294901760, %v13288_v56 }
0x1c63   :  { %v21509_v18 = vpack.c.bf16 %v13365_v10, %v13362_v51  ;;  %v21511_v22 = vsub.f32 %v13274_v60, %v13362_v51  ;;  %18400 = vmatpush1.bf16.msra.mxu0 %v18399_v62 }
0x1c64   :  { %v13278_v4 = vpop.permute.xlu1 %13277  ;;  %18401 = vmatprep.subr.bf16.mxu0 %v22145_v44  ;;  %v21532_v50 = vsub.f32 %v13288_v56, %v13383_v7 }
0x1c65   :  { %v18402_v32 = vpack.c.bf16 %v21505_v14, %v21511_v22  ;;  %v13368_v9 = vand.u32 4294901760, %v13278_v4  ;;  %v13292_v34 = vpop.permute.xlu0 %13291 }
0x1c66   :  { %v13389_v21 = vand.u32 4294901760, %v13292_v34 }
0x1c67   :  { %v21518_v31 = vpack.c.bf16 %v13371_v30, %v13368_v9  ;;  %v21520_v63 = vsub.f32 %v13278_v4, %v13368_v9  ;;  %18403 = vmatpush1.bf16.msra.mxu0 %v18402_v32 }
0x1c68   :  { %v13282_v20 = vpop.permute.xlu1 %13281  ;;  %18404 = vmatprep.subr.bf16.mxu0 %v22145_v44  ;;  %v21541_v60 = vsub.f32 %v13292_v34, %v13389_v21 }
0x1c69   :  { %v18405_v61 = vpack.c.bf16 %v21514_v41, %v21520_v63  ;;  %v13374_v33 = vand.u32 4294901760, %v13282_v20  ;;  %v13296_v30 = vpop.permute.xlu0 %13295 }
0x1c6a   :  { %v13395_v46 = vand.u32 4294901760, %v13296_v30 }
0x1c6b   :  { %v21527_v47 = vpack.c.bf16 %v13377_v39, %v13374_v33  ;;  %v21529_v36 = vsub.f32 %v13282_v20, %v13374_v33  ;;  %18406 = vmatpush1.bf16.msra.mxu0 %v18405_v61  ;;  %v11573_v33 = vsub.s32 3, %v22154_v0 }
0x1c6c   :  { %v13286_v49 = vpop.permute.xlu1 %13285  ;;  %18407 = vmatprep.subr.bf16.mxu0 %v22145_v44  ;;  %v21552_v56 = vsub.f32 %v13296_v30, %v13395_v46 }
0x1c6d   :  { %v18408_v5 = vpack.c.bf16 %v21523_v59, %v21529_v36  ;;  %v13380_v58 = vand.u32 4294901760, %v13286_v49 }
0x1c6e   :  { %22221 = vst [vmem:[#allocation17_spill] sm:$0xff] %v21552_v56 }
0x1c6f   :  { %v21536_v10 = vpack.c.bf16 %v13383_v7, %v13380_v58  ;;  %v21538_v43 = vsub.f32 %v13286_v49, %v13380_v58  ;;  %18409 = vmatpush1.bf16.msra.mxu0 %v18408_v5  ;;  %v21565_v49 = vld [vmem:[%s21911_s4] sm:$0xff]  ;;  %s18947_s4 = smov [#allocation10]  }
0x1c70   :  { %v13290_v37 = vpop.permute.xlu1 %13289  ;;  %18410 = vmatprep.subr.bf16.mxu0 %v22145_v44  ;;  %22223 = vst [vmem:[#allocation19_spill] sm:$0xff] %v21565_v49  ;;  %v11574_v5 = vrot.slane %v21565_v49, %v11573_v33  ;;  %s14214_s26 = sshll.u32 %s18947_s4, 4  ;;  %s14215_s26 = int_to_ptr.vmem [resolvable:$true] %s14214_s26 }
0x1c71   :  { %v18411_v62 = vpack.c.bf16 %v21532_v50, %v21538_v43  ;;  %v13386_v51 = vand.u32 4294901760, %v13290_v37  ;;  %s18906_s27 = scalar_lea.vmem %s14215_s26, 256  ;;  %p18911_p5 = scmp.lt.s32.totalorder %s14215_s26, %s14215_s26 }
0x1c72   :  { %p18907_p4 = scmp.ne.s32.totalorder %s14215_s26, %s18906_s27  ;;  %p18912_p6 = scmp.lt.s32.totalorder %s18906_s27, %s18906_s27 }
0x1c73   :  { %v21545_v4 = vpack.c.bf16 %v13389_v21, %v13386_v51  ;;  %v21547_v32 = vsub.f32 %v13290_v37, %v13386_v51  ;;  %18412 = vmatpush1.bf16.msra.mxu0 %v18411_v62 }
0x1c74   :  { %18413 = vmatprep.subr.bf16.mxu0 %v22145_v44  ;;  %p18913_p7 = por %p18912_p6, %p18911_p5 }
0x1c75   :  { %v18414_v39 = vpack.c.bf16 %v21541_v60, %v21547_v32 }
0x1c76   :  { %p18914_p8 = pnand %p18913_p7, %p18907_p4 }
0x1c77   :  { %18415 = vmatpush1.bf16.msra.mxu0 %v18414_v39 }
0x1c78   :  { %18416 = vmatprep.subr.bf16.mxu0 %v22145_v44 }
0x1cb0   :  { %v13294_v9 = vpop.permute.xlu1 %13293 }
0x1cb1   :  { %v13392_v20 = vand.u32 4294901760, %v13294_v9 }
0x1cb3   :  { %v21554_v61 = vpack.c.bf16 %v13395_v46, %v13392_v20  ;;  %v21556_v7 = vsub.f32 %v13294_v9, %v13392_v20  ;;  %v7466_v20 = vld [vmem:[#allocation8 + $0x178] sm:$0xff] }
0x1cb5   :  { %22222 = vst [vmem:[#allocation18_spill] sm:$0xff] %v21556_v7  ;;  %v18417_v34 = vpack.c.bf16 %v21552_v56, %v21556_v7 }
0x1cb7   :  { %18418 = vmatpush1.bf16.msra.mxu0 %v18417_v34 }
0x1cb8   :  { %18419 = vmatprep.subr.bf16.mxu0 %v22145_v44 }
0x1d23   :  { %v16717_v21 = vpop.f32.mrb[24].mxu0 }
0x1d24   :  { %v18534_v58 = vadd.f32 %v16717_v21, %v11574_v5  ;;  %v12203_v37 = vpop.f32.mrb[25].mxu0 }
0x1d25   :  { %v18535_v62 = vadd.f32 %v12203_v37, %v11574_v5 }
0x1d26   :  { %v12214_v30 = vmax.f32 %v18534_v58, 0.0 }
0x1d27   :  { %v12213_v51 = vmax.f32 %v18535_v62, 0.0 }
0x1d28   :  { %v12219_v46 = vand.u32 4294901760, %v12214_v30  ;;  %13223 = vrot.lane.b32.xlu0 %v12214_v30, %s18944_s19 }
0x1d29   :  { %v12216_v39 = vand.u32 4294901760, %v12213_v51  ;;  %13221 = vrot.lane.b32.xlu1 %v12213_v51, %s18944_s19 }
0x1d2a   :  { %v12311_v9 = vsub.f32 %v12214_v30, %v12219_v46 }
0x1d2b   :  { %v18266_v34 = vpack.c.bf16 %v12219_v46, %v12216_v39  ;;  %v12304_v0 = vsub.f32 %v12213_v51, %v12216_v39 }
0x1d2c   :  { %v12312_v7 = vand.u32 4294901760, %v12311_v9 }
0x1d2d   :  { %v12305_v33 = vand.u32 4294901760, %v12304_v0  ;;  %18267 = vmatprep.subr.bf16.mxu1 %v18266_v34  ;;  %v18274_v49 = vpack.c.bf16 %v12311_v9, %v12304_v0  ;;  %13299 = vrot.lane.b32.xlu1 %v7466_v20, %s18944_s19  ;;  %v13516_v20 = vand.u32 4294901760, %v21496_v6 }
0x1d2e   :  { %18269 = vmatpush3.bf16.msra.mxu1 %v18266_v34  ;;  %v12313_v21 = vsub.f32 %v12311_v9, %v12312_v7 }
0x1d2f   :  { %v12306_v58 = vsub.f32 %v12304_v0, %v12305_v33  ;;  %v18282_v37 = vpack.c.bf16 %v12312_v7, %v12305_v33  ;;  %v13460_v0 = vand.u32 4294901760, %v21463_v27 }
0x1d30   :  { %v12314_v62 = vand.u32 4294901760, %v12313_v21 }
0x1d31   :  { %16723 = vmatmul.mubr.f32.vlgmr.msra.gmra.mrb[36].mxu1 %v22194_v8  ;;  %v12307_v56 = vand.u32 4294901760, %v12306_v58  ;;  %14148 = vrot.lane.b32.xlu1 %v11574_v5, %s18944_s19  ;;  %v13474_v8 = vand.u32 4294901760, %v21469_v17  ;;  %v13509_v58 = vand.u32 4294901760, %v21502_v26 }
0x1d32   :  { %16729 = vmatprep.mubr.f32.mxu1 %v22196_v16 }
0x1d33   :  { %v18270_v30 = vpack.c.bf16 %v12314_v62, %v12307_v56  ;;  %v13502_v56 = vand.u32 4294901760, %v21487_v55 }
0x1d35   :  { %18271 = vmatprep.subr.bf16.mxu1 %v18270_v30 }
0x1d36   :  { %18273 = vmatpush3.bf16.msra.mxu1 %v18270_v30 }
0x1d37   :  { %18275 = vmatprep.subr.bf16.mxu1 %v18274_v49 }
0x1d39   :  { %16730 = vmatmul.mubr.f32.vlgmr.msra.gmra.mrb[36].mxu1 %v22198_v2 }
0x1d3a   :  { %18277 = vmatpush3.bf16.msra.mxu1 %v18274_v49  ;;  %16736 = vmatprep.mubr.f32.mxu1 %v22200_v28 }
0x1d3b   :  { %18279 = vmatprep.subr.bf16.mxu1 %v18266_v34 }
0x1d41   :  { %16737 = vmatmul.mubr.f32.vlgmr.msra.gmra.mrb[36].mxu1 %v22202_v12 }
0x1d42   :  { %18281 = vmatpush3.bf16.msra.mxu1 %v18266_v34  ;;  %16743 = vmatprep.mubr.f32.mxu1 %v22204_v24  ;;  %v13298_v24 = vpop.permute.xlu0 %13297 }
0x1d43   :  { %18283 = vmatprep.subr.bf16.mxu1 %v18282_v37 }
0x1d49   :  { %16744 = vmatmul.mubr.f32.vlgmr.msra.gmra.mrb[36].mxu1 %v22206_v1  ;;  %v13398_v1 = vand.u32 4294901760, %v13298_v24 }
0x1d4a   :  { %18285 = vmatpush3.bf16.msra.mxu1 %v18282_v37  ;;  %16750 = vmatprep.mubr.f32.mxu1 %v22196_v16 }
0x1d4b   :  { %18287 = vmatprep.subr.bf16.mxu1 %v18266_v34  ;;  %v21639_v51 = vsub.f32 %v13298_v24, %v13398_v1 }
0x1d51   :  { %16751 = vmatmul.mubr.f32.vlgmr.msra.gmra.mrb[36].mxu1 %v22198_v2 }
0x1d52   :  { %18289 = vmatpush3.bf16.msra.mxu1 %v18266_v34  ;;  %16757 = vmatprep.mubr.f32.mxu1 %v22196_v16 }
0x1d53   :  { %18291 = vmatprep.subr.bf16.mxu1 %v18266_v34 }
0x1d59   :  { %16758 = vmatmul.mubr.f32.vlgmr.msra.gmra.mrb[36].mxu1 %v22198_v2  ;;  %v13488_v2 = vand.u32 4294901760, %v21478_v48 }
0x1d5a   :  { %18293 = vmatpush3.bf16.msra.mxu1 %v18266_v34  ;;  %16764 = vmatprep.mubr.f32.mxu1 %v22191_v23  ;;  %v13453_v23 = vand.u32 4294901760, %v21467_v45 }
0x1d5b   :  { %18295 = vmatprep.subr.bf16.mxu1 %v18270_v30 }
0x1d5c   :  { %v13454_v16 = vsub.f32 %v21467_v45, %v13453_v23 }
0x1d5d   :  { %16765 = vmatmul.mubr.f32.vlgmr.msra.gmra.mrb[38].mxu1 %v22195_v57  ;;  %v13461_v57 = vsub.f32 %v21463_v27, %v13460_v0  ;;  %v21632_v27 = vpack.c.bf16 %v13460_v0, %v13453_v23  ;;  %v13517_v0 = vsub.f32 %v21496_v6, %v13516_v20  ;;  %v13530_v23 = vand.u32 4294901760, %v21505_v14 }
0x1d5e   :  { %18297 = vmatpush3.bf16.msra.mxu1 %v18270_v30  ;;  %16771 = vmatprep.mubr.f32.mxu1 %v22197_v15 }
0x1d5f   :  { %18299 = vmatprep.subr.bf16.mxu1 %v18274_v49  ;;  %v13462_v28 = vand.u32 4294901760, %v13461_v57  ;;  %v13523_v57 = vand.u32 4294901760, %v21511_v22 }
0x1d65   :  { %16772 = vmatmul.mubr.f32.vlgmr.msra.gmra.mrb[38].mxu1 %v22199_v25 }
0x1d66   :  { %18301 = vmatpush3.bf16.msra.mxu1 %v18274_v49  ;;  %16778 = vmatprep.mubr.f32.mxu1 %v22201_v19  ;;  %v13455_v19 = vand.u32 4294901760, %v13454_v16  ;;  %v13495_v49 = vand.u32 4294901760, %v21493_v13 }
0x1d67   :  { %18303 = vmatprep.subr.bf16.mxu1 %v18266_v34 }
0x1d68   :  { %v13496_v21 = vsub.f32 %v21493_v13, %v13495_v49 }
0x1d6a   :  { %v13497_v13 = vand.u32 4294901760, %v13496_v21  ;;  %v13586_v21 = vand.u32 4294901760, %v21541_v60 }
0x1d6d   :  { %16779 = vmatmul.mubr.f32.vlgmr.msra.gmra.mrb[38].mxu1 %v22203_v40  ;;  %v13481_v40 = vand.u32 4294901760, %v21484_v29 }
0x1d6e   :  { %18305 = vmatpush3.bf16.msra.mxu1 %v18266_v34  ;;  %16785 = vmatprep.mubr.f32.mxu1 %v22205_v52 }
0x1d6f   :  { %18307 = vmatprep.subr.bf16.mxu1 %v18282_v37 }
0x1d75   :  { %16786 = vmatmul.mubr.f32.vlgmr.msra.gmra.mrb[38].mxu1 %v22207_v38  ;;  %v13489_v38 = vsub.f32 %v21478_v48, %v13488_v2  ;;  %v13503_v48 = vsub.f32 %v21487_v55, %v13502_v56  ;;  %v21657_v55 = vpack.c.bf16 %v13488_v2, %v13481_v40  ;;  %v13531_v2 = vsub.f32 %v21505_v14, %v13530_v23 }
0x1d76   :  { %18309 = vmatpush3.bf16.msra.mxu1 %v18282_v37  ;;  %16792 = vmatprep.mubr.f32.mxu1 %v22197_v15  ;;  %v13551_v14 = vand.u32 4294901760, %v21529_v36 }
0x1d77   :  { %18311 = vmatprep.subr.bf16.mxu1 %v18266_v34  ;;  %v13490_v39 = vand.u32 4294901760, %v13489_v38  ;;  %v13504_v30 = vand.u32 4294901760, %v13503_v48  ;;  %v13532_v24 = vand.u32 4294901760, %v13531_v2  ;;  %v13558_v38 = vand.u32 4294901760, %v21523_v59 }
0x1d7d   :  { %16793 = vmatmul.mubr.f32.vlgmr.msra.gmra.mrb[38].mxu1 %v22199_v25 }
0x1d7e   :  { %18313 = vmatpush3.bf16.msra.mxu1 %v18266_v34  ;;  %16799 = vmatprep.mubr.f32.mxu1 %v22197_v15  ;;  %v13467_v15 = vand.u32 4294901760, %v21475_v54 }
0x1d7f   :  { %18314 = vmatprep.subr.bf16.mxu1 %v22145_v44 }
0x1d80   :  { %v13468_v12 = vsub.f32 %v21475_v54, %v13467_v15  ;;  %v21637_v54 = vpack.c.bf16 %v13462_v28, %v13455_v19  ;;  %v21641_v9 = vpack.c.bf16 %v13474_v8, %v13467_v15  ;;  %v21666_v15 = vpack.c.bf16 %v13502_v56, %v13495_v49 }
0x1d81   :  { %v13544_v28 = vand.u32 4294901760, %v21514_v41  ;;  %v13524_v19 = vsub.f32 %v21511_v22, %v13523_v57  ;;  %v13559_v49 = vsub.f32 %v21523_v59, %v13558_v38  ;;  %v13579_v59 = vand.u32 4294901760, %v21547_v32 }
0x1d82   :  { %v13469_v7 = vand.u32 4294901760, %v13468_v12  ;;  %v13537_v12 = vand.u32 4294901760, %v21520_v63 }
0x1d84   :  { %v13538_v56 = vsub.f32 %v21520_v63, %v13537_v12  ;;  %v13560_v63 = vand.u32 4294901760, %v13559_v49 }
0x1d85   :  { %16800 = vmatmul.mubr.f32.vlgmr.msra.gmra.mrb[38].mxu1 %v22199_v25  ;;  %v13475_v25 = vsub.f32 %v21469_v17, %v13474_v8  ;;  %v13482_v17 = vsub.f32 %v21484_v29, %v13481_v40  ;;  %v13510_v8 = vsub.f32 %v21502_v26, %v13509_v58  ;;  %v21672_v40 = vpack.c.bf16 %v13504_v30, %v13497_v13  ;;  %v22224_v13 = vld [vmem:[#allocation17_spill] sm:$0xff] }
0x1d86   :  { %18316 = vmatpush1.bf16.msra.mxu1 %v21465_v11  ;;  %v21674_v26 = vpack.c.bf16 %v13516_v20, %v13509_v58  ;;  %v21690_v20 = vpack.c.bf16 %v13544_v28, %v13537_v12 }
0x1d87   :  { %18317 = vmatprep.subr.bf16.mxu1 %v22145_v44  ;;  %v13476_v45 = vand.u32 4294901760, %v13475_v25  ;;  %v13483_v29 = vand.u32 4294901760, %v13482_v17  ;;  %v13518_v25 = vand.u32 4294901760, %v13517_v0  ;;  %v13511_v6 = vand.u32 4294901760, %v13510_v8 }
0x1d88   :  { %v21682_v17 = vpack.c.bf16 %v13530_v23, %v13523_v57  ;;  %v21698_v0 = vpack.c.bf16 %v13558_v38, %v13551_v14  ;;  %v13587_v23 = vsub.f32 %v21541_v60, %v13586_v21  ;;  %v13600_v8 = vand.u32 4294901760, %v22224_v13 }
0x1d89   :  { %v21651_v37 = vpack.c.bf16 %v13476_v45, %v13469_v7  ;;  %v21664_v16 = vpack.c.bf16 %v13490_v39, %v13483_v29  ;;  %v13525_v45 = vand.u32 4294901760, %v13524_v19  ;;  %v21680_v7 = vpack.c.bf16 %v13518_v25, %v13511_v6 }
0x1d8a   :  { %18319 = vmatpush1.bf16.msra.mxu1 %v21473_v3  ;;  %v13552_v39 = vsub.f32 %v21529_v36, %v13551_v14  ;;  %v13580_v25 = vsub.f32 %v21547_v32, %v13579_v59  ;;  %v13601_v19 = vsub.f32 %v22224_v13, %v13600_v8  ;;  %v21712_v60 = vpack.c.bf16 %v13586_v21, %v13579_v59 }
0x1d8b   :  { %18320 = vmatprep.subr.bf16.mxu1 %v22145_v44  ;;  %v21688_v48 = vpack.c.bf16 %v13532_v24, %v13525_v45 }
0x1d8c   :  { %v13553_v58 = vand.u32 4294901760, %v13552_v39  ;;  %v13581_v12 = vand.u32 4294901760, %v13580_v25  ;;  %v13602_v38 = vand.u32 4294901760, %v13601_v19 }
0x1d8e   :  { %18322 = vmatpush1.bf16.msra.mxu1 %v21482_v53 }
0x1d8f   :  { %18323 = vmatprep.subr.bf16.mxu1 %v22145_v44 }
0x1d92   :  { %18325 = vmatpush1.bf16.msra.mxu1 %v21491_v42 }
0x1d93   :  { %18326 = vmatprep.subr.bf16.mxu1 %v22145_v44 }
0x1d96   :  { %18328 = vmatpush1.bf16.msra.mxu1 %v21500_v35 }
0x1d97   :  { %18329 = vmatprep.subr.bf16.mxu1 %v22145_v44 }
0x1d9a   :  { %18331 = vmatpush1.bf16.msra.mxu1 %v21509_v18 }
0x1d9b   :  { %18332 = vmatprep.subr.bf16.mxu1 %v22145_v44  ;;  %v21629_v52 = vpop.permute.xlu1 %13221 }
0x1d9e   :  { %18334 = vmatpush1.bf16.msra.mxu1 %v21518_v31 }
0x1d9f   :  { %18335 = vmatprep.subr.bf16.mxu1 %v22145_v44  ;;  %v13300_v5 = vpop.permute.xlu1 %13299 }
0x1da0   :  { %v13401_v46 = vand.u32 4294901760, %v13300_v5 }
0x1da2   :  { %18337 = vmatpush1.bf16.msra.mxu1 %v21527_v47  ;;  %v21645_v34 = vpack.c.bf16 %v13401_v46, %v13398_v1  ;;  %v21647_v33 = vsub.f32 %v13300_v5, %v13401_v46  ;;  %v13545_v1 = vsub.f32 %v21514_v41, %v13544_v28  ;;  %v13572_v5 = vand.u32 4294901760, %v21532_v50 }
0x1da3   :  { %18338 = vmatprep.subr.bf16.mxu1 %v22145_v44  ;;  %v13539_v46 = vand.u32 4294901760, %v13538_v56  ;;  %v13565_v41 = vand.u32 4294901760, %v21538_v43  ;;  %v21704_v28 = vpack.c.bf16 %v13560_v63, %v13553_v58 }
0x1da4   :  { %v18420_v62 = vpack.c.bf16 %v21647_v33, %v21639_v51  ;;  %v13546_v22 = vand.u32 4294901760, %v13545_v1  ;;  %v13573_v29 = vsub.f32 %v21532_v50, %v13572_v5  ;;  %v22225_v50 = vld [vmem:[#allocation18_spill] sm:$0xff] }
0x1da5   :  { %v13593_v2 = vand.u32 4294901760, %v22225_v50  ;;  %v21706_v6 = vpack.c.bf16 %v13572_v5, %v13565_v41 }
0x1da6   :  { %18340 = vmatpush1.bf16.msra.mxu1 %v21536_v10  ;;  %18421 = vmatpush1.bf16.msra.mxu0 %v18420_v62  ;;  %v13566_v62 = vsub.f32 %v21538_v43, %v13565_v41  ;;  %v21696_v30 = vpack.c.bf16 %v13546_v22, %v13539_v46  ;;  %v13574_v36 = vand.u32 4294901760, %v13573_v29  ;;  %v13588_v43 = vand.u32 4294901760, %v13587_v23  ;;  %v13224_v46 = vpop.permute.xlu0 %13223 }
0x1da7   :  { %18341 = vmatprep.subr.bf16.mxu1 %v22145_v44  ;;  %18458 = vmatprep.subr.bf16.mxu0 %v22145_v44  ;;  %v13594_v24 = vsub.f32 %v22225_v50, %v13593_v2  ;;  %v21716_v32 = vpack.c.bf16 %v13600_v8, %v13593_v2 }
0x1da8   :  { %v13567_v57 = vand.u32 4294901760, %v13566_v62  ;;  %v21714_v56 = vpack.c.bf16 %v13588_v43, %v13581_v12 }
0x1da9   :  { %v13595_v45 = vand.u32 4294901760, %v13594_v24 }
0x1daa   :  { %18343 = vmatpush1.bf16.msra.mxu1 %v21545_v4  ;;  %v21710_v1 = vpack.c.bf16 %v13574_v36, %v13567_v57 }
0x1dab   :  { %18344 = vmatprep.subr.bf16.mxu1 %v22145_v44  ;;  %v21718_v14 = vpack.c.bf16 %v13602_v38, %v13595_v45 }
0x1dae   :  { %18346 = vmatpush1.bf16.msra.mxu1 %v21554_v61 }
0x1daf   :  { %18347 = vmatprep.subr.bf16.mxu1 %v22145_v44 }
0x1db2   :  { %18349 = vmatpush1.bf16.msra.mxu1 %v21645_v34 }
0x1db3   :  { %18350 = vmatprep.subr.bf16.mxu1 %v22145_v44 }
0x1e2c   :  { %v16759_v22 = vpop.f32.mrb[36].mxu1 }
0x1e2d   :  { %v12707_v49 = vpop.f32.mrb[37].mxu1  ;;  %v13228_v41 = vsel %vm2005_vm10, %v16759_v22, %v13224_v46 }
0x1e2e   :  { %v13227_v5 = vsel %vm2005_vm10, %v12707_v49, %v21629_v52  ;;  %v21725_v63 = vand.u32 4294901760, %v13228_v41 }
0x1e2f   :  { %v21722_v39 = vand.u32 4294901760, %v13227_v5 }
0x1e30   :  { %v21737_v52 = vsub.f32 %v13228_v41, %v21725_v63  ;;  %v22226_v41 = vld [vmem:[#allocation67_spill] sm:$0xff] }
0x1e31   :  { %v21728_v29 = vsub.f32 %v13227_v5, %v21722_v39 }
0x1e32   :  { %v13442_v43 = vand.u32 4294901760, %v21737_v52 }
0x1e33   :  { %v13427_v13 = vand.u32 4294901760, %v21728_v29 }
0x1e35   :  { %v13428_v2 = vsub.f32 %v21728_v29, %v13427_v13 }
0x1e37   :  { %v13429_v38 = vand.u32 4294901760, %v13428_v2 }
0x1e58   :  { %v16801_v21 = vpop.f32.mrb[38].mxu1 }
0x1e59   :  { %v13329_v58 = vsel %vm2005_vm10, %v16801_v21, 0  ;;  %v13209_v62 = vpop.f32.mrb[39].mxu1 }
0x1e5a   :  { %v21731_v59 = vand.u32 4294901760, %v13329_v58  ;;  %v13326_v36 = vsel %vm2005_vm10, %v13209_v62, 0 }
0x1e5b   :  { %v21734_v23 = vand.u32 4294901760, %v13326_v36 }
0x1e5c   :  { %v21741_v8 = vsub.f32 %v13329_v58, %v21731_v59 }
0x1e5d   :  { %v21744_v57 = vsub.f32 %v13326_v36, %v21734_v23 }
0x1e5e   :  { %v13436_v25 = vand.u32 4294901760, %v21741_v8 }
0x1e5f   :  { %v13421_v50 = vand.u32 4294901760, %v21744_v57  ;;  %13763 = vmatprep.mubr.f32.mxu0 %v21744_v57 }
0x1e60   :  { %13766 = vmatmul.mubr.f32.vlgmr.msra.gmra.mrb[26].mxu0 %v21728_v29  ;;  %v13437_v12 = vsub.f32 %v21741_v8, %v13436_v25 }
0x1e61   :  { %18460 = vmatpush1.bf16.msra.mxu0 %v21632_v27  ;;  %13772 = vmatprep.mubr.f32.mxu0 %v21741_v8  ;;  %v13422_v19 = vsub.f32 %v21744_v57, %v13421_v50  ;;  %v13443_v27 = vsub.f32 %v21737_v52, %v13442_v43  ;;  %v22228_v8 = vld [vmem:[#allocation15_spill] sm:$0xff] }
0x1e62   :  { %18461 = vmatprep.subr.bf16.mxu0 %v22145_v44  ;;  %v13438_v45 = vand.u32 4294901760, %v13437_v12  ;;  %v14175_v57 = vsub.s32 4, %v22228_v8 }
0x1e63   :  { %v13423_v24 = vand.u32 4294901760, %v13422_v19  ;;  %v13444_v22 = vand.u32 4294901760, %v13443_v27 }
0x1e64   :  { %13775 = vmatmul.mubr.f32.gmra.mrb[28].mxu0 %v21737_v52 }
0x1e65   :  { %18463 = vmatpush1.bf16.msra.mxu0 %v21641_v9  ;;  %13424 = vmatprep.mubr.f32.mxu1 %v13423_v24  ;;  %v13614_v9 = vand.u32 4294901760, %v21647_v33 }
0x1e66   :  { %14028 = vmatprep.mubr.f32.mxu0 %v21734_v23  ;;  %13430 = vmatmul.mubr.f32.vlgmr.msra.gmra.mrb[40].mxu1 %v13429_v38 }
0x1e67   :  { %18352 = vmatpush1.bf16.msra.mxu1 %v21637_v54  ;;  %13439 = vmatprep.mubr.f32.mxu1 %v13438_v45  ;;  %v13607_v54 = vand.u32 4294901760, %v21639_v51 }
0x1e68   :  { %18464 = vmatprep.subr.bf16.mxu0 %v22145_v44  ;;  %18353 = vmatprep.subr.bf16.mxu1 %v22145_v44 }
0x1e69   :  { %18466 = vmatpush1.bf16.msra.mxu0 %v21657_v55  ;;  %v13615_v55 = vsub.f32 %v21647_v33, %v13614_v9 }
0x1e6a   :  { %13445 = vmatmul.mubr.f32.gmra.mrb[42].mxu1 %v13444_v22  ;;  %18467 = vmatprep.subr.bf16.mxu0 %v22145_v44 }
0x1e6b   :  { %18355 = vmatpush1.bf16.msra.mxu1 %v21651_v37  ;;  %13635 = vmatprep.mubr.f32.mxu1 %v21734_v23  ;;  %v13608_v37 = vsub.f32 %v21639_v51, %v13607_v54 }
0x1e6c   :  { %18356 = vmatprep.subr.bf16.mxu1 %v22145_v44 }
0x1e6d   :  { %18469 = vmatpush1.bf16.msra.mxu0 %v21666_v15  ;;  %v13609_v15 = vand.u32 4294901760, %v13608_v37 }
0x1e6e   :  { %18470 = vmatprep.subr.bf16.mxu0 %v22145_v44 }
0x1e6f   :  { %18358 = vmatpush1.bf16.msra.mxu1 %v21664_v16  ;;  %v18492_v16 = vpack.c.bf16 %v13614_v9, %v13607_v54 }
0x1e70   :  { %18359 = vmatprep.subr.bf16.mxu1 %v22145_v44 }
0x1e71   :  { %18472 = vmatpush1.bf16.msra.mxu0 %v21674_v26 }
0x1e72   :  { %18473 = vmatprep.subr.bf16.mxu0 %v22145_v44 }
0x1e73   :  { %18361 = vmatpush1.bf16.msra.mxu1 %v21672_v40  ;;  %v13616_v40 = vand.u32 4294901760, %v13615_v55 }
0x1e74   :  { %18362 = vmatprep.subr.bf16.mxu1 %v22145_v44 }
0x1e75   :  { %18475 = vmatpush1.bf16.msra.mxu0 %v21682_v17  ;;  %v18384_v51 = vpack.c.bf16 %v13616_v40, %v13609_v15 }
0x1e76   :  { %18476 = vmatprep.subr.bf16.mxu0 %v22145_v44 }
0x1e77   :  { %18364 = vmatpush1.bf16.msra.mxu1 %v21680_v7 }
0x1e78   :  { %18365 = vmatprep.subr.bf16.mxu1 %v22145_v44 }
0x1e79   :  { %18478 = vmatpush1.bf16.msra.mxu0 %v21690_v20 }
0x1e7a   :  { %18479 = vmatprep.subr.bf16.mxu0 %v22145_v44 }
0x1e7b   :  { %18367 = vmatpush1.bf16.msra.mxu1 %v21688_v48 }
0x1e7c   :  { %18368 = vmatprep.subr.bf16.mxu1 %v22145_v44 }
0x1e7d   :  { %18481 = vmatpush1.bf16.msra.mxu0 %v21698_v0 }
0x1e7e   :  { %18482 = vmatprep.subr.bf16.mxu0 %v22145_v44 }
0x1e7f   :  { %18370 = vmatpush1.bf16.msra.mxu1 %v21696_v30 }
0x1e80   :  { %18371 = vmatprep.subr.bf16.mxu1 %v22145_v44 }
0x1e81   :  { %18484 = vmatpush1.bf16.msra.mxu0 %v21706_v6 }
0x1e82   :  { %18485 = vmatprep.subr.bf16.mxu0 %v22145_v44 }
0x1e83   :  { %18373 = vmatpush1.bf16.msra.mxu1 %v21704_v28 }
0x1e84   :  { %18374 = vmatprep.subr.bf16.mxu1 %v22145_v44 }
0x1e85   :  { %18487 = vmatpush1.bf16.msra.mxu0 %v21712_v60 }
0x1e86   :  { %18488 = vmatprep.subr.bf16.mxu0 %v22145_v44 }
0x1e87   :  { %18376 = vmatpush1.bf16.msra.mxu1 %v21710_v1 }
0x1e88   :  { %18377 = vmatprep.subr.bf16.mxu1 %v22145_v44 }
0x1e89   :  { %18490 = vmatpush1.bf16.msra.mxu0 %v21716_v32 }
0x1e8a   :  { %18491 = vmatprep.subr.bf16.mxu0 %v22145_v44 }
0x1e8b   :  { %18379 = vmatpush1.bf16.msra.mxu1 %v21714_v56 }
0x1e8c   :  { %18380 = vmatprep.subr.bf16.mxu1 %v22145_v44 }
0x1e8d   :  { %18493 = vmatpush1.bf16.msra.mxu0 %v18492_v16 }
0x1e8f   :  { %18382 = vmatpush1.bf16.msra.mxu1 %v21718_v14 }
0x1e90   :  { %14030 = vmatmul.mubr.f32.vlgmr.msra.gmra.mrb[30].mxu0 %v21722_v39  ;;  %18383 = vmatprep.subr.bf16.mxu1 %v22145_v44 }
0x1e91   :  { %14035 = vmatprep.mubr.f32.mxu0 %v21731_v59 }
0x1e93   :  { %18385 = vmatpush1.bf16.msra.mxu1 %v18384_v51 }
0x1e94   :  { %14037 = vmatmul.mubr.f32.gmra.mrb[32].mxu0 %v21725_v63  ;;  %18422 = vmatprep.subr.bf16.mxu1 %v22145_v44 }
0x1e96   :  { %13637 = vmatmul.mubr.f32.vlgmr.msra.gmra.mrb[44].mxu1 %v21722_v39 }
0x1e97   :  { %13642 = vmatprep.mubr.f32.mxu1 %v21731_v59  ;;  %18424 = vmatpush1.bf16.msra.mxu1 %v21465_v11 }
0x1e98   :  { %18425 = vmatprep.subr.bf16.mxu1 %v22145_v44 }
0x1e9a   :  { %13644 = vmatmul.mubr.f32.gmra.mrb[46].mxu1 %v21725_v63 }
0x1e9b   :  { %18427 = vmatpush1.bf16.msra.mxu1 %v21473_v3  ;;  %13871 = vmatprep.mubr.f32.mxu1 %v13421_v50 }
0x1e9c   :  { %18428 = vmatprep.subr.bf16.mxu1 %v22145_v44 }
0x1e9f   :  { %18430 = vmatpush1.bf16.msra.mxu1 %v21482_v53 }
0x1ea0   :  { %18431 = vmatprep.subr.bf16.mxu1 %v22145_v44 }
0x1ea3   :  { %18433 = vmatpush1.bf16.msra.mxu1 %v21491_v42 }
0x1ea4   :  { %18434 = vmatprep.subr.bf16.mxu1 %v22145_v44 }
0x1ea7   :  { %18436 = vmatpush1.bf16.msra.mxu1 %v21500_v35 }
0x1ea8   :  { %18437 = vmatprep.subr.bf16.mxu1 %v22145_v44 }
0x1eab   :  { %18439 = vmatpush1.bf16.msra.mxu1 %v21509_v18 }
0x1eac   :  { %18440 = vmatprep.subr.bf16.mxu1 %v22145_v44 }
0x1eaf   :  { %18442 = vmatpush1.bf16.msra.mxu1 %v21518_v31 }
0x1eb0   :  { %18443 = vmatprep.subr.bf16.mxu1 %v22145_v44 }
0x1eb3   :  { %18445 = vmatpush1.bf16.msra.mxu1 %v21527_v47 }
0x1eb4   :  { %18446 = vmatprep.subr.bf16.mxu1 %v22145_v44 }
0x1eb7   :  { %18448 = vmatpush1.bf16.msra.mxu1 %v21536_v10 }
0x1eb8   :  { %18449 = vmatprep.subr.bf16.mxu1 %v22145_v44 }
0x1ebb   :  { %18451 = vmatpush1.bf16.msra.mxu1 %v21545_v4 }
0x1ebc   :  { %18452 = vmatprep.subr.bf16.mxu1 %v22145_v44 }
0x1ebf   :  { %18454 = vmatpush1.bf16.msra.mxu1 %v21554_v61 }
0x1ec0   :  { %18455 = vmatprep.subr.bf16.mxu1 %v22145_v44 }
0x1ec3   :  { %18457 = vmatpush1.bf16.msra.mxu1 %v21645_v34 }
0x1ec4   :  { %18494 = vmatprep.subr.bf16.mxu1 %v22145_v44 }
0x1ec6   :  { %13875 = vmatmul.mubr.f32.vlgmr.msra.gmra.mrb[48].mxu1 %v13427_v13 }
0x1ec7   :  { %13882 = vmatprep.mubr.f32.mxu1 %v13436_v25  ;;  %18496 = vmatpush1.bf16.msra.mxu1 %v21465_v11  ;;  %v22229_v25 = vld [vmem:[#allocation19_spill] sm:$0xff] }
0x1ec8   :  { %18497 = vmatprep.subr.bf16.mxu1 %v22145_v44  ;;  %v14176_v50 = vrot.slane %v22229_v25, %v14175_v57 }
0x1eca   :  { %13886 = vmatmul.mubr.f32.gmra.mrb[50].mxu1 %v13442_v43 }
0x1ecb   :  { %18499 = vmatpush1.bf16.msra.mxu1 %v21473_v3  ;;  %14131 = vmatprep.mubr.f32.mxu1 %v21734_v23 }
0x1ecc   :  { %18500 = vmatprep.subr.bf16.mxu1 %v22145_v44 }
0x1ecf   :  { %18502 = vmatpush1.bf16.msra.mxu1 %v21482_v53 }
0x1ed0   :  { %18503 = vmatprep.subr.bf16.mxu1 %v22145_v44 }
0x1ed3   :  { %18505 = vmatpush1.bf16.msra.mxu1 %v21491_v42 }
0x1ed4   :  { %18506 = vmatprep.subr.bf16.mxu1 %v22145_v44 }
0x1ed7   :  { %18508 = vmatpush1.bf16.msra.mxu1 %v21500_v35 }
0x1ed8   :  { %18509 = vmatprep.subr.bf16.mxu1 %v22145_v44 }
0x1edb   :  { %18511 = vmatpush1.bf16.msra.mxu1 %v21509_v18 }
0x1edc   :  { %18512 = vmatprep.subr.bf16.mxu1 %v22145_v44 }
0x1edf   :  { %18514 = vmatpush1.bf16.msra.mxu1 %v21518_v31 }
0x1ee0   :  { %18515 = vmatprep.subr.bf16.mxu1 %v22145_v44 }
0x1ee3   :  { %18517 = vmatpush1.bf16.msra.mxu1 %v21527_v47 }
0x1ee4   :  { %18518 = vmatprep.subr.bf16.mxu1 %v22145_v44 }
0x1ee7   :  { %18520 = vmatpush1.bf16.msra.mxu1 %v21536_v10 }
0x1ee8   :  { %18521 = vmatprep.subr.bf16.mxu1 %v22145_v44 }
0x1eeb   :  { %18523 = vmatpush1.bf16.msra.mxu1 %v21545_v4 }
0x1eec   :  { %18524 = vmatprep.subr.bf16.mxu1 %v22145_v44 }
0x1eef   :  { %18526 = vmatpush1.bf16.msra.mxu1 %v21554_v61 }
0x1ef0   :  { %18527 = vmatprep.subr.bf16.mxu1 %v22145_v44 }
0x1ef3   :  { %18529 = vmatpush1.bf16.msra.mxu1 %v21645_v34 }
0x1ef6   :  { %14133 = vmatmul.mubr.f32.vlgmr.msra.gmra.mrb[52].mxu1 %v21722_v39  ;;  %v14149_v39 = vpop.permute.xlu1 %14148 }
0x1ef7   :  { %14138 = vmatprep.mubr.f32.mxu1 %v21731_v59  ;;  %v22227_v59 = vld [vmem:[#allocation55_spill] sm:$0xff] }
0x1efa   :  { %14140 = vmatmul.mubr.f32.gmra.mrb[54].mxu1 %v21725_v63 }
0x1f33   :  { %v13767_v11 = vpop.f32.mrb[26].mxu0 }
0x1f34   :  { %v13769_v3 = vpop.f32.mrb[27].mxu0 }
0x1f37   :  { %v13776_v53 = vpop.f32.mrb[28].mxu0 }
0x1f38   :  { %v13778_v42 = vpop.f32.mrb[29].mxu0 }
0x1f39   :  { %v13431_v35 = vpop.f32.mrb[40].mxu1 }
0x1f3a   :  { %v13433_v18 = vpop.f32.mrb[41].mxu1 }
0x1f3d   :  { %v13446_v31 = vpop.f32.mrb[42].mxu1 }
0x1f3e   :  { %v13448_v47 = vpop.f32.mrb[43].mxu1 }
0x1f63   :  { %v14031_v10 = vpop.f32.mrb[30].mxu0 }
0x1f64   :  { %v14033_v4 = vpop.f32.mrb[31].mxu0 }
0x1f67   :  { %v14038_v61 = vpop.f32.mrb[32].mxu0 }
0x1f68   :  { %v14040_v44 = vpop.f32.mrb[33].mxu0 }
0x1f69   :  { %v13638_v33 = vpop.f32.mrb[44].mxu1 }
0x1f6a   :  { %v13639_v34 = vadd.f32 %v13638_v33, %v13431_v35  ;;  %v13640_v26 = vpop.f32.mrb[45].mxu1 }
0x1f6c   :  { %v13768_v7 = vadd.f32 %v13767_v11, %v13639_v34 }
0x1f6d   :  { %v13645_v17 = vpop.f32.mrb[46].mxu1 }
0x1f6e   :  { %v13646_v48 = vadd.f32 %v13645_v17, %v13446_v31  ;;  %v13647_v20 = vpop.f32.mrb[47].mxu1 }
0x1f70   :  { %v13777_v30 = vadd.f32 %v13776_v53, %v13646_v48 }
0x1f99   :  { %v13876_v0 = vpop.f32.mrb[48].mxu1 }
0x1f9a   :  { %v13877_v28 = vadd.f32 %v13876_v0, %v13768_v7  ;;  %v13878_v6 = vpop.f32.mrb[49].mxu1 }
0x1f9c   :  { %v14032_v1 = vadd.f32 %v14031_v10, %v13877_v28 }
0x1f9d   :  { %v13887_v60 = vpop.f32.mrb[50].mxu1 }
0x1f9e   :  { %v13888_v56 = vadd.f32 %v13887_v60, %v13777_v30  ;;  %v13889_v32 = vpop.f32.mrb[51].mxu1 }
0x1fa0   :  { %v14039_v14 = vadd.f32 %v14038_v61, %v13888_v56 }
0x1fc9   :  { %v14134_v49 = vpop.f32.mrb[52].mxu1 }
0x1fca   :  { %v14135_v5 = vadd.f32 %v14134_v49, %v14032_v1  ;;  %v14136_v46 = vpop.f32.mrb[53].mxu1 }
0x1fcc   :  { %v14145_v63 = vadd.f32 %v14135_v5, %v22226_v41 }
0x1fcd   :  { %v14141_v29 = vpop.f32.mrb[54].mxu1 }
0x1fce   :  { %v14142_v21 = vadd.f32 %v14141_v29, %v14039_v14  ;;  %v14151_v58 = vadd.f32 %v14149_v39, %v14145_v63  ;;  %v14143_v62 = vpop.f32.mrb[55].mxu1 }
0x1fd0   :  { %v14146_v36 = vadd.f32 %v14142_v21, %v22227_v59  ;;  %v14153_v23 = vsel %vm111_vm0, %v14151_v58, 0.0 }
0x1fd1   :  { %14154 = vadd.xlane.f32.xlu0 %v14153_v23 }
0x1fd2   :  { %v14152_v52 = vadd.f32 %v14149_v39, %v14146_v36 }
0x1fd4   :  { %v14156_v13 = vsel %vm111_vm0, %v14152_v52, 0.0 }
0x1fd5   :  { %14157 = vadd.xlane.f32.xlu1 %v14156_v13 }
0x1fe6   :  { %14200 = vrot.lane.b32.xlu1 %v14176_v50, %s18942_s1 }
0x205e   :  { %v14155_v2 = vpop.xlane.xlu0 %14154 }
0x205f   :  { %v14159_v43 = vmul.f32 0.03125, %v14155_v2 }
0x2061   :  { %v14161_v19 = vsub.f32 %v14151_v58, %v14159_v43 }
0x2062   :  { %v14158_v12 = vpop.xlane.xlu1 %14157 }
0x2063   :  { %v14160_v24 = vmul.f32 0.03125, %v14158_v12  ;;  %v14163_v38 = vmul.f32 %v14161_v19, %v14161_v19  ;;  %v14177_v4 = vmul.f32 %v14176_v50, %v14161_v19 }
0x2065   :  { %v14162_v27 = vsub.f32 %v14152_v52, %v14160_v24  ;;  %v14165_v45 = vsel %vm111_vm0, %v14163_v38, 0.0 }
0x2066   :  { %14166 = vadd.xlane.f32.xlu0 %v14165_v45  ;;  %v14201_v44 = vpop.permute.xlu1 %14200 }
0x2067   :  { %v14164_v22 = vmul.f32 %v14162_v27, %v14162_v27  ;;  %v14178_v34 = vmul.f32 %v14176_v50, %v14162_v27 }
0x2069   :  { %v14168_v54 = vsel %vm111_vm0, %v14164_v22, 0.0 }
0x206a   :  { %14169 = vadd.xlane.f32.xlu0 %v14168_v54 }
0x20f3   :  { %v14167_v9 = vpop.xlane.xlu0 %14166 }
0x20f4   :  { %v14171_v37 = vmul.f32 0.032258064, %v14167_v9 }
0x20f6   :  { %18806 = vrsqrt.f32 %v14171_v37  ;;  %vm14181_vm9 = vcmp.eq.f32.partialorder %v14171_v37, inf  ;;  %v14184_v51 = vand.u32 2147483648, %v14171_v37  ;;  %vm14183_vm10 = vcmp.eq.f32.partialorder %v14171_v37, 0.0 }
0x20f7   :  { %v14170_v55 = vpop.xlane.xlu0 %14169 }
0x20f8   :  { %v14172_v16 = vmul.f32 0.032258064, %v14170_v55 }
0x20fa   :  { %18808 = vrsqrt.f32 %v14172_v16  ;;  %vm14188_vm11 = vcmp.eq.f32.partialorder %v14172_v16, inf  ;;  %v14191_v18 = vand.u32 2147483648, %v14172_v16  ;;  %vm14190_vm12 = vcmp.eq.f32.partialorder %v14172_v16, 0.0 }
0x2100   :  { %v18807_v15 = vpop.eup %18806 }
0x2101   :  { %v14180_v40 = vmul.f32 %v18807_v15, %v14171_v37 }
0x2103   :  { %v14182_v11 = vsel %vm14181_vm9, %v14171_v37, %v14180_v40 }
0x2104   :  { %v18809_v3 = vpop.eup %18808  ;;  %v14185_v53 = vsel %vm14183_vm10, %v14184_v51, %v14182_v11 }
0x2105   :  { %v14187_v42 = vmul.f32 %v18809_v3, %v14172_v16  ;;  %v14193_v35 = vadd.f32 1e-06, %v14185_v53 }
0x2107   :  { %v14189_v31 = vsel %vm14188_vm11, %v14172_v16, %v14187_v42  ;;  %18810 = vrcp.f32 %v14193_v35 }
0x2108   :  { %v14192_v47 = vsel %vm14190_vm12, %v14191_v18, %v14189_v31 }
0x2109   :  { %v14194_v10 = vadd.f32 1e-06, %v14192_v47 }
0x210b   :  { %18812 = vrcp.f32 %v14194_v10 }
0x2111   :  { %v18811_v61 = vpop.eup %18810 }
0x2112   :  { %v14196_v33 = vmul.f32 %v18811_v61, %v14177_v4 }
0x2114   :  { %v14203_v26 = vadd.f32 %v14201_v44, %v14196_v33 }
0x2115   :  { %v18813_v7 = vpop.eup %18812 }
0x2116   :  { %v14198_v17 = vmul.f32 %v18813_v7, %v14178_v34  ;;  %v14205_v48 = vsel %vm111_vm0, %v14203_v26, 0.0 }
0x2117   :  { %14207 = vst [vmem:[#allocation10] sm:$0xff] %v14205_v48 }
0x2118   :  { %v14204_v20 = vadd.f32 %v14201_v44, %v14198_v17 }
0x211a   :  { %v14206_v30 = vsel %vm111_vm0, %v14204_v20, 0.0 }
0x211b   :  { %14208 = vst [vmem:[#allocation10 + $0x8] sm:$0xff] %v14206_v30 }
0x211c   :  { %18917 = shalt.err (!%p18914_p8)
}
0x211d   :  { %s18918_s0 = scalar_lea.hbm %s21912_s5, 256 }
0x211e   :  { %p18919_p9 = scmp.ne.s32.totalorder %s21912_s5, %s18918_s0  ;;  %p18922_p10 = scmp.lt.u32.totalorder %s18918_s0, %s21912_s5 }
0x2120   :  { %p18924_p11 = pnand %p18922_p10, %p18919_p9 }
0x2122   :  { %18927 = shalt.err (!%p18924_p11)
}
0x2123   :  { %14220 = dma.vmem_to_hbm [thread:$0]  %s14215_s26, 256, %s21912_s5, [#allocation4], %s18938_s30, %s18938_s30, %s18939_s6  }
0x2124   :  { %18934 = dma.done.wait [#allocation4], 256  }
0x2125   :  { %18935 = vsyncadd [#allocation4], 4294967040 }
0x2126   :  { %14224 = vsyncpa [#allocation3], 1 }
0x2127   :  { %14225 = vsyncpa [#allocation6], 1 }
0x2128   :  { %14226 = vsyncpa [#allocation9], 1 }
0x2129   :  { %14227 = vsyncpa [#allocation4], 1 }

</bundles_post_ra>
